<compile_context>
chip_gen: v5e
topology: v5e:2x2
jax: 0.10.0
libtpu: 0.0.40
codegen_flags: <defaults>
</compile_context>

<pallas_src>
import functools

import numpy as np
import jax
import jax.numpy as jnp
from jax import lax
from jax.experimental import pallas as pl
from jax.experimental.pallas import tpu as pltpu

EPS = 1e-6


# --------------------------------------------------------------------------
# In-kernel helpers (values in the (C, L) layout, L = B_TILE * H * W lanes)
# --------------------------------------------------------------------------

def _shift_cols(x, s):
    """y[:, p] = x[:, p + s] (cyclic along lanes).  Wrapped / cross-image
    entries are masked by the caller.  Single XLU rotate."""
    if s == 0:
        return x
    return pltpu.roll(x, (-s) % x.shape[1], axis=1)


def _stacked_taps(v, mask, img_w):
    """All 9 border-masked 3x3 taps of v, stacked along the sublane axis:
    (Cin, L) -> (9*Cin, L).  The center tap (k == 4) needs no mask."""
    rows = []
    for kh in range(3):
        for kw in range(3):
            k = 3 * kh + kw
            t = _shift_cols(v, (kh - 1) * img_w + (kw - 1))
            if k != 4:
                t = t * mask[k:k + 1]
            rows.append(t)
    return jnp.concatenate(rows, axis=0)


def _layernorm_c(x):
    """LayerNorm over the channel (sublane) axis.  The affine part is folded
    into the following 1x1 conv by pack_params."""
    mu = jnp.mean(x, axis=0, keepdims=True)
    xc = x - mu
    var = jnp.mean(xc * xc, axis=0, keepdims=True)
    return xc * lax.rsqrt(var + EPS)


# --------------------------------------------------------------------------
# Fused NAFNet forward kernel (B_TILE images per grid step)
# --------------------------------------------------------------------------

def _nafnet_kernel(x_ref, mask_ref, iw_ref, ib_ref,
                   w1_ref, b1_ref, wdw_ref, bdw_ref,
                   wsca_ref, bsca_ref, w3_ref, b3_ref,
                   beta_ref, gamma_ref, w4_ref, b4_ref, w5_ref, b5_ref,
                   ew_ref, eb_ref, out_ref, *, img_w, img_n, b_tile):
    cimg = out_ref.shape[0]                  # true image channel count
    cw = wsca_ref.shape[0]                   # width
    xp = x_ref[...].astype(jnp.float32)      # (Cin_pad, L), zero-padded rows
    mask = mask_ref[...]                     # (9, L)

    # ---- intro: 3x3 conv as one stacked-K matmul (width, 9*Cin_pad) ----
    h = jnp.dot(iw_ref[...], _stacked_taps(xp, mask, img_w),
                preferred_element_type=jnp.float32) + ib_ref[...]

    # ---- NAFBlock ----
    hn = _layernorm_c(h)                                          # LN1 (affine folded)
    t = jnp.dot(w1_ref[...], hn, preferred_element_type=jnp.float32) + b1_ref[...]

    # depthwise 3x3 (per-channel scalar weights; center tap unmasked)
    wdw = wdw_ref[...]
    acc = t * wdw[:, 4:5]
    for kh in range(3):
        for kw in range(3):
            k = 3 * kh + kw
            if k == 4:
                continue
            tap = _shift_cols(t, (kh - 1) * img_w + (kw - 1)) * mask[k:k + 1]
            acc = acc + tap * wdw[:, k:k + 1]
    t = acc + bdw_ref[...]
    g = t[:cw] * t[cw:]                                           # SimpleGate

    # SCA: by linearity  mean(Wsca @ g) == Wsca @ mean(g); compute the matmul
    # once over the full lane width (MXU has slack), then a per-image
    # segmented mean so images flattened into the lane axis never mix.
    sca = jnp.dot(wsca_ref[...], g, preferred_element_type=jnp.float32)
    pieces = []
    for b in range(b_tile):
        sl = slice(b * img_n, (b + 1) * img_n)
        scale = jnp.mean(sca[:, sl], axis=1, keepdims=True) + bsca_ref[...]
        pieces.append(g[:, sl] * scale)
    g = pieces[0] if b_tile == 1 else jnp.concatenate(pieces, axis=1)

    t3 = jnp.dot(w3_ref[...], g, preferred_element_type=jnp.float32) + b3_ref[...]
    y = h + t3 * beta_ref[...]

    yn = _layernorm_c(y)                                          # LN2 (affine folded)
    t4 = jnp.dot(w4_ref[...], yn, preferred_element_type=jnp.float32) + b4_ref[...]
    g2 = t4[:cw] * t4[cw:]                                        # SimpleGate
    t5 = jnp.dot(w5_ref[...], g2, preferred_element_type=jnp.float32) + b5_ref[...]
    y = y + t5 * gamma_ref[...]

    # ---- ending: 3x3 conv (stacked K) + global input residual ----
    e = jnp.dot(ew_ref[...], _stacked_taps(y, mask, img_w),
                preferred_element_type=jnp.float32) + eb_ref[...] + xp[:cimg]
    out_ref[...] = e.astype(out_ref.dtype)


# --------------------------------------------------------------------------
# One-time (hoisted) parameter packing and mask construction
# --------------------------------------------------------------------------

def _border_masks_np(H, W, b_tile):
    """(9, b_tile*H*W) f32 validity masks for the 9 taps of a 3x3 'SAME'
    conv, tiled once per image packed into the lane axis."""
    hh = np.arange(H).reshape(H, 1)
    ww = np.arange(W).reshape(1, W)
    rows = []
    for kh in range(3):
        for kw in range(3):
            dh, dw = kh - 1, kw - 1
            m = ((hh + dh >= 0) & (hh + dh < H) &
                 (ww + dw >= 0) & (ww + dw < W))
            rows.append(m.reshape(1, H * W))
    m9 = np.concatenate(rows, axis=0).astype(np.float32)
    return np.tile(m9, (1, b_tile))


def choose_b_tile(B, N, max_lanes=8192):
    """Images per grid step: largest divisor of B that keeps >= 2 grid steps
    when B >= 2 (both v7x TensorCores get work) and keeps the lane width under
    a VMEM-friendly cap (activations are ~(2*width, b_tile*N) f32 each)."""
    best = 1
    for t in range(1, B + 1):
        if B % t or t * N > max_lanes:
            continue
        if B >= 2 and B // t < 2:
            continue
        best = t
    return best


def pack_params(params, *, H, W, b_tile):
    """Repack params into the kernel layout (done ONCE, outside the jitted
    per-call path).  Also folds the LayerNorm affines into the following 1x1
    convs and zero-pads the intro conv's input channels to a multiple of 8."""
    intro_w = np.asarray(params["intro_w"], np.float32)    # (3,3,Cimg,width)
    ending_w = np.asarray(params["ending_w"], np.float32)  # (3,3,width,Cimg)
    Cimg, width = intro_w.shape[2], intro_w.shape[3]
    assert width % 8 == 0, "width must be a multiple of 8 for aligned tap stacking"
    c2 = 2 * width
    cin_pad = -Cimg % 8
    p = {k: np.asarray(v, np.float32) for k, v in params["block"].items()}

    # Stacked dense 3x3 conv weights: (Cout, 9*Cin), tap-major along K.
    iw = np.transpose(intro_w.reshape(9, Cimg, width), (2, 0, 1))      # (w, 9, Cimg)
    iw = np.pad(iw, ((0, 0), (0, 0), (0, cin_pad)))
    iw = iw.reshape(width, 9 * (Cimg + cin_pad))
    ew = np.transpose(ending_w.reshape(9, width, Cimg), (2, 0, 1))     # (Cimg, 9, w)
    ew = ew.reshape(Cimg, 9 * width)

    # Fold LayerNorm affines into w1/b1 and w4/b4.
    w1 = p["w1"].T                                   # (2c, c)  (out, in)
    b1 = p["b1"].reshape(c2, 1)
    w1f = w1 * p["ln1w"].reshape(1, width)
    b1f = b1 + w1 @ p["ln1b"].reshape(width, 1)
    w4 = p["w4"].T
    b4 = p["b4"].reshape(c2, 1)
    w4f = w4 * p["ln2w"].reshape(1, width)
    b4f = b4 + w4 @ p["ln2b"].reshape(width, 1)

    packed_np = (
        _border_masks_np(H, W, b_tile),
        iw, np.asarray(params["intro_b"], np.float32).reshape(width, 1),
        w1f, b1f,
        np.ascontiguousarray(p["wdw"].reshape(9, c2).T), p["bdw"].reshape(c2, 1),
        np.ascontiguousarray(p["wsca"].T), p["bsca"].reshape(width, 1),
        np.ascontiguousarray(p["w3"].T), p["b3"].reshape(width, 1),
        p["beta"].reshape(width, 1), p["gamma"].reshape(width, 1),
        w4f, b4f,
        np.ascontiguousarray(p["w5"].T), p["b5"].reshape(width, 1),
        ew, np.asarray(params["ending_b"], np.float32).reshape(Cimg, 1),
    )
    return tuple(jnp.asarray(a) for a in packed_np)


# --------------------------------------------------------------------------
# Jitted forward wrapper
# --------------------------------------------------------------------------

@functools.partial(jax.jit, static_argnames=("b_tile",))
def nafnet_pallas(inp_nchw, packed, *, b_tile):
    # padder_size == 1 under the default config (no enc/dec stages) so
    # check_image_size() is a no-op.
    # TODO(synk): encoder/decoder/PixelShuffle stages are empty under the
    # default NAFNet config and are therefore not instantiated here.
    B, Cimg, H, W = inp_nchw.shape
    N = H * W
    lane = b_tile * N
    grid = B // b_tile
    cin_pad = -Cimg % 8
    cpad = Cimg + cin_pad

    # Lane-dense layout: channels on sublanes, (image, pixel) on lanes.
    x_flat = jnp.transpose(inp_nchw.reshape(B, Cimg, N), (1, 0, 2)).reshape(Cimg, B * N)
    x_flat = jnp.pad(x_flat, ((0, cin_pad), (0, 0)))

    def full_spec(a):
        nd = a.ndim
        return pl.BlockSpec(a.shape, lambda g, _nd=nd: (0,) * _nd)

    in_specs = ([pl.BlockSpec((cpad, lane), lambda g: (0, g))]
                + [full_spec(a) for a in packed])

    # Per-step VMEM use is a few hundred KiB at these sizes; for larger H*W /
    # b_tile, shrink b_tile via choose_b_tile (max_lanes) before v7x's 64 MiB
    # VMEM becomes the limit.
    out_flat = pl.pallas_call(
        functools.partial(_nafnet_kernel, img_w=W, img_n=N, b_tile=b_tile),
        out_shape=jax.ShapeDtypeStruct((Cimg, B * N), inp_nchw.dtype),
        grid=(grid,),
        in_specs=in_specs,
        out_specs=pl.BlockSpec((Cimg, lane), lambda g: (0, g)),
        compiler_params=pltpu.CompilerParams(dimension_semantics=("parallel",)),
    )(x_flat, *packed)

    return jnp.transpose(out_flat.reshape(Cimg, B, N), (1, 0, 2)).reshape(B, Cimg, H, W)


# --------------------------------------------------------------------------
# Pure-JAX reference (for correctness check)
# --------------------------------------------------------------------------

def _conv3x3_ref(x, w, b):
    y = lax.conv_general_dilated(x, w, (1, 1), "SAME",
                                 dimension_numbers=("NHWC", "HWIO", "NHWC"),
                                 precision=lax.Precision.HIGHEST)
    return y + b.reshape(1, 1, 1, -1)


def _dwconv3x3_ref(x, w, b):
    C = x.shape[-1]
    y = lax.conv_general_dilated(x, w.reshape(3, 3, 1, C), (1, 1), "SAME",
                                 dimension_numbers=("NHWC", "HWIO", "NHWC"),
                                 feature_group_count=C,
                                 precision=lax.Precision.HIGHEST)
    return y + b.reshape(1, 1, 1, -1)


def _ln2d_ref(x, w, b):
    mu = x.mean(-1, keepdims=True)
    var = ((x - mu) ** 2).mean(-1, keepdims=True)
    return (x - mu) / jnp.sqrt(var + EPS) * w.reshape(1, 1, 1, -1) + b.reshape(1, 1, 1, -1)


def _mm(x, w):
    return jnp.einsum("bhwc,cd->bhwd", x, w, precision=lax.Precision.HIGHEST)


def _nafblock_ref(x, p):
    C = x.shape[-1]
    t = _ln2d_ref(x, p["ln1w"], p["ln1b"])
    t = _mm(t, p["w1"]) + p["b1"].reshape(1, 1, 1, -1)
    t = _dwconv3x3_ref(t, p["wdw"], p["bdw"])
    t = t[..., :C] * t[..., C:]
    gap = t.mean(axis=(1, 2), keepdims=True)
    scale = _mm(gap, p["wsca"]) + p["bsca"].reshape(1, 1, 1, -1)
    t = t * scale
    t = _mm(t, p["w3"]) + p["b3"].reshape(1, 1, 1, -1)
    y = x + t * p["beta"].reshape(1, 1, 1, -1)
    t = _ln2d_ref(y, p["ln2w"], p["ln2b"])
    t = _mm(t, p["w4"]) + p["b4"].reshape(1, 1, 1, -1)
    t = t[..., :C] * t[..., C:]
    t = _mm(t, p["w5"]) + p["b5"].reshape(1, 1, 1, -1)
    return y + t * p["gamma"].reshape(1, 1, 1, -1)


def nafnet_ref(inp_nchw, params):
    x = jnp.transpose(inp_nchw, (0, 2, 3, 1))
    h = _conv3x3_ref(x, params["intro_w"], params["intro_b"])
    h = _nafblock_ref(h, params["block"])
    h = _conv3x3_ref(h, params["ending_w"], params["ending_b"])
    h = h + x
    return jnp.transpose(h, (0, 3, 1, 2))


# --------------------------------------------------------------------------
# Deterministic parameter init (shapes from NAFNet.__init__; values synthetic)
# --------------------------------------------------------------------------

def init_params(key, img_channel=9, width=16):
    c, c2 = width, 2 * width
    top_shapes = {
        "intro_w": (3, 3, img_channel, width), "intro_b": (1, width),
        "ending_w": (3, 3, width, img_channel), "ending_b": (1, img_channel),
    }
    blk_shapes = {
        "ln1w": (1, c), "ln1b": (1, c),
        "w1": (c, c2), "b1": (1, c2),
        "wdw": (3, 3, c2), "bdw": (1, c2),
        "wsca": (c, c), "bsca": (1, c),
        "w3": (c, c), "b3": (1, c),
        "beta": (1, c), "gamma": (1, c),
        "ln2w": (1, c), "ln2b": (1, c),
        "w4": (c, c2), "b4": (1, c2),
        "w5": (c, c), "b5": (1, c),
    }
    all_items = list(top_shapes.items()) + list(blk_shapes.items())
    keys = jax.random.split(key, len(all_items))
    vals = {name: (0.1 * jax.random.normal(k, shape)).astype(jnp.float32)
            for (name, shape), k in zip(all_items, keys)}
    params = {name: vals[name] for name in top_shapes}
    params["block"] = {name: vals[name] for name in blk_shapes}
    return params


# --------------------------------------------------------------------------

if __name__ == "__main__":
    key = jax.random.PRNGKey(0)
    kx, kp = jax.random.split(key)
    B, C, H, W = 4, 9, 16, 16                  # matches img_channel=9 default
    inp = jax.random.normal(kx, (B, C, H, W), jnp.float32)
    params = init_params(kp, img_channel=C, width=16)

    b_tile = choose_b_tile(B, H * W)           # -> 2 images per grid step, grid=(2,)
    packed = pack_params(params, H=H, W=W, b_tile=b_tile)   # hoisted, one-time

    out = jax.block_until_ready(nafnet_pallas(inp, packed, b_tile=b_tile))
    assert out.shape == (B, C, H, W)

    ref = nafnet_ref(inp, params)
    np.testing.assert_allclose(np.asarray(out), np.asarray(ref),
                               rtol=5e-3, atol=5e-3)
    print("KERNEL_OK")
</pallas_src>

<mosaic_0001>
module attributes {stable_mosaic.version = 11 : i64} {
  func.func @_nafnet_kernel(%arg0: i32, %arg1: memref<16x512xf32, #tpu.memory_space<vmem>>, %arg2: memref<9x512xf32, #tpu.memory_space<vmem>>, %arg3: memref<16x144xf32, #tpu.memory_space<vmem>>, %arg4: memref<16x1xf32, #tpu.memory_space<vmem>>, %arg5: memref<32x16xf32, #tpu.memory_space<vmem>>, %arg6: memref<32x1xf32, #tpu.memory_space<vmem>>, %arg7: memref<32x9xf32, #tpu.memory_space<vmem>>, %arg8: memref<32x1xf32, #tpu.memory_space<vmem>>, %arg9: memref<16x16xf32, #tpu.memory_space<vmem>>, %arg10: memref<16x1xf32, #tpu.memory_space<vmem>>, %arg11: memref<16x16xf32, #tpu.memory_space<vmem>>, %arg12: memref<16x1xf32, #tpu.memory_space<vmem>>, %arg13: memref<16x1xf32, #tpu.memory_space<vmem>>, %arg14: memref<16x1xf32, #tpu.memory_space<vmem>>, %arg15: memref<32x16xf32, #tpu.memory_space<vmem>>, %arg16: memref<32x1xf32, #tpu.memory_space<vmem>>, %arg17: memref<16x16xf32, #tpu.memory_space<vmem>>, %arg18: memref<16x1xf32, #tpu.memory_space<vmem>>, %arg19: memref<9x144xf32, #tpu.memory_space<vmem>>, %arg20: memref<9x1xf32, #tpu.memory_space<vmem>>, %arg21: memref<9x512xf32, #tpu.memory_space<vmem>>) attributes {dimension_semantics = [#tpu.dimension_semantics<parallel>], iteration_bounds = array<i64: 2>, scalar_prefetch = 0 : i64, scratch_operands = 0 : i64, tpu.core_type = #tpu.core_type<tc>, window_params = [{transform_indices = @transform_0, window_bounds = array<i64: 16, 512>}, {pipeline_mode = #tpu.pipeline_mode<synchronous>, transform_indices = @transform_1, window_bounds = array<i64: 9, 512>}, {pipeline_mode = #tpu.pipeline_mode<synchronous>, transform_indices = @transform_2, window_bounds = array<i64: 16, 144>}, {pipeline_mode = #tpu.pipeline_mode<synchronous>, transform_indices = @transform_3, window_bounds = array<i64: 16, 1>}, {pipeline_mode = #tpu.pipeline_mode<synchronous>, transform_indices = @transform_4, window_bounds = array<i64: 32, 16>}, {pipeline_mode = #tpu.pipeline_mode<synchronous>, transform_indices = @transform_5, window_bounds = array<i64: 32, 1>}, {pipeline_mode = #tpu.pipeline_mode<synchronous>, transform_indices = @transform_6, window_bounds = array<i64: 32, 9>}, {pipeline_mode = #tpu.pipeline_mode<synchronous>, transform_indices = @transform_7, window_bounds = array<i64: 32, 1>}, {pipeline_mode = #tpu.pipeline_mode<synchronous>, transform_indices = @transform_8, window_bounds = array<i64: 16, 16>}, {pipeline_mode = #tpu.pipeline_mode<synchronous>, transform_indices = @transform_9, window_bounds = array<i64: 16, 1>}, {pipeline_mode = #tpu.pipeline_mode<synchronous>, transform_indices = @transform_10, window_bounds = array<i64: 16, 16>}, {pipeline_mode = #tpu.pipeline_mode<synchronous>, transform_indices = @transform_11, window_bounds = array<i64: 16, 1>}, {pipeline_mode = #tpu.pipeline_mode<synchronous>, transform_indices = @transform_12, window_bounds = array<i64: 16, 1>}, {pipeline_mode = #tpu.pipeline_mode<synchronous>, transform_indices = @transform_13, window_bounds = array<i64: 16, 1>}, {pipeline_mode = #tpu.pipeline_mode<synchronous>, transform_indices = @transform_14, window_bounds = array<i64: 32, 16>}, {pipeline_mode = #tpu.pipeline_mode<synchronous>, transform_indices = @transform_15, window_bounds = array<i64: 32, 1>}, {pipeline_mode = #tpu.pipeline_mode<synchronous>, transform_indices = @transform_16, window_bounds = array<i64: 16, 16>}, {pipeline_mode = #tpu.pipeline_mode<synchronous>, transform_indices = @transform_17, window_bounds = array<i64: 16, 1>}, {pipeline_mode = #tpu.pipeline_mode<synchronous>, transform_indices = @transform_18, window_bounds = array<i64: 9, 144>}, {pipeline_mode = #tpu.pipeline_mode<synchronous>, transform_indices = @transform_19, window_bounds = array<i64: 9, 1>}, {transform_indices = @transform_20, window_bounds = array<i64: 9, 512>}]} {
    %c0 = arith.constant 0 : index
    %c0_0 = arith.constant 0 : index
    %0 = vector.load %arg1[%c0, %c0_0] : memref<16x512xf32, #tpu.memory_space<vmem>>, vector<16x512xf32>
    %c0_1 = arith.constant 0 : index
    %c0_2 = arith.constant 0 : index
    %1 = vector.load %arg2[%c0_1, %c0_2] : memref<9x512xf32, #tpu.memory_space<vmem>>, vector<9x512xf32>
    %c0_3 = arith.constant 0 : index
    %c0_4 = arith.constant 0 : index
    %2 = vector.load %arg3[%c0_3, %c0_4] : memref<16x144xf32, #tpu.memory_space<vmem>>, vector<16x144xf32>
    %c17_i32 = arith.constant 17 : i32
    %3 = tpu.dynamic_rotate %0 by %c17_i32 dim 1 : vector<16x512xf32>, i32 -> vector<16x512xf32>
    %4 = vector.extract_strided_slice %1 {offsets = [0, 0], sizes = [1, 512], strides = [1, 1]} : vector<9x512xf32> to vector<1x512xf32>
    %5 = vector.broadcast %4 : vector<1x512xf32> to vector<16x512xf32>
    %6 = arith.mulf %3, %5 : vector<16x512xf32>
    %c16_i32 = arith.constant 16 : i32
    %7 = tpu.dynamic_rotate %0 by %c16_i32 dim 1 : vector<16x512xf32>, i32 -> vector<16x512xf32>
    %8 = vector.extract_strided_slice %1 {offsets = [1, 0], sizes = [1, 512], strides = [1, 1]} : vector<9x512xf32> to vector<1x512xf32>
    %9 = vector.broadcast %8 : vector<1x512xf32> to vector<16x512xf32>
    %10 = arith.mulf %7, %9 : vector<16x512xf32>
    %c15_i32 = arith.constant 15 : i32
    %11 = tpu.dynamic_rotate %0 by %c15_i32 dim 1 : vector<16x512xf32>, i32 -> vector<16x512xf32>
    %12 = vector.extract_strided_slice %1 {offsets = [2, 0], sizes = [1, 512], strides = [1, 1]} : vector<9x512xf32> to vector<1x512xf32>
    %13 = vector.broadcast %12 : vector<1x512xf32> to vector<16x512xf32>
    %14 = arith.mulf %11, %13 : vector<16x512xf32>
    %c1_i32 = arith.constant 1 : i32
    %15 = tpu.dynamic_rotate %0 by %c1_i32 dim 1 : vector<16x512xf32>, i32 -> vector<16x512xf32>
    %16 = vector.extract_strided_slice %1 {offsets = [3, 0], sizes = [1, 512], strides = [1, 1]} : vector<9x512xf32> to vector<1x512xf32>
    %17 = vector.broadcast %16 : vector<1x512xf32> to vector<16x512xf32>
    %18 = arith.mulf %15, %17 : vector<16x512xf32>
    %c511_i32 = arith.constant 511 : i32
    %19 = tpu.dynamic_rotate %0 by %c511_i32 dim 1 : vector<16x512xf32>, i32 -> vector<16x512xf32>
    %20 = vector.extract_strided_slice %1 {offsets = [5, 0], sizes = [1, 512], strides = [1, 1]} : vector<9x512xf32> to vector<1x512xf32>
    %21 = vector.broadcast %20 : vector<1x512xf32> to vector<16x512xf32>
    %22 = arith.mulf %19, %21 : vector<16x512xf32>
    %c497_i32 = arith.constant 497 : i32
    %23 = tpu.dynamic_rotate %0 by %c497_i32 dim 1 : vector<16x512xf32>, i32 -> vector<16x512xf32>
    %24 = vector.extract_strided_slice %1 {offsets = [6, 0], sizes = [1, 512], strides = [1, 1]} : vector<9x512xf32> to vector<1x512xf32>
    %25 = vector.broadcast %24 : vector<1x512xf32> to vector<16x512xf32>
    %26 = arith.mulf %23, %25 : vector<16x512xf32>
    %c496_i32 = arith.constant 496 : i32
    %27 = tpu.dynamic_rotate %0 by %c496_i32 dim 1 : vector<16x512xf32>, i32 -> vector<16x512xf32>
    %28 = vector.extract_strided_slice %1 {offsets = [7, 0], sizes = [1, 512], strides = [1, 1]} : vector<9x512xf32> to vector<1x512xf32>
    %29 = vector.broadcast %28 : vector<1x512xf32> to vector<16x512xf32>
    %30 = arith.mulf %27, %29 : vector<16x512xf32>
    %c495_i32 = arith.constant 495 : i32
    %31 = tpu.dynamic_rotate %0 by %c495_i32 dim 1 : vector<16x512xf32>, i32 -> vector<16x512xf32>
    %32 = vector.extract_strided_slice %1 {offsets = [8, 0], sizes = [1, 512], strides = [1, 1]} : vector<9x512xf32> to vector<1x512xf32>
    %33 = vector.broadcast %32 : vector<1x512xf32> to vector<16x512xf32>
    %34 = arith.mulf %31, %33 : vector<16x512xf32>
    %35 = tpu.concatenate %6, %10, %14, %18, %0, %22, %26, %30, %34 in 0 : vector<16x512xf32>, vector<16x512xf32>, vector<16x512xf32>, vector<16x512xf32>, vector<16x512xf32>, vector<16x512xf32>, vector<16x512xf32>, vector<16x512xf32>, vector<16x512xf32> -> vector<144x512xf32>
    %cst = arith.constant dense<0.000000e+00> : vector<16x512xf32>
    %36 = tpu.matmul %2, %35, %cst {dimension_numbers = #tpu.dot_dimension_numbers<[1], [0], [0], [1], [0, 0, 1, 1], [], []>} : vector<16x144xf32>, vector<144x512xf32>, vector<16x512xf32> -> vector<16x512xf32>
    %c0_5 = arith.constant 0 : index
    %c0_6 = arith.constant 0 : index
    %37 = vector.load %arg4[%c0_5, %c0_6] : memref<16x1xf32, #tpu.memory_space<vmem>>, vector<16x1xf32>
    %38 = vector.broadcast %37 : vector<16x1xf32> to vector<16x512xf32>
    %39 = arith.addf %36, %38 : vector<16x512xf32>
    %cst_7 = arith.constant dense<0.000000e+00> : vector<512xf32>
    %40 = vector.multi_reduction <add>, %39, %cst_7 [0] : vector<16x512xf32> to vector<512xf32>
    %41 = vector.shape_cast %40 : vector<512xf32> to vector<1x512xf32>
    %cst_8 = arith.constant 1.600000e+01 : f32
    %42 = vector.broadcast %cst_8 : f32 to vector<1x512xf32>
    %43 = arith.divf %41, %42 : vector<1x512xf32>
    %44 = vector.broadcast %43 : vector<1x512xf32> to vector<16x512xf32>
    %45 = arith.subf %39, %44 : vector<16x512xf32>
    %46 = arith.mulf %45, %45 : vector<16x512xf32>
    %cst_9 = arith.constant dense<0.000000e+00> : vector<512xf32>
    %47 = vector.multi_reduction <add>, %46, %cst_9 [0] : vector<16x512xf32> to vector<512xf32>
    %48 = vector.shape_cast %47 : vector<512xf32> to vector<1x512xf32>
    %cst_10 = arith.constant 1.600000e+01 : f32
    %49 = vector.broadcast %cst_10 : f32 to vector<1x512xf32>
    %50 = arith.divf %48, %49 : vector<1x512xf32>
    %cst_11 = arith.constant 9.99999997E-7 : f32
    %51 = vector.broadcast %cst_11 : f32 to vector<1x512xf32>
    %52 = arith.addf %50, %51 : vector<1x512xf32>
    %53 = math.rsqrt %52 : vector<1x512xf32>
    %54 = vector.broadcast %53 : vector<1x512xf32> to vector<16x512xf32>
    %55 = arith.mulf %45, %54 : vector<16x512xf32>
    %c0_12 = arith.constant 0 : index
    %c0_13 = arith.constant 0 : index
    %56 = vector.load %arg5[%c0_12, %c0_13] : memref<32x16xf32, #tpu.memory_space<vmem>>, vector<32x16xf32>
    %cst_14 = arith.constant dense<0.000000e+00> : vector<32x512xf32>
    %57 = tpu.matmul %56, %55, %cst_14 {dimension_numbers = #tpu.dot_dimension_numbers<[1], [0], [0], [1], [0, 0, 1, 1], [], []>} : vector<32x16xf32>, vector<16x512xf32>, vector<32x512xf32> -> vector<32x512xf32>
    %c0_15 = arith.constant 0 : index
    %c0_16 = arith.constant 0 : index
    %58 = vector.load %arg6[%c0_15, %c0_16] : memref<32x1xf32, #tpu.memory_space<vmem>>, vector<32x1xf32>
    %59 = vector.broadcast %58 : vector<32x1xf32> to vector<32x512xf32>
    %60 = arith.addf %57, %59 : vector<32x512xf32>
    %c0_17 = arith.constant 0 : index
    %c0_18 = arith.constant 0 : index
    %61 = vector.load %arg7[%c0_17, %c0_18] : memref<32x9xf32, #tpu.memory_space<vmem>>, vector<32x9xf32>
    %62 = vector.extract_strided_slice %61 {offsets = [0, 4], sizes = [32, 1], strides = [1, 1]} : vector<32x9xf32> to vector<32x1xf32>
    %63 = vector.broadcast %62 : vector<32x1xf32> to vector<32x512xf32>
    %64 = arith.mulf %60, %63 : vector<32x512xf32>
    %c17_i32_19 = arith.constant 17 : i32
    %65 = tpu.dynamic_rotate %60 by %c17_i32_19 dim 1 : vector<32x512xf32>, i32 -> vector<32x512xf32>
    %66 = vector.extract_strided_slice %1 {offsets = [0, 0], sizes = [1, 512], strides = [1, 1]} : vector<9x512xf32> to vector<1x512xf32>
    %67 = vector.broadcast %66 : vector<1x512xf32> to vector<32x512xf32>
    %68 = arith.mulf %65, %67 : vector<32x512xf32>
    %69 = vector.extract_strided_slice %61 {offsets = [0, 0], sizes = [32, 1], strides = [1, 1]} : vector<32x9xf32> to vector<32x1xf32>
    %70 = vector.broadcast %69 : vector<32x1xf32> to vector<32x512xf32>
    %71 = arith.mulf %68, %70 : vector<32x512xf32>
    %72 = arith.addf %64, %71 : vector<32x512xf32>
    %c16_i32_20 = arith.constant 16 : i32
    %73 = tpu.dynamic_rotate %60 by %c16_i32_20 dim 1 : vector<32x512xf32>, i32 -> vector<32x512xf32>
    %74 = vector.extract_strided_slice %1 {offsets = [1, 0], sizes = [1, 512], strides = [1, 1]} : vector<9x512xf32> to vector<1x512xf32>
    %75 = vector.broadcast %74 : vector<1x512xf32> to vector<32x512xf32>
    %76 = arith.mulf %73, %75 : vector<32x512xf32>
    %77 = vector.extract_strided_slice %61 {offsets = [0, 1], sizes = [32, 1], strides = [1, 1]} : vector<32x9xf32> to vector<32x1xf32>
    %78 = vector.broadcast %77 : vector<32x1xf32> to vector<32x512xf32>
    %79 = arith.mulf %76, %78 : vector<32x512xf32>
    %80 = arith.addf %72, %79 : vector<32x512xf32>
    %c15_i32_21 = arith.constant 15 : i32
    %81 = tpu.dynamic_rotate %60 by %c15_i32_21 dim 1 : vector<32x512xf32>, i32 -> vector<32x512xf32>
    %82 = vector.extract_strided_slice %1 {offsets = [2, 0], sizes = [1, 512], strides = [1, 1]} : vector<9x512xf32> to vector<1x512xf32>
    %83 = vector.broadcast %82 : vector<1x512xf32> to vector<32x512xf32>
    %84 = arith.mulf %81, %83 : vector<32x512xf32>
    %85 = vector.extract_strided_slice %61 {offsets = [0, 2], sizes = [32, 1], strides = [1, 1]} : vector<32x9xf32> to vector<32x1xf32>
    %86 = vector.broadcast %85 : vector<32x1xf32> to vector<32x512xf32>
    %87 = arith.mulf %84, %86 : vector<32x512xf32>
    %88 = arith.addf %80, %87 : vector<32x512xf32>
    %c1_i32_22 = arith.constant 1 : i32
    %89 = tpu.dynamic_rotate %60 by %c1_i32_22 dim 1 : vector<32x512xf32>, i32 -> vector<32x512xf32>
    %90 = vector.extract_strided_slice %1 {offsets = [3, 0], sizes = [1, 512], strides = [1, 1]} : vector<9x512xf32> to vector<1x512xf32>
    %91 = vector.broadcast %90 : vector<1x512xf32> to vector<32x512xf32>
    %92 = arith.mulf %89, %91 : vector<32x512xf32>
    %93 = vector.extract_strided_slice %61 {offsets = [0, 3], sizes = [32, 1], strides = [1, 1]} : vector<32x9xf32> to vector<32x1xf32>
    %94 = vector.broadcast %93 : vector<32x1xf32> to vector<32x512xf32>
    %95 = arith.mulf %92, %94 : vector<32x512xf32>
    %96 = arith.addf %88, %95 : vector<32x512xf32>
    %c511_i32_23 = arith.constant 511 : i32
    %97 = tpu.dynamic_rotate %60 by %c511_i32_23 dim 1 : vector<32x512xf32>, i32 -> vector<32x512xf32>
    %98 = vector.extract_strided_slice %1 {offsets = [5, 0], sizes = [1, 512], strides = [1, 1]} : vector<9x512xf32> to vector<1x512xf32>
    %99 = vector.broadcast %98 : vector<1x512xf32> to vector<32x512xf32>
    %100 = arith.mulf %97, %99 : vector<32x512xf32>
    %101 = vector.extract_strided_slice %61 {offsets = [0, 5], sizes = [32, 1], strides = [1, 1]} : vector<32x9xf32> to vector<32x1xf32>
    %102 = vector.broadcast %101 : vector<32x1xf32> to vector<32x512xf32>
    %103 = arith.mulf %100, %102 : vector<32x512xf32>
    %104 = arith.addf %96, %103 : vector<32x512xf32>
    %c497_i32_24 = arith.constant 497 : i32
    %105 = tpu.dynamic_rotate %60 by %c497_i32_24 dim 1 : vector<32x512xf32>, i32 -> vector<32x512xf32>
    %106 = vector.extract_strided_slice %1 {offsets = [6, 0], sizes = [1, 512], strides = [1, 1]} : vector<9x512xf32> to vector<1x512xf32>
    %107 = vector.broadcast %106 : vector<1x512xf32> to vector<32x512xf32>
    %108 = arith.mulf %105, %107 : vector<32x512xf32>
    %109 = vector.extract_strided_slice %61 {offsets = [0, 6], sizes = [32, 1], strides = [1, 1]} : vector<32x9xf32> to vector<32x1xf32>
    %110 = vector.broadcast %109 : vector<32x1xf32> to vector<32x512xf32>
    %111 = arith.mulf %108, %110 : vector<32x512xf32>
    %112 = arith.addf %104, %111 : vector<32x512xf32>
    %c496_i32_25 = arith.constant 496 : i32
    %113 = tpu.dynamic_rotate %60 by %c496_i32_25 dim 1 : vector<32x512xf32>, i32 -> vector<32x512xf32>
    %114 = vector.extract_strided_slice %1 {offsets = [7, 0], sizes = [1, 512], strides = [1, 1]} : vector<9x512xf32> to vector<1x512xf32>
    %115 = vector.broadcast %114 : vector<1x512xf32> to vector<32x512xf32>
    %116 = arith.mulf %113, %115 : vector<32x512xf32>
    %117 = vector.extract_strided_slice %61 {offsets = [0, 7], sizes = [32, 1], strides = [1, 1]} : vector<32x9xf32> to vector<32x1xf32>
    %118 = vector.broadcast %117 : vector<32x1xf32> to vector<32x512xf32>
    %119 = arith.mulf %116, %118 : vector<32x512xf32>
    %120 = arith.addf %112, %119 : vector<32x512xf32>
    %c495_i32_26 = arith.constant 495 : i32
    %121 = tpu.dynamic_rotate %60 by %c495_i32_26 dim 1 : vector<32x512xf32>, i32 -> vector<32x512xf32>
    %122 = vector.extract_strided_slice %1 {offsets = [8, 0], sizes = [1, 512], strides = [1, 1]} : vector<9x512xf32> to vector<1x512xf32>
    %123 = vector.broadcast %122 : vector<1x512xf32> to vector<32x512xf32>
    %124 = arith.mulf %121, %123 : vector<32x512xf32>
    %125 = vector.extract_strided_slice %61 {offsets = [0, 8], sizes = [32, 1], strides = [1, 1]} : vector<32x9xf32> to vector<32x1xf32>
    %126 = vector.broadcast %125 : vector<32x1xf32> to vector<32x512xf32>
    %127 = arith.mulf %124, %126 : vector<32x512xf32>
    %128 = arith.addf %120, %127 : vector<32x512xf32>
    %c0_27 = arith.constant 0 : index
    %c0_28 = arith.constant 0 : index
    %129 = vector.load %arg8[%c0_27, %c0_28] : memref<32x1xf32, #tpu.memory_space<vmem>>, vector<32x1xf32>
    %130 = vector.broadcast %129 : vector<32x1xf32> to vector<32x512xf32>
    %131 = arith.addf %128, %130 : vector<32x512xf32>
    %132 = vector.extract_strided_slice %131 {offsets = [0, 0], sizes = [16, 512], strides = [1, 1]} : vector<32x512xf32> to vector<16x512xf32>
    %133 = vector.extract_strided_slice %131 {offsets = [16, 0], sizes = [16, 512], strides = [1, 1]} : vector<32x512xf32> to vector<16x512xf32>
    %134 = arith.mulf %132, %133 : vector<16x512xf32>
    %c0_29 = arith.constant 0 : index
    %c0_30 = arith.constant 0 : index
    %135 = vector.load %arg9[%c0_29, %c0_30] : memref<16x16xf32, #tpu.memory_space<vmem>>, vector<16x16xf32>
    %cst_31 = arith.constant dense<0.000000e+00> : vector<16x512xf32>
    %136 = tpu.matmul %135, %134, %cst_31 {dimension_numbers = #tpu.dot_dimension_numbers<[1], [0], [0], [1], [0, 0, 1, 1], [], []>} : vector<16x16xf32>, vector<16x512xf32>, vector<16x512xf32> -> vector<16x512xf32>
    %137 = vector.extract_strided_slice %136 {offsets = [0, 0], sizes = [16, 256], strides = [1, 1]} : vector<16x512xf32> to vector<16x256xf32>
    %cst_32 = arith.constant dense<0.000000e+00> : vector<16xf32>
    %138 = vector.multi_reduction <add>, %137, %cst_32 [1] : vector<16x256xf32> to vector<16xf32>
    %139 = vector.shape_cast %138 : vector<16xf32> to vector<16x1xf32>
    %cst_33 = arith.constant 2.560000e+02 : f32
    %140 = vector.broadcast %cst_33 : f32 to vector<16x1xf32>
    %141 = arith.divf %139, %140 : vector<16x1xf32>
    %c0_34 = arith.constant 0 : index
    %c0_35 = arith.constant 0 : index
    %142 = vector.load %arg10[%c0_34, %c0_35] : memref<16x1xf32, #tpu.memory_space<vmem>>, vector<16x1xf32>
    %143 = arith.addf %141, %142 : vector<16x1xf32>
    %144 = vector.extract_strided_slice %134 {offsets = [0, 0], sizes = [16, 256], strides = [1, 1]} : vector<16x512xf32> to vector<16x256xf32>
    %145 = vector.broadcast %143 : vector<16x1xf32> to vector<16x256xf32>
    %146 = arith.mulf %144, %145 : vector<16x256xf32>
    %147 = vector.extract_strided_slice %136 {offsets = [0, 256], sizes = [16, 256], strides = [1, 1]} : vector<16x512xf32> to vector<16x256xf32>
    %cst_36 = arith.constant dense<0.000000e+00> : vector<16xf32>
    %148 = vector.multi_reduction <add>, %147, %cst_36 [1] : vector<16x256xf32> to vector<16xf32>
    %149 = vector.shape_cast %148 : vector<16xf32> to vector<16x1xf32>
    %cst_37 = arith.constant 2.560000e+02 : f32
    %150 = vector.broadcast %cst_37 : f32 to vector<16x1xf32>
    %151 = arith.divf %149, %150 : vector<16x1xf32>
    %c0_38 = arith.constant 0 : index
    %c0_39 = arith.constant 0 : index
    %152 = vector.load %arg10[%c0_38, %c0_39] : memref<16x1xf32, #tpu.memory_space<vmem>>, vector<16x1xf32>
    %153 = arith.addf %151, %152 : vector<16x1xf32>
    %154 = vector.extract_strided_slice %134 {offsets = [0, 256], sizes = [16, 256], strides = [1, 1]} : vector<16x512xf32> to vector<16x256xf32>
    %155 = vector.broadcast %153 : vector<16x1xf32> to vector<16x256xf32>
    %156 = arith.mulf %154, %155 : vector<16x256xf32>
    %157 = tpu.concatenate %146, %156 in 1 : vector<16x256xf32>, vector<16x256xf32> -> vector<16x512xf32>
    %c0_40 = arith.constant 0 : index
    %c0_41 = arith.constant 0 : index
    %158 = vector.load %arg11[%c0_40, %c0_41] : memref<16x16xf32, #tpu.memory_space<vmem>>, vector<16x16xf32>
    %cst_42 = arith.constant dense<0.000000e+00> : vector<16x512xf32>
    %159 = tpu.matmul %158, %157, %cst_42 {dimension_numbers = #tpu.dot_dimension_numbers<[1], [0], [0], [1], [0, 0, 1, 1], [], []>} : vector<16x16xf32>, vector<16x512xf32>, vector<16x512xf32> -> vector<16x512xf32>
    %c0_43 = arith.constant 0 : index
    %c0_44 = arith.constant 0 : index
    %160 = vector.load %arg12[%c0_43, %c0_44] : memref<16x1xf32, #tpu.memory_space<vmem>>, vector<16x1xf32>
    %161 = vector.broadcast %160 : vector<16x1xf32> to vector<16x512xf32>
    %162 = arith.addf %159, %161 : vector<16x512xf32>
    %c0_45 = arith.constant 0 : index
    %c0_46 = arith.constant 0 : index
    %163 = vector.load %arg13[%c0_45, %c0_46] : memref<16x1xf32, #tpu.memory_space<vmem>>, vector<16x1xf32>
    %164 = vector.broadcast %163 : vector<16x1xf32> to vector<16x512xf32>
    %165 = arith.mulf %162, %164 : vector<16x512xf32>
    %166 = arith.addf %39, %165 : vector<16x512xf32>
    %cst_47 = arith.constant dense<0.000000e+00> : vector<512xf32>
    %167 = vector.multi_reduction <add>, %166, %cst_47 [0] : vector<16x512xf32> to vector<512xf32>
    %168 = vector.shape_cast %167 : vector<512xf32> to vector<1x512xf32>
    %cst_48 = arith.constant 1.600000e+01 : f32
    %169 = vector.broadcast %cst_48 : f32 to vector<1x512xf32>
    %170 = arith.divf %168, %169 : vector<1x512xf32>
    %171 = vector.broadcast %170 : vector<1x512xf32> to vector<16x512xf32>
    %172 = arith.subf %166, %171 : vector<16x512xf32>
    %173 = arith.mulf %172, %172 : vector<16x512xf32>
    %cst_49 = arith.constant dense<0.000000e+00> : vector<512xf32>
    %174 = vector.multi_reduction <add>, %173, %cst_49 [0] : vector<16x512xf32> to vector<512xf32>
    %175 = vector.shape_cast %174 : vector<512xf32> to vector<1x512xf32>
    %cst_50 = arith.constant 1.600000e+01 : f32
    %176 = vector.broadcast %cst_50 : f32 to vector<1x512xf32>
    %177 = arith.divf %175, %176 : vector<1x512xf32>
    %cst_51 = arith.constant 9.99999997E-7 : f32
    %178 = vector.broadcast %cst_51 : f32 to vector<1x512xf32>
    %179 = arith.addf %177, %178 : vector<1x512xf32>
    %180 = math.rsqrt %179 : vector<1x512xf32>
    %181 = vector.broadcast %180 : vector<1x512xf32> to vector<16x512xf32>
    %182 = arith.mulf %172, %181 : vector<16x512xf32>
    %c0_52 = arith.constant 0 : index
    %c0_53 = arith.constant 0 : index
    %183 = vector.load %arg15[%c0_52, %c0_53] : memref<32x16xf32, #tpu.memory_space<vmem>>, vector<32x16xf32>
    %cst_54 = arith.constant dense<0.000000e+00> : vector<32x512xf32>
    %184 = tpu.matmul %183, %182, %cst_54 {dimension_numbers = #tpu.dot_dimension_numbers<[1], [0], [0], [1], [0, 0, 1, 1], [], []>} : vector<32x16xf32>, vector<16x512xf32>, vector<32x512xf32> -> vector<32x512xf32>
    %c0_55 = arith.constant 0 : index
    %c0_56 = arith.constant 0 : index
    %185 = vector.load %arg16[%c0_55, %c0_56] : memref<32x1xf32, #tpu.memory_space<vmem>>, vector<32x1xf32>
    %186 = vector.broadcast %185 : vector<32x1xf32> to vector<32x512xf32>
    %187 = arith.addf %184, %186 : vector<32x512xf32>
    %188 = vector.extract_strided_slice %187 {offsets = [0, 0], sizes = [16, 512], strides = [1, 1]} : vector<32x512xf32> to vector<16x512xf32>
    %189 = vector.extract_strided_slice %187 {offsets = [16, 0], sizes = [16, 512], strides = [1, 1]} : vector<32x512xf32> to vector<16x512xf32>
    %190 = arith.mulf %188, %189 : vector<16x512xf32>
    %c0_57 = arith.constant 0 : index
    %c0_58 = arith.constant 0 : index
    %191 = vector.load %arg17[%c0_57, %c0_58] : memref<16x16xf32, #tpu.memory_space<vmem>>, vector<16x16xf32>
    %cst_59 = arith.constant dense<0.000000e+00> : vector<16x512xf32>
    %192 = tpu.matmul %191, %190, %cst_59 {dimension_numbers = #tpu.dot_dimension_numbers<[1], [0], [0], [1], [0, 0, 1, 1], [], []>} : vector<16x16xf32>, vector<16x512xf32>, vector<16x512xf32> -> vector<16x512xf32>
    %c0_60 = arith.constant 0 : index
    %c0_61 = arith.constant 0 : index
    %193 = vector.load %arg18[%c0_60, %c0_61] : memref<16x1xf32, #tpu.memory_space<vmem>>, vector<16x1xf32>
    %194 = vector.broadcast %193 : vector<16x1xf32> to vector<16x512xf32>
    %195 = arith.addf %192, %194 : vector<16x512xf32>
    %c0_62 = arith.constant 0 : index
    %c0_63 = arith.constant 0 : index
    %196 = vector.load %arg14[%c0_62, %c0_63] : memref<16x1xf32, #tpu.memory_space<vmem>>, vector<16x1xf32>
    %197 = vector.broadcast %196 : vector<16x1xf32> to vector<16x512xf32>
    %198 = arith.mulf %195, %197 : vector<16x512xf32>
    %199 = arith.addf %166, %198 : vector<16x512xf32>
    %c0_64 = arith.constant 0 : index
    %c0_65 = arith.constant 0 : index
    %200 = vector.load %arg19[%c0_64, %c0_65] : memref<9x144xf32, #tpu.memory_space<vmem>>, vector<9x144xf32>
    %c17_i32_66 = arith.constant 17 : i32
    %201 = tpu.dynamic_rotate %199 by %c17_i32_66 dim 1 : vector<16x512xf32>, i32 -> vector<16x512xf32>
    %202 = vector.extract_strided_slice %1 {offsets = [0, 0], sizes = [1, 512], strides = [1, 1]} : vector<9x512xf32> to vector<1x512xf32>
    %203 = vector.broadcast %202 : vector<1x512xf32> to vector<16x512xf32>
    %204 = arith.mulf %201, %203 : vector<16x512xf32>
    %c16_i32_67 = arith.constant 16 : i32
    %205 = tpu.dynamic_rotate %199 by %c16_i32_67 dim 1 : vector<16x512xf32>, i32 -> vector<16x512xf32>
    %206 = vector.extract_strided_slice %1 {offsets = [1, 0], sizes = [1, 512], strides = [1, 1]} : vector<9x512xf32> to vector<1x512xf32>
    %207 = vector.broadcast %206 : vector<1x512xf32> to vector<16x512xf32>
    %208 = arith.mulf %205, %207 : vector<16x512xf32>
    %c15_i32_68 = arith.constant 15 : i32
    %209 = tpu.dynamic_rotate %199 by %c15_i32_68 dim 1 : vector<16x512xf32>, i32 -> vector<16x512xf32>
    %210 = vector.extract_strided_slice %1 {offsets = [2, 0], sizes = [1, 512], strides = [1, 1]} : vector<9x512xf32> to vector<1x512xf32>
    %211 = vector.broadcast %210 : vector<1x512xf32> to vector<16x512xf32>
    %212 = arith.mulf %209, %211 : vector<16x512xf32>
    %c1_i32_69 = arith.constant 1 : i32
    %213 = tpu.dynamic_rotate %199 by %c1_i32_69 dim 1 : vector<16x512xf32>, i32 -> vector<16x512xf32>
    %214 = vector.extract_strided_slice %1 {offsets = [3, 0], sizes = [1, 512], strides = [1, 1]} : vector<9x512xf32> to vector<1x512xf32>
    %215 = vector.broadcast %214 : vector<1x512xf32> to vector<16x512xf32>
    %216 = arith.mulf %213, %215 : vector<16x512xf32>
    %c511_i32_70 = arith.constant 511 : i32
    %217 = tpu.dynamic_rotate %199 by %c511_i32_70 dim 1 : vector<16x512xf32>, i32 -> vector<16x512xf32>
    %218 = vector.extract_strided_slice %1 {offsets = [5, 0], sizes = [1, 512], strides = [1, 1]} : vector<9x512xf32> to vector<1x512xf32>
    %219 = vector.broadcast %218 : vector<1x512xf32> to vector<16x512xf32>
    %220 = arith.mulf %217, %219 : vector<16x512xf32>
    %c497_i32_71 = arith.constant 497 : i32
    %221 = tpu.dynamic_rotate %199 by %c497_i32_71 dim 1 : vector<16x512xf32>, i32 -> vector<16x512xf32>
    %222 = vector.extract_strided_slice %1 {offsets = [6, 0], sizes = [1, 512], strides = [1, 1]} : vector<9x512xf32> to vector<1x512xf32>
    %223 = vector.broadcast %222 : vector<1x512xf32> to vector<16x512xf32>
    %224 = arith.mulf %221, %223 : vector<16x512xf32>
    %c496_i32_72 = arith.constant 496 : i32
    %225 = tpu.dynamic_rotate %199 by %c496_i32_72 dim 1 : vector<16x512xf32>, i32 -> vector<16x512xf32>
    %226 = vector.extract_strided_slice %1 {offsets = [7, 0], sizes = [1, 512], strides = [1, 1]} : vector<9x512xf32> to vector<1x512xf32>
    %227 = vector.broadcast %226 : vector<1x512xf32> to vector<16x512xf32>
    %228 = arith.mulf %225, %227 : vector<16x512xf32>
    %c495_i32_73 = arith.constant 495 : i32
    %229 = tpu.dynamic_rotate %199 by %c495_i32_73 dim 1 : vector<16x512xf32>, i32 -> vector<16x512xf32>
    %230 = vector.extract_strided_slice %1 {offsets = [8, 0], sizes = [1, 512], strides = [1, 1]} : vector<9x512xf32> to vector<1x512xf32>
    %231 = vector.broadcast %230 : vector<1x512xf32> to vector<16x512xf32>
    %232 = arith.mulf %229, %231 : vector<16x512xf32>
    %233 = tpu.concatenate %204, %208, %212, %216, %199, %220, %224, %228, %232 in 0 : vector<16x512xf32>, vector<16x512xf32>, vector<16x512xf32>, vector<16x512xf32>, vector<16x512xf32>, vector<16x512xf32>, vector<16x512xf32>, vector<16x512xf32>, vector<16x512xf32> -> vector<144x512xf32>
    %cst_74 = arith.constant dense<0.000000e+00> : vector<9x512xf32>
    %234 = tpu.matmul %200, %233, %cst_74 {dimension_numbers = #tpu.dot_dimension_numbers<[1], [0], [0], [1], [0, 0, 1, 1], [], []>} : vector<9x144xf32>, vector<144x512xf32>, vector<9x512xf32> -> vector<9x512xf32>
    %c0_75 = arith.constant 0 : index
    %c0_76 = arith.constant 0 : index
    %235 = vector.load %arg20[%c0_75, %c0_76] : memref<9x1xf32, #tpu.memory_space<vmem>>, vector<9x1xf32>
    %236 = vector.broadcast %235 : vector<9x1xf32> to vector<9x512xf32>
    %237 = arith.addf %234, %236 : vector<9x512xf32>
    %238 = vector.extract_strided_slice %0 {offsets = [0, 0], sizes = [9, 512], strides = [1, 1]} : vector<16x512xf32> to vector<9x512xf32>
    %239 = arith.addf %237, %238 : vector<9x512xf32>
    %c0_77 = arith.constant 0 : index
    %c0_78 = arith.constant 0 : index
    %240 = vector.load %arg21[%c0_77, %c0_78] : memref<9x512xf32, #tpu.memory_space<vmem>>, vector<9x512xf32>
    tpu.vector_store %arg21[%c0_77, %c0_78], %239 {strides = array<i32>} : memref<9x512xf32, #tpu.memory_space<vmem>>, vector<9x512xf32>,
    return
  }
  func.func @transform_0(%arg0: i32) -> (i32, i32) {
    %c0_i32 = arith.constant 0 : i32
    %c0_i32_0 = arith.constant 0 : i32
    return %c0_i32, %arg0 : i32, i32
  }
  func.func @transform_1(%arg0: i32) -> (i32, i32) {
    %c0_i32 = arith.constant 0 : i32
    %c0_i32_0 = arith.constant 0 : i32
    %c0_i32_1 = arith.constant 0 : i32
    return %c0_i32, %c0_i32_0 : i32, i32
  }
  func.func @transform_2(%arg0: i32) -> (i32, i32) {
    %c0_i32 = arith.constant 0 : i32
    %c0_i32_0 = arith.constant 0 : i32
    %c0_i32_1 = arith.constant 0 : i32
    return %c0_i32, %c0_i32_0 : i32, i32
  }
  func.func @transform_3(%arg0: i32) -> (i32, i32) {
    %c0_i32 = arith.constant 0 : i32
    %c0_i32_0 = arith.constant 0 : i32
    %c0_i32_1 = arith.constant 0 : i32
    return %c0_i32, %c0_i32_0 : i32, i32
  }
  func.func @transform_4(%arg0: i32) -> (i32, i32) {
    %c0_i32 = arith.constant 0 : i32
    %c0_i32_0 = arith.constant 0 : i32
    %c0_i32_1 = arith.constant 0 : i32
    return %c0_i32, %c0_i32_0 : i32, i32
  }
  func.func @transform_5(%arg0: i32) -> (i32, i32) {
    %c0_i32 = arith.constant 0 : i32
    %c0_i32_0 = arith.constant 0 : i32
    %c0_i32_1 = arith.constant 0 : i32
    return %c0_i32, %c0_i32_0 : i32, i32
  }
  func.func @transform_6(%arg0: i32) -> (i32, i32) {
    %c0_i32 = arith.constant 0 : i32
    %c0_i32_0 = arith.constant 0 : i32
    %c0_i32_1 = arith.constant 0 : i32
    return %c0_i32, %c0_i32_0 : i32, i32
  }
  func.func @transform_7(%arg0: i32) -> (i32, i32) {
    %c0_i32 = arith.constant 0 : i32
    %c0_i32_0 = arith.constant 0 : i32
    %c0_i32_1 = arith.constant 0 : i32
    return %c0_i32, %c0_i32_0 : i32, i32
  }
  func.func @transform_8(%arg0: i32) -> (i32, i32) {
    %c0_i32 = arith.constant 0 : i32
    %c0_i32_0 = arith.constant 0 : i32
    %c0_i32_1 = arith.constant 0 : i32
    return %c0_i32, %c0_i32_0 : i32, i32
  }
  func.func @transform_9(%arg0: i32) -> (i32, i32) {
    %c0_i32 = arith.constant 0 : i32
    %c0_i32_0 = arith.constant 0 : i32
    %c0_i32_1 = arith.constant 0 : i32
    return %c0_i32, %c0_i32_0 : i32, i32
  }
  func.func @transform_10(%arg0: i32) -> (i32, i32) {
    %c0_i32 = arith.constant 0 : i32
    %c0_i32_0 = arith.constant 0 : i32
    %c0_i32_1 = arith.constant 0 : i32
    return %c0_i32, %c0_i32_0 : i32, i32
  }
  func.func @transform_11(%arg0: i32) -> (i32, i32) {
    %c0_i32 = arith.constant 0 : i32
    %c0_i32_0 = arith.constant 0 : i32
    %c0_i32_1 = arith.constant 0 : i32
    return %c0_i32, %c0_i32_0 : i32, i32
  }
  func.func @transform_12(%arg0: i32) -> (i32, i32) {
    %c0_i32 = arith.constant 0 : i32
    %c0_i32_0 = arith.constant 0 : i32
    %c0_i32_1 = arith.constant 0 : i32
    return %c0_i32, %c0_i32_0 : i32, i32
  }
  func.func @transform_13(%arg0: i32) -> (i32, i32) {
    %c0_i32 = arith.constant 0 : i32
    %c0_i32_0 = arith.constant 0 : i32
    %c0_i32_1 = arith.constant 0 : i32
    return %c0_i32, %c0_i32_0 : i32, i32
  }
  func.func @transform_14(%arg0: i32) -> (i32, i32) {
    %c0_i32 = arith.constant 0 : i32
    %c0_i32_0 = arith.constant 0 : i32
    %c0_i32_1 = arith.constant 0 : i32
    return %c0_i32, %c0_i32_0 : i32, i32
  }
  func.func @transform_15(%arg0: i32) -> (i32, i32) {
    %c0_i32 = arith.constant 0 : i32
    %c0_i32_0 = arith.constant 0 : i32
    %c0_i32_1 = arith.constant 0 : i32
    return %c0_i32, %c0_i32_0 : i32, i32
  }
  func.func @transform_16(%arg0: i32) -> (i32, i32) {
    %c0_i32 = arith.constant 0 : i32
    %c0_i32_0 = arith.constant 0 : i32
    %c0_i32_1 = arith.constant 0 : i32
    return %c0_i32, %c0_i32_0 : i32, i32
  }
  func.func @transform_17(%arg0: i32) -> (i32, i32) {
    %c0_i32 = arith.constant 0 : i32
    %c0_i32_0 = arith.constant 0 : i32
    %c0_i32_1 = arith.constant 0 : i32
    return %c0_i32, %c0_i32_0 : i32, i32
  }
  func.func @transform_18(%arg0: i32) -> (i32, i32) {
    %c0_i32 = arith.constant 0 : i32
    %c0_i32_0 = arith.constant 0 : i32
    %c0_i32_1 = arith.constant 0 : i32
    return %c0_i32, %c0_i32_0 : i32, i32
  }
  func.func @transform_19(%arg0: i32) -> (i32, i32) {
    %c0_i32 = arith.constant 0 : i32
    %c0_i32_0 = arith.constant 0 : i32
    %c0_i32_1 = arith.constant 0 : i32
    return %c0_i32, %c0_i32_0 : i32, i32
  }
  func.func @transform_20(%arg0: i32) -> (i32, i32) {
    %c0_i32 = arith.constant 0 : i32
    %c0_i32_0 = arith.constant 0 : i32
    return %c0_i32, %arg0 : i32, i32
  }
}

</mosaic_0001>

<bundles_post_ra>
// kernel: nafnet_pallas.1
= control target key start
LH: loop header
LB: loop body
LE: loop exit
PB: predicated region body
PF: predicated region fallthrough
CT: control target
= control target key end

     0   :  { %s7554_s0 = inlined_call_operand.vmem [shape: f32[16,1024], index: 0, kind: input, shape index: {}]   ;;  %s7555_s1 = inlined_call_operand.vmem [shape: f32[9,512], index: 1, kind: input, shape index: {}]   ;;  %s7556_s2 = inlined_call_operand.vmem [shape: f32[16,144], index: 2, kind: input, shape index: {}]   ;;  %s7557_s3 = inlined_call_operand.vmem [shape: f32[16,1], index: 3, kind: input, shape index: {}]   ;;  %s7558_s4 = inlined_call_operand.vmem [shape: f32[32,16], index: 4, kind: input, shape index: {}]   ;;  %s7559_s5 = inlined_call_operand.vmem [shape: f32[32,1], index: 5, kind: input, shape index: {}]   ;;  %s7560_s6 = inlined_call_operand.vmem [shape: f32[32,9], index: 6, kind: input, shape index: {}]   ;;  %s7561_s7 = inlined_call_operand.vmem [shape: f32[32,1], index: 7, kind: input, shape index: {}]   ;;  %s7562_s8 = inlined_call_operand.vmem [shape: f32[16,16], index: 8, kind: input, shape index: {}]   ;;  %s7563_s9 = inlined_call_operand.vmem [shape: f32[16,1], index: 9, kind: input, shape index: {}]   ;;  %s7564_s10 = inlined_call_operand.vmem [shape: f32[16,16], index: 10, kind: input, shape index: {}]   ;;  %s7565_s11 = inlined_call_operand.vmem [shape: f32[16,1], index: 11, kind: input, shape index: {}]   ;;  %s7566_s12 = inlined_call_operand.vmem [shape: f32[16,1], index: 12, kind: input, shape index: {}]   ;;  %s7567_s13 = inlined_call_operand.vmem [shape: f32[16,1], index: 13, kind: input, shape index: {}]   ;;  %s7568_s14 = inlined_call_operand.vmem [shape: f32[32,16], index: 14, kind: input, shape index: {}]   ;;  %s7569_s15 = inlined_call_operand.vmem [shape: f32[32,1], index: 15, kind: input, shape index: {}]   ;;  %s7570_s16 = inlined_call_operand.vmem [shape: f32[16,16], index: 16, kind: input, shape index: {}]   ;;  %s7571_s17 = inlined_call_operand.vmem [shape: f32[16,1], index: 17, kind: input, shape index: {}]   ;;  %s7572_s18 = inlined_call_operand.vmem [shape: f32[9,144], index: 18, kind: input, shape index: {}]   ;;  %s7573_s19 = inlined_call_operand.vmem [shape: f32[9,1], index: 19, kind: input, shape index: {}]   ;;  %s7574_s20 = inlined_call_operand.vmem [shape: f32[9,1024], index: 20, kind: output, shape index: {}]  }
   0x1   :  { %7838 = sst [smem:[#allocation170_spill]] %s7554_s0 }
   0x2   :  { %7839 = sst [smem:[#allocation171_spill]] %s7555_s1 }
   0x3   :  { %7840 = sst [smem:[#allocation172_spill]] %s7556_s2 }
   0x4   :  { %7841 = sst [smem:[#allocation173_spill]] %s7557_s3 }
   0x5   :  { %7842 = sst [smem:[#allocation174_spill]] %s7558_s4 }
   0x6   :  { %7843 = sst [smem:[#allocation175_spill]] %s7559_s5 }
   0x7   :  { %7844 = sst [smem:[#allocation176_spill]] %s7560_s6 }
   0x8   :  { %7845 = sst [smem:[#allocation177_spill]] %s7561_s7 }
   0x9   :  { %7846 = sst [smem:[#allocation178_spill]] %s7562_s8 }
   0xa   :  { %7847 = sst [smem:[#allocation179_spill]] %s7563_s9 }
   0xb   :  { %7848 = sst [smem:[#allocation180_spill]] %s7574_s20 }
   0xc   :  { %s4119_s1 = smov 0   ;;  %s4121_s22 = smov 0  }
   0xd   :  { %s4123_s23 = smov 0  }
   0xe LB: > { %7849 = sst [smem:[#allocation4_spill]] %s3989_s22  ;;  %s7579_s24 = sadd.s32 4294967295, %s3993_s23   ;;  %s3993_s23 = sphi %s4123_s23, %s8337_s23   ;;  %s3989_s22 = sphi %s4121_s22, %s8339_s22   ;;  %s3985_s1 = sphi %s4119_s1, %s8338_s1  }
   0xf   : > { %7850 = sst [smem:[#allocation5_spill]] %s3993_s23  ;;  %s4136_s2 = sadd.s32 1, %s3993_s23  }
  0x10   : > { %7851 = sst [smem:[#allocation6_spill]] %s4136_s2  ;;  %s34_s25 = ssub.s32 %s3993_s23, %s4136_s2 }
  0x11   : > { %s37_s3 = sadd.s32 1, %s3989_s22  ;;  %p35_p0 = scmp.eq.s32.totalorder %s34_s25, 0 }
  0x12   : > { %p44_p1 = scmp.ne.s32.totalorder %s3989_s22, %s3985_s1  ;;  %p45_p2 = scmp.eq.s32.totalorder %s3993_s23, 0 }
  0x13   : > { %p473_p3 = scmp.eq.s32.totalorder %s7579_s24, 1  ;;  %p3771_p6 = scmp.ge.s32.totalorder %s3993_s23, 2 }
  0x14   : > { %s4147_s26 = scalar_select %p35_p0, %s3989_s22, %s37_s3  }
  0x15   : > { %p46_p4 = por %p45_p2, %p44_p1  ;;  %p4149_p5 = por %p473_p3, %p44_p1 }
  0x16   : > { %7852 = sst [smem:[#allocation7_spill]] %s4147_s26  ;;  %552 = sbr.rel (%p3771_p6) target bundleno = 45 (0x2d), region = 92 }
  0x17   : > { %s7853_s27 = scalar_select %p4149_p5, 1, 0 }
  0x19   : > { %7854 = sst [smem:[#allocation8_spill]] %s7853_s27 }
  0x1b   : > { %555 = sbr.rel (!%p46_p4) target bundleno = 45 (0x2d), region = 96  ;;  %s557_s28 = sand.u32 (%p46_p4), 1, %s3989_s22  }
  0x1c   : > { %s3855_s4 = sshll.u32 (%p46_p4), %s3993_s23, 5  ;;  %s3772_s29 = sshll.u32 (%p46_p4), %s557_s28, 6 }
  0x1d   : > { %s7855_s21 = sld [smem:[#allocation170_spill]] (%p46_p4)  ;;  %s559_s3 = scalar_lea.vmem (%p46_p4), [#allocation2], %s3772_s29 }
  0x23   : > { %s562_s25 = scalar_lea.vmem %s7855_s21, %s3855_s4 }
  0x24   : > { %v575_v0 = vld [vmem:[%s562_s25] sm:$0xff]  ;;  %v577_v1 = vld [vmem:[%s562_s25 + $0x8] sm:$0xff]  ;;  %v579_v2 = vld [vmem:[%s562_s25 + $0x10] sm:$0xff] }
  0x25   : > { %576 = vst [vmem:[%s559_s3] sm:$0xff] %v575_v0  ;;  %v581_v3 = vld [vmem:[%s562_s25 + $0x18] sm:$0xff]  ;;  %v583_v4 = vld [vmem:[%s562_s25 + $0x40] sm:$0xff]  ;;  %v585_v5 = vld [vmem:[%s562_s25 + $0x48] sm:$0xff] }
  0x26   : > { %578 = vst [vmem:[%s559_s3 + $0x8] sm:$0xff] %v577_v1  ;;  %v587_v6 = vld [vmem:[%s562_s25 + $0x50] sm:$0xff]  ;;  %v589_v7 = vld [vmem:[%s562_s25 + $0x58] sm:$0xff] }
  0x27   : > { %580 = vst [vmem:[%s559_s3 + $0x10] sm:$0xff] %v579_v2 }
  0x28   : > { %582 = vst [vmem:[%s559_s3 + $0x18] sm:$0xff] %v581_v3 }
  0x29   : > { %584 = vst [vmem:[%s559_s3 + $0x20] sm:$0xff] %v583_v4 }
  0x2a   : > { %586 = vst [vmem:[%s559_s3 + $0x28] sm:$0xff] %v585_v5 }
  0x2b   : > { %588 = vst [vmem:[%s559_s3 + $0x30] sm:$0xff] %v587_v6 }
  0x2c   : > { %590 = vst [vmem:[%s559_s3 + $0x38] sm:$0xff] %v589_v7 }
  0x2d PF: > { %p3775_p7 = scmp.ge.s32.totalorder %s3993_s23, 1  ;;  %p595_p8 = scmp.lt.s32.totalorder %s3993_s23, 3 }
  0x2f   : > { %p596_p9 = pnand %p3775_p7, %p595_p8 }
  0x31   : > { %599 = sbr.rel (%p596_p9) target bundleno = 2458 (0x99a), region = 119 }
  0x36   : > { %s602_s28 = sand.u32 1, %s3985_s1   ;;  %s7582_s1 = smov 111   ;;  %v696_v19 = vlaneseq  ;;  %vm990_vm1 = vcmask 130048  }
  0x37   : > { %s4162_s4 = sshll.u32 %s602_s28, 6  ;;  %s7586_s30 = smov 112  }
  0x38   : > { %s4165_s29 = scalar_lea.vmem [#allocation2], %s4162_s4  ;;  %s7590_s0 = smov 113   ;;  %v4293_v23 = vand.u32 127, %v696_v19 }
  0x39   : > { %v4168_v8 = vld [vmem:[%s4165_s29 + $0x28] sm:$0xff]  ;;  %v4171_v9 = vld [vmem:[%s4165_s29 + $0x20] sm:$0xff]  ;;  %v4183_v11 = vld [vmem:[%s4165_s29 + $0x30] sm:$0xff]  ;;  %s7588_s21 = smov 127   ;;  %s7584_s25 = smov 1  }
  0x3a   : > { %v4174_v10 = vld [vmem:[%s4165_s29 + $0x8] sm:$0xff]  ;;  %947 = vrot.lane.b32.xlu0 %v4168_v8, %s7582_s1  ;;  %906 = vrot.lane.b32.xlu2 %v4171_v9, %s7586_s30  ;;  %v4186_v12 = vld [vmem:[%s4165_s29 + $0x38] sm:$0xff]  ;;  %s7580_s3 = smov 15   ;;  %s7592_s28 = smov 16   ;;  %vm957_vm0 = vcmp.lt.s32.totalorder %v4293_v23, 111  ;;  %vm920_vm2 = vcmp.lt.s32.totalorder %v4293_v23, 112 }
  0x3b   : > { %945 = vrot.lane.b32.xlu1 %v4174_v10, %s7582_s1  ;;  %v4189_v13 = vld [vmem:[%s4165_s29 + $0x10] sm:$0xff]  ;;  %v4198_v14 = vld [vmem:[%s4165_s29] sm:$0xff]  ;;  %v4201_v15 = vld [vmem:[%s4165_s29 + $0x18] sm:$0xff]  ;;  %s7594_s24 = smov 17   ;;  %vm883_vm3 = vcmp.lt.s32.totalorder %v4293_v23, 113  ;;  %vm846_vm4 = vcmp.lt.s32.totalorder %v4293_v23, 127 }
  0x3c   : > { %vm809_vm5 = vcmp.lt.s32.totalorder %v4293_v23, 1  ;;  %vm772_vm6 = vcmp.lt.s32.totalorder %v4293_v23, 15  ;;  %vm735_vm7 = vcmp.lt.s32.totalorder %v4293_v23, 16  ;;  %vm698_vm8 = vcmp.lt.s32.totalorder %v4293_v23, 17  ;;  %s7879_s22 = sld [smem:[#allocation173_spill]]  ;;  %s7925_s23 = smov 113  }
  0x3d   : > { %s7882_s5 = sld [smem:[#allocation175_spill]] }
  0x3e   : > { %s7889_s6 = sld [smem:[#allocation176_spill]] }
  0x3f   : > { %s7905_s20 = sld [smem:[#allocation174_spill]] }
  0x40   : > { %s7985_s7 = sld [smem:[#allocation177_spill]] }
  0x41   : > { %s8213_s8 = sld [smem:[#allocation178_spill]] }
  0x42   : > { %951 = vrot.lane.b32.xlu0 %v4183_v11, %s7582_s1  ;;  %918 = vrot.lane.b32.xlu2 %v4186_v12, %s7586_s30  ;;  %s7880_s2 = smov %s7879_s22  ;;  %s8290_s9 = sld [smem:[#allocation179_spill]] }
  0x43   : > { %949 = vrot.lane.b32.xlu1 %v4189_v13, %s7582_s1 }
  0x4a   : > { %869 = vrot.lane.b32.xlu2 %v4171_v9, %s7590_s0  ;;  %904 = vrot.lane.b32.xlu0 %v4198_v14, %s7586_s30 }
  0x4b   : > { %916 = vrot.lane.b32.xlu1 %v4201_v15, %s7586_s30 }
  0x52   : > { %879 = vrot.lane.b32.xlu2 %v4201_v15, %s7590_s0  ;;  %881 = vrot.lane.b32.xlu0 %v4186_v12, %s7590_s0 }
  0x53   : > { %867 = vrot.lane.b32.xlu1 %v4198_v14, %s7590_s0 }
  0x5a   : > { %844 = vrot.lane.b32.xlu2 %v4186_v12, %s7588_s21  ;;  %910 = vrot.lane.b32.xlu0 %v4168_v8, %s7586_s30 }
  0x5b   : > { %832 = vrot.lane.b32.xlu1 %v4171_v9, %s7588_s21 }
  0x62   : > { %842 = vrot.lane.b32.xlu2 %v4201_v15, %s7588_s21  ;;  %908 = vrot.lane.b32.xlu0 %v4174_v10, %s7586_s30 }
  0x63   : > { %830 = vrot.lane.b32.xlu1 %v4198_v14, %s7588_s21 }
  0x6a   : > { %955 = vrot.lane.b32.xlu2 %v4186_v12, %s7582_s1  ;;  %873 = vrot.lane.b32.xlu0 %v4168_v8, %s7590_s0 }
  0x6b   : > { %871 = vrot.lane.b32.xlu1 %v4174_v10, %s7590_s0 }
  0x72   : > { %803 = vrot.lane.b32.xlu2 %v4183_v11, %s7584_s25  ;;  %836 = vrot.lane.b32.xlu0 %v4168_v8, %s7588_s21 }
  0x73   : > { %953 = vrot.lane.b32.xlu1 %v4201_v15, %s7582_s1  ;;  %s7864_s1 = smov 16  }
  0x7a   : > { %801 = vrot.lane.b32.xlu2 %v4189_v13, %s7584_s25  ;;  %807 = vrot.lane.b32.xlu0 %v4186_v12, %s7584_s25 }
  0x7b   : > { %834 = vrot.lane.b32.xlu1 %v4174_v10, %s7588_s21 }
  0x82   : > { %770 = vrot.lane.b32.xlu2 %v4186_v12, %s7580_s3  ;;  %805 = vrot.lane.b32.xlu0 %v4201_v15, %s7584_s25 }
  0x83   : > { %766 = vrot.lane.b32.xlu1 %v4183_v11, %s7580_s3 }
  0x8a   : > { %795 = vrot.lane.b32.xlu2 %v4171_v9, %s7584_s25  ;;  %764 = vrot.lane.b32.xlu0 %v4189_v13, %s7580_s3 }
  0x8b   : > { %768 = vrot.lane.b32.xlu1 %v4201_v15, %s7580_s3 }
  0x92   : > { %793 = vrot.lane.b32.xlu2 %v4198_v14, %s7584_s25  ;;  %729 = vrot.lane.b32.xlu0 %v4183_v11, %s7592_s28  ;;  %s7856_s25 = sld [smem:[#allocation171_spill]] }
  0x93   : > { %733 = vrot.lane.b32.xlu1 %v4186_v12, %s7592_s28 }
  0x94   : > { %v4263_v16 = vpop.permute.xlu2 %906 }
  0x98   : > { %v3931_v24 = vld [vmem:[%s7856_s25 + $0x28] ss:$0 sm:$0xff]  ;;  %v3932_v35 = vld [vmem:[%s7856_s25 + $0x30] ss:$0 sm:$0xff]  ;;  %v4349_v41 = vld [vmem:[%s7856_s25] sm:$0xff] }
  0x99   : > { %v4359_v43 = vperm.slane %v4349_v41, 7  ;;  %v4395_v54 = vperm.slane %v4349_v41, 6  ;;  %v4421_v62 = vld [vmem:[%s7856_s25 + $0x18] sm:$0xff]  ;;  %v4424_v63 = vperm.slane %v4349_v41, 5 }
  0x9a   : > { %758 = vrot.lane.b32.xlu2 %v4171_v9, %s7580_s3  ;;  %727 = vrot.lane.b32.xlu0 %v4189_v13, %s7592_s28  ;;  %v4429_v0 = vperm.slane %v4421_v62, 7 }
  0x9b   : > { %731 = vrot.lane.b32.xlu1 %v4201_v15, %s7592_s28  ;;  %7859 = vst [vmem:[#allocation9_spill] sm:$0xff] %v4359_v43 }
  0x9c   : > { %v4271_v17 = vpop.permute.xlu2 %918  ;;  %7863 = vst [vmem:[#allocation10_spill] sm:$0xff] %v4395_v54 }
  0x9d   : > { %7865 = vst [vmem:[#allocation11_spill] sm:$0xff] %v4424_v63  ;;  %v928_v3 = vsel %vm920_vm2, %v4271_v17, %v4263_v16 }
  0x9e   : > { %7866 = vst [vmem:[#allocation12_spill] sm:$0xff] %v4429_v0 }
  0xa2   : > { %756 = vrot.lane.b32.xlu2 %v4198_v14, %s7580_s3  ;;  %690 = vrot.lane.b32.xlu0 %v4183_v11, %s7594_s24  ;;  %s7918_s3 = smov 127  }
  0xa3   : > { %694 = vrot.lane.b32.xlu1 %v4186_v12, %s7594_s24 }
  0xa4   : > { %v4279_v18 = vpop.permute.xlu2 %869 }
  0xaa   : > { %721 = vrot.lane.b32.xlu2 %v4171_v9, %s7592_s28  ;;  %688 = vrot.lane.b32.xlu0 %v4189_v13, %s7594_s24 }
  0xab   : > { %692 = vrot.lane.b32.xlu1 %v4201_v15, %s7594_s24 }
  0xac   : > { %v4287_v20 = vpop.permute.xlu0 %947  ;;  %v4289_v21 = vpop.permute.xlu2 %879 }
  0xad   : > { %v4291_v22 = vpop.permute.xlu1 %945 }
  0xb2   : > { %912 = vrot.lane.b32.xlu2 %v4189_v13, %s7586_s30  ;;  %914 = vrot.lane.b32.xlu0 %v4183_v11, %s7586_s30  ;;  %s7861_s30 = smov 15  }
  0xb3   : > { %719 = vrot.lane.b32.xlu1 %v4198_v14, %s7592_s28  ;;  %s7858_s28 = smov 1  }
  0xb4   : > { %v952_v25 = vpop.permute.xlu0 %951  ;;  %v4305_v26 = vpop.permute.xlu2 %844 }
  0xb5   : > { %v4307_v27 = vpop.permute.xlu1 %949  ;;  %v961_v28 = vsel %vm957_vm0, %v4287_v20, %v952_v25 }
  0xb6   : > { %v975_v29 = vmul.f32 %v3931_v24, %v961_v28  ;;  %v960_v30 = vsel %vm957_vm0, %v4291_v22, %v4307_v27 }
  0xb7   : > { %v971_v31 = vmul.f32 %v3931_v24, %v960_v30 }
  0xb8   : > { %1080 = vmatpush.msra.mxu3 %v975_v29 }
  0xba   : > { %1081 = vmatpush.msra.mxu3 %v971_v31  ;;  %680 = vrot.lane.b32.xlu2 %v4198_v14, %s7594_s24 }
  0xbb   : > { %877 = vrot.lane.b32.xlu1 %v4183_v11, %s7590_s0  ;;  %682 = vrot.lane.b32.xlu0 %v4171_v9, %s7594_s24  ;;  %s7860_s24 = smov 111  }
  0xbc   : > { %v4322_v32 = vpop.permute.xlu2 %842  ;;  %v4324_v33 = vpop.permute.xlu0 %904 }
  0xbd   : > { %v4326_v34 = vpop.permute.xlu1 %916 }
  0xbe   : > { %v927_v19 = vsel %vm920_vm2, %v4326_v34, %v4324_v33 }
  0xc2   : > { %838 = vrot.lane.b32.xlu2 %v4189_v13, %s7588_s21 }
  0xc3   : > { %840 = vrot.lane.b32.xlu1 %v4183_v11, %s7588_s21  ;;  %875 = vrot.lane.b32.xlu0 %v4189_v13, %s7590_s0  ;;  %s7857_s0 = sld [smem:[#allocation172_spill]]  ;;  %s7862_s21 = smov 17  }
  0xc4   : > { %v4337_v36 = vpop.permute.xlu2 %955  ;;  %v4339_v37 = vpop.permute.xlu0 %881 }
  0xc5   : > { %v4341_v38 = vpop.permute.xlu1 %867  ;;  %v959_v39 = vsel %vm957_vm0, %v952_v25, %v4337_v36  ;;  %v4456_v25 = vperm.slane %v4421_v62, 6  ;;  %v891_v28 = vsel %vm883_vm3, %v4339_v37, %v4279_v18 }
  0xc6   : > { %v976_v40 = vmul.f32 %v3932_v35, %v959_v39  ;;  %v890_v29 = vsel %vm883_vm3, %v4289_v21, %v4341_v38 }
  0xc7   : > { %7867 = vst [vmem:[#allocation13_spill] sm:$0xff] %v4456_v25 }
  0xc8   : > { %1126 = vmatpush.msrb.mxu3 %v976_v40  ;;  %v899_v40 = vmul.f32 %v4456_v25, %v890_v29 }
  0xc9   : > { %v4354_v42 = vld [vmem:[%s7857_s0 + $0x8] sm:$0xff] }
  0xca   : > { %799 = vrot.lane.b32.xlu2 %v4168_v8, %s7858_s28  ;;  %3780 = vmatmul.msk.f32.vlgmr.msra.gmra.mxu3 %vm990_vm1, %v4354_v42 }
  0xcb   : > { %941 = vrot.lane.b32.xlu1 %v4198_v14, %s7860_s24  ;;  %943 = vrot.lane.b32.xlu0 %v4171_v9, %s7860_s24 }
  0xcc   : > { %v4368_v44 = vpop.permute.xlu2 %803  ;;  %v4370_v45 = vpop.permute.xlu0 %910 }
  0xcd   : > { %v833_v46 = vpop.permute.xlu1 %832  ;;  %v926_v47 = vsel %vm920_vm2, %v4263_v16, %v4370_v45  ;;  %v940_v16 = vmul.f32 %v4429_v0, %v928_v3 }
  0xce   : > { %v937_v48 = vmul.f32 %v4359_v43, %v926_v47 }
  0xd0   : > { %997 = vmatpush.msra.mxu0 %v937_v48 }
  0xd2   : > { %760 = vrot.lane.b32.xlu2 %v4174_v10, %s7861_s30 }
  0xd3   : > { %762 = vrot.lane.b32.xlu1 %v4168_v8, %s7861_s30  ;;  %797 = vrot.lane.b32.xlu0 %v4174_v10, %s7858_s28 }
  0xd4   : > { %v4383_v49 = vpop.permute.xlu2 %801  ;;  %v4385_v50 = vpop.permute.xlu0 %908 }
  0xd5   : > { %v831_v51 = vpop.permute.xlu1 %830  ;;  %v925_v52 = vsel %vm920_vm2, %v4324_v33, %v4385_v50  ;;  %v903_v33 = vmul.f32 %v4456_v25, %v891_v28  ;;  %v4528_v28 = vperm.slane %v4421_v62, 2  ;;  %v4638_v25 = vld [vmem:[%s7857_s0 + $0x10] sm:$0xff] }
  0xd6   : > { %v933_v53 = vmul.f32 %v4359_v43, %v925_v52  ;;  %v853_v47 = vsel %vm846_vm4, %v4322_v32, %v831_v51  ;;  %v4489_v52 = vperm.slane %v4349_v41, 3 }
  0xd7   : > { %7872 = vst [vmem:[#allocation18_spill] sm:$0xff] %v4528_v28 }
  0xd8   : > { %998 = vmatpush.msra.mxu0 %v933_v53  ;;  %7869 = vst [vmem:[#allocation15_spill] sm:$0xff] %v4489_v52 }
  0xda   : > { %686 = vrot.lane.b32.xlu2 %v4168_v8, %s7862_s21 }
  0xdb   : > { %723 = vrot.lane.b32.xlu1 %v4174_v10, %s7864_s1  ;;  %725 = vrot.lane.b32.xlu0 %v4168_v8, %s7864_s1 }
  0xdc   : > { %v4402_v55 = vpop.permute.xlu2 %770  ;;  %v4404_v56 = vpop.permute.xlu0 %873 }
  0xdd   : > { %v4406_v57 = vpop.permute.xlu1 %871  ;;  %v889_v58 = vsel %vm883_vm3, %v4279_v18, %v4404_v56  ;;  %v854_v18 = vsel %vm846_vm4, %v4305_v26, %v833_v46 }
  0xde   : > { %v900_v59 = vmul.f32 %v4395_v54, %v889_v58  ;;  %v888_v60 = vsel %vm883_vm3, %v4341_v38, %v4406_v57 }
  0xdf   : > { %v896_v61 = vmul.f32 %v4395_v54, %v888_v60 }
  0xe0   : > { %999 = vmatpush.msra.mxu0 %v900_v59 }
  0xe2   : > { %1000 = vmatpush.msra.mxu0 %v896_v61  ;;  %v4503_v61 = vperm.slane %v4421_v62, 3 }
  0xe3   : > { %684 = vrot.lane.b32.xlu0 %v4174_v10, %s7862_s21 }
  0xe4   : > { %v4432_v1 = vpop.permute.xlu2 %795  ;;  %v4434_v2 = vpop.permute.xlu0 %836  ;;  %7871 = vst [vmem:[#allocation17_spill] sm:$0xff] %v4503_v61 }
  0xe5   : > { %v4440_v4 = vpop.permute.xlu1 %953  ;;  %v852_v5 = vsel %vm846_vm4, %v833_v46, %v4434_v2 }
  0xe6   : > { %v863_v6 = vmul.f32 %v4424_v63, %v852_v5  ;;  %v958_v7 = vsel %vm957_vm0, %v4307_v27, %v4440_v4  ;;  %v936_v27 = vmul.f32 %v4429_v0, %v927_v19 }
  0xe7   : > { %v972_v24 = vmul.f32 %v3932_v35, %v958_v7  ;;  %v4471_v35 = vperm.slane %v4421_v62, 5 }
  0xe8   : > { %1001 = vmatpush.msra.mxu0 %v863_v6 }
  0xe9   : > { %1127 = vmatpush.msrb.mxu3 %v972_v24  ;;  %7868 = vst [vmem:[#allocation14_spill] sm:$0xff] %v4471_v35  ;;  %v866_v46 = vmul.f32 %v4471_v35, %v854_v18  ;;  %v862_v53 = vmul.f32 %v4471_v35, %v853_v47  ;;  %v7611_v35 = vmov 0  }
  0xea   : > { %3904 = vset.pattern.permute.xlu1 %v7611_v35  ;;  %3905 = vset.pattern.permute.xlu2 %v7611_v35  ;;  %v1327_v35 = vld [vmem:[%s7882_s5 + $0x18] sm:$0xff] }
  0xeb   : > { %1135 = vmatpush.msra.mxu3 %v940_v16 }
  0xec   : > { %v4467_v30 = vpop.permute.xlu2 %793  ;;  %v808_v31 = vpop.permute.xlu0 %807 }
  0xed   : > { %1136 = vmatpush.msra.mxu3 %v936_v27  ;;  %v4476_v39 = vpop.permute.xlu1 %834  ;;  %v817_v58 = vsel %vm809_vm5, %v808_v31, %v4432_v1  ;;  %v811_v3 = vsel %vm809_vm5, %v4368_v44, %v808_v31  ;;  %v4537_v27 = vld [vmem:[%s7857_s0 + $0x18] sm:$0xff] }
  0xee   : > { %v851_v38 = vsel %vm846_vm4, %v831_v51, %v4476_v39  ;;  %v4497_v51 = vperm.slane %v4349_v41, 2  ;;  %v829_v16 = vmul.f32 %v4503_v61, %v811_v3  ;;  %3781 = vmatmul.msk.f32.gmra.mxu3 %vm990_vm1, %v4537_v27 }
  0xef   : > { %1137 = vmatpush.msra.mxu3 %v903_v33  ;;  %v859_v48 = vmul.f32 %v4424_v63, %v851_v38 }
  0xf0   : > { %7870 = vst [vmem:[#allocation16_spill] sm:$0xff] %v4497_v51 }
  0xf1   : > { %1138 = vmatpush.msra.mxu3 %v899_v40  ;;  %1002 = vmatpush.msra.mxu0 %v859_v48  ;;  %v4557_v48 = vperm.slane %v4421_v62, 1 }
  0xf3   : > { %1139 = vmatpush.msra.mxu3 %v866_v46  ;;  %1003 = vmatpush.msra.mxu0 %v4171_v9  ;;  %v826_v9 = vmul.f32 %v4489_v52, %v817_v58  ;;  %7873 = vst [vmem:[#allocation19_spill] sm:$0xff] %v4557_v48  ;;  %v4560_v46 = vperm.slane %v4349_v41, 1 }
  0xf4   : > { %v4499_v59 = vpop.permute.xlu2 %758  ;;  %v806_v60 = vpop.permute.xlu0 %805 }
  0xf5   : > { %1140 = vmatpush.msra.mxu3 %v862_v53  ;;  %v4508_v5 = vpop.permute.xlu1 %766  ;;  %1004 = vmatpush.msra.mxu0 %v4198_v14  ;;  %v816_v6 = vsel %vm809_vm5, %v806_v60, %v4467_v30  ;;  %v780_v7 = vsel %vm772_vm6, %v4402_v55, %v4499_v59  ;;  %v810_v24 = vsel %vm809_vm5, %v4383_v49, %v806_v60 }
  0xf6   : > { %v822_v19 = vmul.f32 %v4489_v52, %v816_v6  ;;  %v789_v14 = vmul.f32 %v4497_v51, %v780_v7  ;;  %v825_v29 = vmul.f32 %v4503_v61, %v810_v24  ;;  %7874 = vst [vmem:[#allocation20_spill] sm:$0xff] %v4560_v46  ;;  %3782 = vmatmul.msk.f32.vlgmr.msrb.gmra.mxu3 %vm990_vm1, %v4354_v42 }
  0xf7   : > { %1141 = vmatpush.msra.mxu3 %v4186_v12  ;;  %1005 = vmatpush.msra.mxu0 %v826_v9  ;;  %v774_v12 = vsel %vm772_vm6, %v4508_v5, %v4402_v55 }
  0xf8   : > { %v792_v55 = vmul.f32 %v4528_v28, %v774_v12  ;;  %v4586_v12 = vperm.slane %v4421_v62, 0 }
  0xf9   : > { %1142 = vmatpush.msra.mxu3 %v4201_v15  ;;  %1006 = vmatpush.msra.mxu0 %v822_v19 }
  0xfa   : > { %7875 = vst [vmem:[#allocation21_spill] sm:$0xff] %v4586_v12 }
  0xfb   : > { %1143 = vmatpush.msra.mxu3 %v829_v16  ;;  %1007 = vmatpush.msra.mxu0 %v789_v14 }
  0xfc   : > { %v4542_v15 = vpop.permute.xlu2 %756  ;;  %v4544_v31 = vpop.permute.xlu0 %764 }
  0xfd   : > { %1144 = vmatpush.msra.mxu3 %v825_v29  ;;  %v769_v33 = vpop.permute.xlu1 %768 }
  0xfe   : > { %v773_v18 = vsel %vm772_vm6, %v4544_v31, %v769_v33  ;;  %v779_v40 = vsel %vm772_vm6, %v769_v33, %v4542_v15  ;;  %3783 = vmatmul.msk.f32.gmra.mxu3 %vm990_vm1, %v4537_v27 }
  0xff   : > { %1145 = vmatpush.msra.mxu3 %v792_v55  ;;  %v788_v38 = vmul.f32 %v4528_v28, %v773_v18  ;;  %v785_v47 = vmul.f32 %v4497_v51, %v779_v40 }
 0x101   : > { %1146 = vmatpush.msra.mxu3 %v788_v38  ;;  %1008 = vmatpush.msra.mxu0 %v785_v47 }
 0x104   : > { %v4564_v53 = vpop.permute.xlu0 %729  ;;  %v4566_v58 = vpop.permute.xlu2 %721 }
 0x105   : > { %v734_v60 = vpop.permute.xlu1 %733 }
 0x106   : > { %v737_v3 = vsel %vm735_vm7, %v4564_v53, %v734_v60  ;;  %v743_v9 = vsel %vm735_vm7, %v734_v60, %v4566_v58 }
 0x107   : > { %v755_v6 = vmul.f32 %v4557_v48, %v737_v3  ;;  %v752_v7 = vmul.f32 %v4560_v46, %v743_v9  ;;  %v4605_v3 = vld [vmem:[%s7857_s0] sm:$0xff]  ;;  %v4610_v9 = vld [vmem:[%s7856_s25 + $0x8] sm:$0xff] }
 0x109   : > { %1147 = vmatpush.msra.mxu3 %v755_v6  ;;  %1009 = vmatpush.msra.mxu0 %v752_v7 }
 0x10c   : > { %v4578_v19 = vpop.permute.xlu0 %727  ;;  %v4594_v40 = vpop.permute.xlu2 %912 }
 0x10d   : > { %v732_v24 = vpop.permute.xlu1 %731 }
 0x10e   : > { %v736_v14 = vsel %vm735_vm7, %v4578_v19, %v732_v24 }
 0x10f   : > { %v751_v16 = vmul.f32 %v4557_v48, %v736_v14  ;;  %v4618_v14 = vperm.slane %v4610_v9, 7 }
 0x111   : > { %1148 = vmatpush.msra.mxu3 %v751_v16  ;;  %7876 = vst [vmem:[#allocation22_spill] sm:$0xff] %v4618_v14 }
 0x114   : > { %v4588_v29 = vpop.permute.xlu0 %690  ;;  %v4613_v6 = vpop.permute.xlu2 %680 }
 0x115   : > { %v695_v55 = vpop.permute.xlu1 %694 }
 0x116   : > { %v700_v33 = vsel %vm698_vm8, %v4588_v29, %v695_v55 }
 0x117   : > { %v718_v18 = vmul.f32 %v4586_v12, %v700_v33 }
 0x119   : > { %1149 = vmatpush.msra.mxu3 %v718_v18  ;;  %v923_v18 = vsel %vm920_vm2, %v4385_v50, %v4594_v40  ;;  %v4643_v50 = vperm.slane %v4610_v9, 6 }
 0x11b   : > { %7877 = vst [vmem:[#allocation23_spill] sm:$0xff] %v4643_v50 }
 0x11c   : > { %v4596_v38 = vpop.permute.xlu0 %688  ;;  %v4652_v61 = vpop.permute.xlu2 %838 }
 0x11d   : > { %v693_v47 = vpop.permute.xlu1 %692 }
 0x11e   : > { %v699_v62 = vsel %vm698_vm8, %v4596_v38, %v693_v47 }
 0x11f   : > { %v714_v60 = vmul.f32 %v4586_v12, %v699_v62 }
 0x121   : > { %1150 = vmatpush.msra.mxu3 %v714_v60 }
 0x122   : > { %1151 = vmatmul.f32.vlgmr.msra.gmra.mxu3 %v4605_v3 }
 0x124   : > { %v4615_v7 = vpop.permute.xlu0 %914 }
 0x125   : > { %v4620_v16 = vpop.permute.xlu1 %719  ;;  %v924_v33 = vsel %vm920_vm2, %v4370_v45, %v4615_v7  ;;  %v934_v45 = vmul.f32 %v4618_v14, %v923_v18 }
 0x126   : > { %v742_v62 = vsel %vm735_vm7, %v732_v24, %v4620_v16  ;;  %v938_v60 = vmul.f32 %v4618_v14, %v924_v33 }
 0x127   : > { %v748_v0 = vmul.f32 %v4560_v46, %v742_v62  ;;  %v4650_v62 = vperm.slane %v4349_v41, 0 }
 0x128   : > { %1043 = vmatpush.msra.mxu2 %v938_v60  ;;  %v705_v60 = vsel %vm698_vm8, %v693_v47, %v4613_v6 }
 0x129   : > { %1010 = vmatpush.msra.mxu0 %v748_v0  ;;  %7878 = vst [vmem:[#allocation24_spill] sm:$0xff] %v4650_v62  ;;  %v711_v14 = vmul.f32 %v4650_v62, %v705_v60  ;;  %v4684_v60 = vperm.slane %v4610_v9, 5 }
 0x12a   : > { %1044 = vmatpush.msra.mxu2 %v934_v45  ;;  %1154 = vmatmul.f32.gmra.mxu3 %v4638_v25 }
 0x12b   : > { %7881 = vst [vmem:[#allocation25_spill] sm:$0xff] %v4684_v60 }
 0x12d   : > { %v4645_v24 = vpop.permute.xlu1 %877  ;;  %v4647_v33 = vpop.permute.xlu0 %682 }
 0x12e   : > { %v706_v18 = vsel %vm698_vm8, %v695_v55, %v4647_v33  ;;  %v887_v0 = vsel %vm883_vm3, %v4404_v56, %v4645_v24  ;;  %v978_v56 = vld [vmem:[%s7879_s22] sm:$0xff]  ;;  %s7921_s22 = smov 112  }
 0x12f   : > { %v715_v45 = vmul.f32 %v4650_v62, %v706_v18  ;;  %v901_v41 = vmul.f32 %v4643_v50, %v887_v0  ;;  %982 = vperm.xlu1 %3904, %v978_v56  }
 0x131   : > { %1011 = vmatpush.msra.mxu0 %v715_v45  ;;  %1045 = vmatpush.msra.mxu2 %v901_v41  ;;  %v4686_v45 = vpop.permute.xlu2 %799  ;;  %v849_v41 = vsel %vm846_vm4, %v4476_v39, %v4652_v61 }
 0x132   : > { %v860_v56 = vmul.f32 %v4684_v60, %v849_v41 }
 0x133   : > { %1012 = vmatpush.msra.mxu0 %v711_v14 }
 0x134   : > { %1013 = vmatmul.f32.vlgmr.msra.gmra.mxu0 %v4605_v3 }
 0x135   : > { %v4672_v55 = vpop.permute.xlu1 %840  ;;  %v876_v47 = vpop.permute.xlu0 %875 }
 0x136   : > { %v886_v18 = vsel %vm883_vm3, %v4406_v57, %v876_v47  ;;  %v850_v14 = vsel %vm846_vm4, %v4434_v2, %v4672_v55  ;;  %v3933_v2 = vld [vmem:[%s7856_s25 + $0x20] ss:$0 sm:$0xff] }
 0x137   : > { %v897_v0 = vmul.f32 %v4643_v50, %v886_v18  ;;  %v864_v57 = vmul.f32 %v4684_v60, %v850_v14  ;;  %v3934_v18 = vld [vmem:[%s7856_s25 + $0x38] ss:$0 sm:$0xff]  ;;  %1345 = vperm.xlu1 %3904, %v1327_v35   ;;  %v815_v35 = vsel %vm809_vm5, %v4432_v1, %v4686_v45 }
 0x139   : > { %1046 = vmatpush.msra.mxu2 %v897_v0  ;;  %v4705_v0 = vperm.slane %v4610_v9, 3  ;;  %v4735_v1 = vpop.permute.xlu2 %760 }
 0x13b   : > { %1047 = vmatpush.msra.mxu2 %v864_v57  ;;  %7883 = vst [vmem:[#allocation26_spill] sm:$0xff] %v4705_v0 }
 0x13c   : > { %1016 = vmatmul.f32.gmra.mxu0 %v4638_v25 }
 0x13d   : > { %v942_v39 = vpop.permute.xlu1 %941  ;;  %1048 = vmatpush.msra.mxu2 %v860_v56  ;;  %v944_v14 = vpop.permute.xlu0 %943 }
 0x13e   : > { %v963_v41 = vsel %vm957_vm0, %v944_v14, %v4287_v20  ;;  %v965_v57 = vsel %vm957_vm0, %v4337_v36, %v944_v14  ;;  %v962_v50 = vsel %vm957_vm0, %v942_v39, %v4291_v22  ;;  %v964_v20 = vsel %vm957_vm0, %v4440_v4, %v942_v39  ;;  %v4727_v36 = vld [vmem:[%s7856_s25 + $0x10] sm:$0xff] }
 0x13f   : > { %1049 = vmatpush.msra.mxu2 %v4168_v8  ;;  %v974_v56 = vmul.f32 %v3933_v2, %v963_v41  ;;  %v977_v60 = vmul.f32 %v3934_v18, %v965_v57  ;;  %v970_v22 = vmul.f32 %v3933_v2, %v962_v50  ;;  %v827_v14 = vmul.f32 %v4705_v0, %v815_v35 }
 0x140   : > { %v922_v8 = vsel %vm920_vm2, %v4615_v7, %v4271_v17  ;;  %v973_v4 = vmul.f32 %v3934_v18, %v964_v20  ;;  %v4738_v39 = vperm.slane %v4727_v36, 7  ;;  %v4746_v17 = vperm.slane %v4727_v36, 6  ;;  %v1326_v7 = vld [vmem:[%s7882_s5 + $0x10] sm:$0xff] }
 0x141   : > { %1034 = vmatpush.msra.mxu1 %v974_v56  ;;  %1050 = vmatpush.msra.mxu2 %v4174_v10  ;;  %v921_v10 = vsel %vm920_vm2, %v4594_v40, %v4326_v34  ;;  %v885_v34 = vsel %vm883_vm3, %v4645_v24, %v4339_v37  ;;  %v979_v40 = vld [vmem:[%s7880_s2 + $0x8] sm:$0xff]  ;;  %v884_v24 = vsel %vm883_vm3, %v876_v47, %v4289_v21  ;;  %v4776_v35 = vperm.slane %v4610_v9, 2 }
 0x142   : > { %1172 = vmatpush.msrb.mxu0 %v977_v60  ;;  %3857 = vmatpush.msrb.mxu3 %v977_v60  ;;  %7884 = vst [vmem:[#allocation27_spill] sm:$0xff] %v4738_v39  ;;  %v939_v50 = vmul.f32 %v4738_v39, %v922_v8  ;;  %v935_v18 = vmul.f32 %v4738_v39, %v921_v10  ;;  %v4790_v56 = vperm.slane %v4727_v36, 5 }
 0x143   : > { %1035 = vmatpush.msra.mxu1 %v970_v22  ;;  %1051 = vmatpush.msra.mxu2 %v827_v14  ;;  %7885 = vst [vmem:[#allocation28_spill] sm:$0xff] %v4746_v17  ;;  %v848_v21 = vsel %vm846_vm4, %v4672_v55, %v4305_v26  ;;  %v898_v47 = vmul.f32 %v4746_v17, %v884_v24  ;;  %v4798_v22 = vperm.slane %v4610_v9, 1  ;;  %v687_v14 = vpop.permute.xlu2 %686  ;;  %v4804_v55 = vld [vmem:[%s7889_s6 + $0x8] sm:$0xff] }
 0x144   : > { %1173 = vmatpush.msrb.mxu0 %v973_v4  ;;  %3858 = vmatpush.msrb.mxu3 %v973_v4  ;;  %7886 = vst [vmem:[#allocation29_spill] sm:$0xff] %v4776_v35  ;;  %v865_v26 = vmul.f32 %v4790_v56, %v848_v21  ;;  %v702_v24 = vsel %vm698_vm8, %v687_v14, %v4588_v29 }
 0x145   : > { %3778 = vmatmul.msk.f32.vlgmr.msra.gmra.mxu1 %vm990_vm1, %v4354_v42  ;;  %3785 = vmatmul.msk.f32.vlgmr.msrb.gmra.mxu3 %vm990_vm1, %v4537_v27  ;;  %v763_v60 = vpop.permute.xlu1 %762  ;;  %v798_v2 = vpop.permute.xlu0 %797  ;;  %7887 = vst [vmem:[#allocation30_spill] sm:$0xff] %v4790_v56 }
 0x146   : > { %1089 = vmatpush.msrb.mxu1 %v939_v50  ;;  %v814_v41 = vsel %vm809_vm5, %v4467_v30, %v798_v2  ;;  %3784 = vmatmul.msk.f32.vlgmr.msrb.gmra.mxu0 %vm990_vm1, %v4354_v42  ;;  %v778_v57 = vsel %vm772_vm6, %v4499_v59, %v763_v60  ;;  %v902_v30 = vmul.f32 %v4746_v17, %v885_v34  ;;  %v4824_v34 = vperm.slane %v4727_v36, 3 }
 0x147   : > { %v823_v37 = vmul.f32 %v4705_v0, %v814_v41  ;;  %1340 = vperm.xlu1 %3904, %v1326_v7   ;;  %v777_v42 = vsel %vm772_vm6, %v4542_v15, %v4735_v1  ;;  %987 = vperm.xlu2 %3905, %v979_v40   ;;  %v790_v59 = vmul.f32 %v4776_v35, %v778_v57  ;;  %v4820_v7 = vperm.slane %v4610_v9, 0 }
 0x148   : > { %1090 = vmatpush.msrb.mxu1 %v935_v18  ;;  %v786_v20 = vmul.f32 %v4776_v35, %v777_v42  ;;  %v847_v15 = vsel %vm846_vm4, %v4652_v61, %v4322_v32  ;;  %7888 = vst [vmem:[#allocation31_spill] sm:$0xff] %v4798_v22  ;;  %v1324_v32 = vld [vmem:[%s7882_s5] sm:$0xff]  ;;  %v704_v40 = vsel %vm698_vm8, %v4647_v33, %v687_v14 }
 0x149   : > { %1052 = vmatpush.msra.mxu2 %v823_v37  ;;  %v861_v61 = vmul.f32 %v4790_v56, %v847_v15  ;;  %7890 = vst [vmem:[#allocation32_spill] sm:$0xff] %v4820_v7  ;;  %v813_v9 = vsel %vm809_vm5, %v4686_v45, %v4368_v44  ;;  %v812_v18 = vsel %vm809_vm5, %v798_v2, %v4383_v49  ;;  %v4846_v44 = vperm.slane %v4727_v36, 2  ;;  %v4895_v15 = vld [vmem:[%s7889_s6 + $0x18] sm:$0xff] }
 0x14a   : > { %1091 = vmatpush.msrb.mxu1 %v902_v30  ;;  %7891 = vst [vmem:[#allocation33_spill] sm:$0xff] %v4824_v34  ;;  %v828_v33 = vmul.f32 %v4824_v34, %v813_v9  ;;  %v776_v57 = vsel %vm772_vm6, %v763_v60, %v4508_v5  ;;  %v775_v45 = vsel %vm772_vm6, %v4735_v1, %v4544_v31  ;;  %v4858_v60 = vperm.slane %v4727_v36, 1 }
 0x14b   : > { %1053 = vmatpush.msra.mxu2 %v790_v59  ;;  %7892 = vst [vmem:[#allocation34_spill] sm:$0xff] %v4846_v44  ;;  %v791_v5 = vmul.f32 %v4846_v44, %v776_v57  ;;  %v4870_v37 = vperm.slane %v4727_v36, 0 }
 0x14c   : > { %1092 = vmatpush.msrb.mxu1 %v898_v47  ;;  %7893 = vst [vmem:[#allocation35_spill] sm:$0xff] %v4858_v60 }
 0x14d   : > { %3779 = vmatmul.msk.f32.gmra.mxu1 %vm990_vm1, %v4537_v27  ;;  %v724_v8 = vpop.permute.xlu1 %723  ;;  %1054 = vmatpush.msra.mxu2 %v786_v20  ;;  %v726_v4 = vpop.permute.xlu0 %725  ;;  %7894 = vst [vmem:[#allocation36_spill] sm:$0xff] %v4870_v37  ;;  %v4004_v20 = vmov 4  }
 0x14e   : > { %1093 = vmatpush.msrb.mxu1 %v865_v26  ;;  %v741_v10 = vsel %vm735_vm7, %v4566_v58, %v726_v4  ;;  %v740_v50 = vsel %vm735_vm7, %v4620_v16, %v724_v8  ;;  %v716_v16 = vmul.f32 %v4820_v7, %v704_v40  ;;  %v739_v2 = vsel %vm735_vm7, %v726_v4, %v4564_v53  ;;  %v4884_v29 = vpop.f32.mrf.mxu3  ;;  %v4902_v26 = vld [vmem:[%s7889_s6] sm:$0xff] }
 0x14f   : > { %v753_v27 = vmul.f32 %v4798_v22, %v741_v10  ;;  %1585 = vperm.xlu1 %3904, %v4804_v55   ;;  %1330 = vperm.xlu2 %3905, %v1324_v32   ;;  %v749_v58 = vmul.f32 %v4798_v22, %v740_v50  ;;  %v738_v31 = vsel %vm735_vm7, %v724_v8, %v4578_v19  ;;  %v7895_v4 = vmov 0  }
 0x150   : > { %1094 = vmatpush.msrb.mxu1 %v861_v61  ;;  %v754_v1 = vmul.f32 %v4858_v60, %v739_v2  ;;  %v750_v53 = vmul.f32 %v4858_v60, %v738_v31  ;;  %v717_v19 = vmul.f32 %v4870_v37, %v702_v24  ;;  %3907 = vset.pattern.permute.xlu0 %v4004_v20 }
 0x151   : > { %1055 = vmatpush.msra.mxu2 %v753_v27  ;;  %1497 = vperm.xlu0 %3907, %v4895_v15  }
 0x152   : > { %1095 = vmatpush.msrb.mxu1 %v4183_v11  ;;  %v824_v11 = vmul.f32 %v4824_v34, %v812_v18 }
 0x153   : > { %1056 = vmatpush.msra.mxu2 %v749_v58 }
 0x154   : > { %1096 = vmatpush.msrb.mxu1 %v4189_v13 }
 0x155   : > { %1057 = vmatpush.msra.mxu2 %v716_v16  ;;  %v685_v41 = vpop.permute.xlu0 %684 }
 0x156   : > { %1097 = vmatpush.msrb.mxu1 %v828_v33  ;;  %v703_v49 = vsel %vm698_vm8, %v4613_v6, %v685_v41  ;;  %v787_v6 = vmul.f32 %v4846_v44, %v775_v45  ;;  %v701_v30 = vsel %vm698_vm8, %v685_v41, %v4596_v38  ;;  %v4006_v33 = vmov 1  }
 0x157   : > { %v712_v13 = vmul.f32 %v4820_v7, %v703_v49  ;;  %v713_v36 = vmul.f32 %v4870_v37, %v701_v30  ;;  %3909 = vset.pattern.permute.xlu1 %v4004_v20  ;;  %3906 = vset.pattern.permute.xlu2 %v4004_v20 }
 0x158   : > { %1098 = vmatpush.msrb.mxu1 %v824_v11  ;;  %1487 = vperm.xlu2 %3906, %v4804_v55  }
 0x159   : > { %1058 = vmatpush.msra.mxu2 %v712_v13  ;;  %1482 = vperm.xlu0 %3907, %v4902_v26  }
 0x15a   : > { %1099 = vmatpush.msrb.mxu1 %v791_v5  ;;  %1059 = vmatmul.f32.vlgmr.msra.gmra.mxu2 %v4605_v3 }
 0x15c   : > { %1100 = vmatpush.msrb.mxu1 %v787_v6 }
 0x15e   : > { %1101 = vmatpush.msrb.mxu1 %v754_v1 }
 0x160   : > { %1102 = vmatpush.msrb.mxu1 %v750_v53  ;;  %3908 = vset.pattern.permute.xlu2 %v7895_v4  ;;  %v7620_v53 = vmov 3  }
 0x161   : > { %1593 = vperm.xlu2 %3908, %v4895_v15   ;;  %3912 = vset.pattern.permute.xlu0 %v4006_v33 }
 0x162   : > { %1103 = vmatpush.msrb.mxu1 %v717_v19  ;;  %1062 = vmatmul.f32.gmra.mxu2 %v4638_v25 }
 0x163   : > { %1693 = vperm.xlu0 %3912, %v4902_v26  }
 0x164   : > { %1104 = vmatpush.msrb.mxu1 %v713_v36 }
 0x165   : > { %1105 = vmatmul.f32.vlgmr.msrb.gmra.mxu1 %v4605_v3  ;;  %v4005_v3 = vmov 16.0  }
 0x166   : > { %3935 = vrcp.f32 %v4005_v3 }
 0x169   : > { %1581 = vperm.xlu2 %3908, %v4902_v26  }
 0x16b   : > { %3915 = vset.pattern.permute.xlu0 %v7620_v53 }
 0x16c   : > { %v3936_v10 = vpop.eup %3935  ;;  %1921 = vperm.xlu0 %3915, %v4804_v55  }
 0x16d   : > { %1108 = vmatmul.f32.gmra.mxu1 %v4638_v25  ;;  %v1210_v9 = vmul.f32 16.0, %v3936_v10  ;;  %vm1214_vm9 = vweird.f32 %v3936_v10 }
 0x16f   : > { %v1211_v49 = vsub.f32 1.0, %v1210_v9 }
 0x171   : > { %v4886_v42 = vpop.f32.mrf.mxu3  ;;  %v1212_v31 = vmul.f32 %v3936_v10, %v1211_v49  ;;  %3911 = vset.pattern.permute.xlu2 %v4006_v33 }
 0x172   : > { %1705 = vperm.xlu2 %3911, %v4895_v15  }
 0x173   : > { %v1213_v36 = vadd.f32 %v3936_v10, %v1212_v31 }
 0x175   : > { %v4932_v3 = vsel %vm1214_vm9, %v3936_v10, %v1213_v36 }
 0x176   : > { %7900 = vst [vmem:[#allocation41_spill] sm:$0xff] %v4932_v3 }
 0x179   : > { %v4888_v59 = vpop.f32.mrf.mxu3 }
 0x181   : > { %v4890_v38 = vpop.f32.mrf.mxu3 }
 0x1a1   : > { %v4905_v8 = vpop.permute.xlu1 %982  ;;  %v4909_v61 = vpop.permute.xlu2 %987 }
 0x1a5   : > { %v1152_v47 = vpop.f32.mrf.mxu3 }
 0x1a6   : > { %v1153_v50 = vadd.f32 %v1152_v47, %v4905_v8 }
 0x1ad   : > { %v1155_v14 = vpop.f32.mrf.mxu3 }
 0x1ae   : > { %v1156_v58 = vadd.f32 %v1155_v14, %v4909_v61 }
 0x1b1   : > { %v1014_v21 = vpop.f32.mrf.mxu0 }
 0x1b2   : > { %v1015_v40 = vadd.f32 %v1014_v21, %v4905_v8 }
 0x1b9   : > { %v1017_v25 = vpop.f32.mrf.mxu0 }
 0x1ba   : > { %v1018_v18 = vadd.f32 %v1017_v25, %v4909_v61 }
 0x1c2   : > { %v1037_v32 = vpop.f32.mrf.mxu1 }
 0x1c3   : > { %v1175_v27 = vpop.f32.mrf.mxu0  ;;  %v4920_v11 = vadd.f32 %v1037_v32, %v1015_v40 }
 0x1c4   : > { %v4914_v16 = vadd.f32 %v1175_v27, %v1153_v50  ;;  %v4937_v50 = vld [vmem:[%s7889_s6 + $0x10] sm:$0xff] }
 0x1c5   : > { %7898 = vst [vmem:[#allocation39_spill] sm:$0xff] %v4920_v11  ;;  %1925 = vperm.xlu0 %3915, %v4937_v50   ;;  %1492 = vperm.xlu1 %3909, %v4937_v50  }
 0x1c6   : > { %7896 = vst [vmem:[#allocation37_spill] sm:$0xff] %v4914_v16 }
 0x1c8   : > { %v1178_v41 = vpop.f32.mrf.mxu3 }
 0x1c9   : > { %v4918_v57 = vadd.f32 %v1178_v41, %v1156_v58 }
 0x1ca   : > { %v1040_v13 = vpop.f32.mrf.mxu1 }
 0x1cb   : > { %7897 = vst [vmem:[#allocation38_spill] sm:$0xff] %v4918_v57  ;;  %v1202_v45 = vadd.f32 %v4918_v57, %v4914_v16  ;;  %v4925_v5 = vadd.f32 %v1040_v13, %v1018_v18 }
 0x1cd   : > { %7899 = vst [vmem:[#allocation40_spill] sm:$0xff] %v4925_v5  ;;  %v1203_v2 = vrot.slane %v1202_v45, 4  ;;  %v1181_v6 = vadd.f32 %v4925_v5, %v4920_v11  ;;  %3910 = vset.pattern.permute.xlu1 %v4006_v33 }
 0x1ce   : > { %1697 = vperm.xlu1 %3910, %v4804_v55  }
 0x1cf   : > { %v1204_v1 = vadd.f32 %v1203_v2, %v1202_v45  ;;  %v1182_v24 = vrot.slane %v1181_v6, 4 }
 0x1d1   : > { %v1205_v30 = vrot.slane %v1204_v1, 2  ;;  %v1183_v19 = vadd.f32 %v1182_v24, %v1181_v6  ;;  %v7617_v24 = vmov 6  }
 0x1d2   : > { %3920 = vset.pattern.permute.xlu0 %v7617_v24  ;;  %v4010_v24 = vmov 8  }
 0x1d3   : > { %v1206_v21 = vadd.f32 %v1205_v30, %v1204_v1  ;;  %v1184_v47 = vrot.slane %v1183_v19, 2  ;;  %2145 = vperm.xlu0 %3920, %v4804_v55  }
 0x1d5   : > { %v1207_v20 = vrot.slane %v1206_v21, 1  ;;  %v1185_v25 = vadd.f32 %v1184_v47, %v1183_v19 }
 0x1d6   : > { %1701 = vperm.xlu1 %3910, %v4937_v50  }
 0x1d7   : > { %v1208_v14 = vadd.f32 %v1207_v20, %v1206_v21  ;;  %v1186_v32 = vrot.slane %v1185_v25, 1 }
 0x1d9   : > { %v1219_v27 = vmul.f32 %v4932_v3, %v1208_v14  ;;  %v1187_v40 = vadd.f32 %v1186_v32, %v1185_v25 }
 0x1db   : > { %v4943_v58 = vsub.f32 %v4914_v16, %v1219_v27  ;;  %v4946_v10 = vsub.f32 %v4918_v57, %v1219_v27  ;;  %v1216_v9 = vmul.f32 %v4932_v3, %v1187_v40  ;;  %2141 = vperm.xlu0 %3920, %v4902_v26  }
 0x1dd   : > { %v1231_v18 = vmul.f32 %v4943_v58, %v4943_v58  ;;  %v1235_v41 = vmul.f32 %v4946_v10, %v4946_v10  ;;  %v1060_v49 = vpop.f32.mrf.mxu2  ;;  %v4954_v13 = vsub.f32 %v4920_v11, %v1216_v9  ;;  %v4957_v45 = vsub.f32 %v4925_v5, %v1216_v9 }
 0x1de   : > { %v1061_v47 = vadd.f32 %v1060_v49, %v4905_v8 }
 0x1df   : > { %v1257_v2 = vadd.f32 %v1235_v41, %v1231_v18  ;;  %v1228_v6 = vmul.f32 %v4954_v13, %v4954_v13  ;;  %v1232_v31 = vmul.f32 %v4957_v45, %v4957_v45 }
 0x1e0   : > { %v4969_v9 = vadd.f32 %v4884_v29, %v1061_v47 }
 0x1e1   : > { %v1258_v1 = vrot.slane %v1257_v2, 4  ;;  %v1236_v30 = vadd.f32 %v1232_v31, %v1228_v6 }
 0x1e2   : > { %v1106_v19 = vpop.f32.mrf.mxu1  ;;  %7901 = vst [vmem:[#allocation42_spill] sm:$0xff] %v4969_v9 }
 0x1e3   : > { %v1259_v36 = vadd.f32 %v1258_v1, %v1257_v2  ;;  %v1237_v21 = vrot.slane %v1236_v30, 4  ;;  %v1107_v41 = vadd.f32 %v1106_v19, %v4905_v8 }
 0x1e5   : > { %v1260_v20 = vrot.slane %v1259_v36, 2  ;;  %v1063_v25 = vpop.f32.mrf.mxu2  ;;  %v1238_v14 = vadd.f32 %v1237_v21, %v1236_v30 }
 0x1e6   : > { %v1064_v32 = vadd.f32 %v1063_v25, %v4909_v61 }
 0x1e7   : > { %v1261_v27 = vadd.f32 %v1260_v20, %v1259_v36  ;;  %v1239_v40 = vrot.slane %v1238_v14, 2  ;;  %v4982_v36 = vadd.f32 %v4888_v59, %v1107_v41  ;;  %v7618_v59 = vmov 7  }
 0x1e8   : > { %v4972_v33 = vadd.f32 %v4886_v42, %v1064_v32  ;;  %3923 = vset.pattern.permute.xlu0 %v7618_v59 }
 0x1e9   : > { %v1262_v18 = vrot.slane %v1261_v27, 1  ;;  %v1240_v2 = vadd.f32 %v1239_v40, %v1238_v14  ;;  %7903 = vst [vmem:[#allocation44_spill] sm:$0xff] %v4982_v36  ;;  %2265 = vperm.xlu0 %3923, %v4895_v15  }
 0x1ea   : > { %7902 = vst [vmem:[#allocation43_spill] sm:$0xff] %v4972_v33  ;;  %v1188_v49 = vadd.f32 %v4972_v33, %v4969_v9  ;;  %v1109_v6 = vpop.f32.mrf.mxu1 }
 0x1eb   : > { %v1263_v31 = vadd.f32 %v1262_v18, %v1261_v27  ;;  %v1110_v1 = vadd.f32 %v1109_v6, %v4909_v61  ;;  %v1241_v29 = vrot.slane %v1240_v2, 1 }
 0x1ec   : > { %v1189_v30 = vrot.slane %v1188_v49, 4 }
 0x1ed   : > { %v1267_v42 = vmul.f32 %v1263_v31, %v4932_v3  ;;  %v4985_v8 = vadd.f32 %v4890_v38, %v1110_v1  ;;  %v1242_v19 = vadd.f32 %v1241_v29, %v1240_v2 }
 0x1ee   : > { %v1190_v21 = vadd.f32 %v1189_v30, %v1188_v49 }
 0x1ef   : > { %7904 = vst [vmem:[#allocation45_spill] sm:$0xff] %v4985_v8  ;;  %v1271_v47 = vadd.f32 1e-06, %v1267_v42  ;;  %v1195_v20 = vadd.f32 %v4985_v8, %v4982_v36  ;;  %v1264_v25 = vmul.f32 %v1242_v19, %v4932_v3 }
 0x1f0   : > { %v1191_v14 = vrot.slane %v1190_v21, 2 }
 0x1f1   : > { %3937 = vrsqrt.f32 %v1271_v47  ;;  %v1196_v61 = vrot.slane %v1195_v20, 4  ;;  %v1268_v32 = vadd.f32 1e-06, %v1264_v25  ;;  %2253 = vperm.xlu0 %3923, %v4902_v26   ;;  %vm1308_vm11 = vweird.f32 %v1271_v47 }
 0x1f2   : > { %v1192_v27 = vadd.f32 %v1191_v14, %v1190_v21 }
 0x1f3   : > { %v1197_v40 = vadd.f32 %v1196_v61, %v1195_v20  ;;  %3939 = vrsqrt.f32 %v1268_v32  ;;  %vm1278_vm14 = vweird.f32 %v1268_v32 }
 0x1f4   : > { %v1193_v38 = vrot.slane %v1192_v27, 1 }
 0x1f5   : > { %v1198_v18 = vrot.slane %v1197_v40, 2 }
 0x1f6   : > { %v1194_v41 = vadd.f32 %v1193_v38, %v1192_v27 }
 0x1f7   : > { %v3938_v2 = vpop.eup %3937  ;;  %v1199_v49 = vadd.f32 %v1198_v18, %v1197_v40 }
 0x1f8   : > { %v1303_v6 = vmul.f32 %v3938_v2, %v1271_v47  ;;  %v1217_v31 = vmul.f32 %v4932_v3, %v1194_v41  ;;  %vm1309_vm10 = vweird.f32 %v3938_v2 }
 0x1f9   : > { %v3940_v1 = vpop.eup %3939  ;;  %v1200_v29 = vrot.slane %v1199_v49, 1  ;;  %vm1310_vm13 = vmor %vm1308_vm11, %vm1309_vm10  ;;  %3926 = vset.pattern.permute.xlu0 %v4010_v24 }
 0x1fa   : > { %v1304_v30 = vmul.f32 %v3938_v2, %v1303_v6  ;;  %v4994_v42 = vsub.f32 %v4969_v9, %v1217_v31  ;;  %v4997_v19 = vsub.f32 %v4972_v33, %v1217_v31  ;;  %v1273_v21 = vmul.f32 %v3940_v1, %v1268_v32  ;;  %v5022_v32 = vld [vmem:[%s7905_s20] sm:$0xff]  ;;  %2377 = vperm.xlu0 %3926, %v4895_v15  }
 0x1fb   : > { %v1201_v20 = vadd.f32 %v1200_v29, %v1199_v49  ;;  %vm1279_vm12 = vweird.f32 %v3940_v1 }
 0x1fc   : > { %v1305_v25 = vmul.f32 0.5, %v1304_v30  ;;  %v1229_v14 = vmul.f32 %v4994_v42, %v4994_v42  ;;  %v1233_v61 = vmul.f32 %v4997_v19, %v4997_v19  ;;  %v1274_v27 = vmul.f32 %v3940_v1, %v1273_v21  ;;  %vm1280_vm15 = vmor %vm1278_vm14, %vm1279_vm12 }
 0x1fd   : > { %v1218_v40 = vmul.f32 %v4932_v3, %v1201_v20 }
 0x1fe   : > { %v1306_v38 = vsub.f32 1.5, %v1305_v25  ;;  %v1243_v18 = vadd.f32 %v1233_v61, %v1229_v14  ;;  %v1275_v41 = vmul.f32 0.5, %v1274_v27 }
 0x1ff   : > { %v5006_v6 = vsub.f32 %v4982_v36, %v1218_v40  ;;  %v5009_v49 = vsub.f32 %v4985_v8, %v1218_v40 }
 0x200   : > { %v1307_v31 = vmul.f32 %v3938_v2, %v1306_v38  ;;  %v1244_v29 = vrot.slane %v1243_v18, 4  ;;  %v1276_v30 = vsub.f32 1.5, %v1275_v41 }
 0x201   : > { %v1230_v21 = vmul.f32 %v5006_v6, %v5006_v6  ;;  %v1234_v20 = vmul.f32 %v5009_v49, %v5009_v49 }
 0x202   : > { %v1311_v25 = vsel %vm1310_vm13, %v3938_v2, %v1307_v31  ;;  %v1245_v47 = vadd.f32 %v1244_v29, %v1243_v18  ;;  %v1277_v14 = vmul.f32 %v3940_v1, %v1276_v30  ;;  %3927 = vset.pattern.permute.xlu0 %v7895_v4 }
 0x203   : > { %v1319_v61 = vmul.f32 %v1311_v25, %v4946_v10  ;;  %v1250_v27 = vadd.f32 %v1234_v20, %v1230_v21  ;;  %v1315_v53 = vmul.f32 %v1311_v25, %v4943_v58 }
 0x204   : > { %v1246_v40 = vrot.slane %v1245_v47, 2  ;;  %v1281_v38 = vsel %vm1280_vm15, %v3940_v1, %v1277_v14 }
 0x205   : > { %v1251_v41 = vrot.slane %v1250_v27, 4  ;;  %1461 = vmatpush.msra.mxu3 %v1319_v61  ;;  %v1316_v59 = vmul.f32 %v1281_v38, %v4957_v45  ;;  %v1312_v1 = vmul.f32 %v1281_v38, %v4954_v13  ;;  %v1321_v13 = vld [vmem:[%s7905_s20 + $0x8] sm:$0xff] }
 0x206   : > { %v1247_v10 = vadd.f32 %v1246_v40, %v1245_v47  ;;  %v1322_v47 = vld [vmem:[%s7905_s20 + $0x10] sm:$0xff] }
 0x207   : > { %v1252_v2 = vadd.f32 %v1251_v41, %v1250_v27  ;;  %1374 = vmatpush.msrb.mxu2 %v1316_v59  ;;  %1462 = vmatpush.msra.mxu3 %v1315_v53  ;;  %v1325_v59 = vld [vmem:[%s7882_s5 + $0x8] sm:$0xff] }
 0x208   : > { %v1248_v18 = vrot.slane %v1247_v10, 1  ;;  %3798 = vmatmul.msk.f32.vlgmr.msra.gmra.mxu3 %vm990_vm1, %v5022_v32  ;;  %1335 = vperm.xlu0 %3927, %v1325_v59  }
 0x209   : > { %v1253_v45 = vrot.slane %v1252_v2, 2  ;;  %1375 = vmatpush.msrb.mxu2 %v1312_v1 }
 0x20a   : > { %v1249_v58 = vadd.f32 %v1248_v18, %v1247_v10  ;;  %3786 = vmatmul.msk.f32.vlgmr.msrb.gmra.mxu2 %vm990_vm1, %v5022_v32  ;;  %v1323_v10 = vld [vmem:[%s7905_s20 + $0x18] sm:$0xff] }
 0x20b   : > { %v1254_v31 = vadd.f32 %v1253_v45, %v1252_v2 }
 0x20c   : > { %v1265_v29 = vmul.f32 %v1249_v58, %v4932_v3 }
 0x20d   : > { %v1255_v53 = vrot.slane %v1254_v31, 1 }
 0x20e   : > { %v1269_v30 = vadd.f32 1e-06, %v1265_v29 }
 0x20f   : > { %v1256_v21 = vadd.f32 %v1255_v53, %v1254_v31 }
 0x210   : > { %3799 = vmatmul.msk.f32.gmra.mxu3 %vm990_vm1, %v1321_v13  ;;  %3941 = vrsqrt.f32 %v1269_v30  ;;  %1589 = vperm.xlu0 %3927, %v4937_v50   ;;  %vm1288_vm10 = vweird.f32 %v1269_v30 }
 0x211   : > { %v1266_v20 = vmul.f32 %v1256_v21, %v4932_v3  ;;  %v4011_v21 = vmov 2  }
 0x212   : > { %3787 = vmatmul.msk.f32.gmra.mxu2 %vm990_vm1, %v1321_v13  ;;  %3913 = vset.pattern.permute.xlu2 %v4011_v21 }
 0x213   : > { %v1270_v25 = vadd.f32 1e-06, %v1266_v20  ;;  %3914 = vset.pattern.permute.xlu1 %v4011_v21  ;;  %1809 = vperm.xlu2 %3913, %v4804_v55   ;;  %v7908_v20 = vmov 6  }
 0x214   : > { %1817 = vperm.xlu1 %3914, %v4895_v15  }
 0x215   : > { %3943 = vrsqrt.f32 %v1270_v25  ;;  %vm1298_vm13 = vweird.f32 %v1270_v25 }
 0x216   : > { %v3942_v14 = vpop.eup %3941 }
 0x217   : > { %v1283_v61 = vmul.f32 %v3942_v14, %v1269_v30  ;;  %vm1289_vm9 = vweird.f32 %v3942_v14 }
 0x218   : > { %3800 = vmatmul.msk.f32.gmra.mxu3 %vm990_vm1, %v1322_v47  ;;  %vm1290_vm11 = vmor %vm1288_vm10, %vm1289_vm9 }
 0x219   : > { %v1284_v27 = vmul.f32 %v3942_v14, %v1283_v61 }
 0x21a   : > { %3788 = vmatmul.msk.f32.gmra.mxu2 %vm990_vm1, %v1322_v47 }
 0x21b   : > { %v3944_v40 = vpop.eup %3943  ;;  %v1285_v38 = vmul.f32 0.5, %v1284_v27  ;;  %1813 = vperm.xlu2 %3913, %v4937_v50  }
 0x21c   : > { %v1293_v41 = vmul.f32 %v3944_v40, %v1270_v25  ;;  %vm1299_vm12 = vweird.f32 %v3944_v40  ;;  %1805 = vperm.xlu1 %3914, %v4902_v26  }
 0x21d   : > { %v1286_v2 = vsub.f32 1.5, %v1285_v38  ;;  %vm1300_vm14 = vmor %vm1298_vm13, %vm1299_vm12 }
 0x21e   : > { %v1294_v1 = vmul.f32 %v3944_v40, %v1293_v41 }
 0x21f   : > { %v1287_v18 = vmul.f32 %v3942_v14, %v1286_v2 }
 0x220   : > { %3801 = vmatmul.msk.f32.gmra.mxu3 %vm990_vm1, %v1323_v10  ;;  %v1295_v45 = vmul.f32 0.5, %v1294_v1  ;;  %v5118_v1 = vpop.permute.xlu1 %1345 }
 0x221   : > { %v1291_v58 = vsel %vm1290_vm11, %v3942_v14, %v1287_v18 }
 0x222   : > { %3789 = vmatmul.msk.f32.gmra.mxu2 %vm990_vm1, %v1323_v10  ;;  %v1317_v31 = vmul.f32 %v1291_v58, %v4997_v19  ;;  %v1296_v29 = vsub.f32 1.5, %v1295_v45  ;;  %v1313_v59 = vmul.f32 %v1291_v58, %v4994_v42 }
 0x224   : > { %1403 = vmatpush.msra.mxu1 %v1317_v31  ;;  %3859 = vmatpush.msra.mxu2 %v1317_v31  ;;  %v1297_v53 = vmul.f32 %v3944_v40, %v1296_v29 }
 0x226   : > { %1404 = vmatpush.msra.mxu1 %v1313_v59  ;;  %3860 = vmatpush.msra.mxu2 %v1313_v59  ;;  %v1301_v30 = vsel %vm1300_vm14, %v3944_v40, %v1297_v53 }
 0x227   : > { %3790 = vmatmul.msk.f32.vlgmr.msra.gmra.mxu1 %vm990_vm1, %v5022_v32  ;;  %v1318_v19 = vmul.f32 %v1301_v30, %v5009_v49  ;;  %v1314_v42 = vmul.f32 %v1301_v30, %v5006_v6  ;;  %v7906_v49 = vmov 3   ;;  %v4012_v6 = vmov 5  }
 0x228   : > { %3917 = vset.pattern.permute.xlu2 %v7906_v49  ;;  %3916 = vset.pattern.permute.xlu1 %v7906_v49  ;;  %v5124_v58 = vpop.permute.xlu1 %1340 }
 0x229   : > { %1432 = vmatpush.msra.mxu0 %v1318_v19  ;;  %1917 = vperm.xlu2 %3917, %v4902_v26  }
 0x22a   : > { %3793 = vmatmul.msk.f32.vlgmr.msra.gmra.mxu2 %vm990_vm1, %v1323_v10  ;;  %1929 = vperm.xlu1 %3916, %v4895_v15  }
 0x22b   : > { %1433 = vmatpush.msra.mxu0 %v1314_v42 }
 0x22c   : > { %3794 = vmatmul.msk.f32.vlgmr.msra.gmra.mxu0 %vm990_vm1, %v5022_v32  ;;  %v5078_v32 = vpop.permute.xlu0 %1497 }
 0x22f   : > { %3791 = vmatmul.msk.f32.gmra.mxu1 %vm990_vm1, %v1321_v13 }
 0x230   : > { %v5140_v19 = vpop.permute.xlu1 %1585 }
 0x231   : > { %3919 = vset.pattern.permute.xlu2 %v4012_v6  ;;  %7924 = vst [vmem:[#allocation59_spill] sm:$0xff] %v5140_v19 }
 0x232   : > { %2041 = vperm.xlu2 %3919, %v4895_v15   ;;  %3918 = vset.pattern.permute.xlu1 %v4012_v6 }
 0x233   : > { %2033 = vperm.xlu1 %3918, %v4804_v55  }
 0x234   : > { %3795 = vmatmul.msk.f32.gmra.mxu0 %vm990_vm1, %v1321_v13  ;;  %v7907_v13 = vmov 7   ;;  %v5084_v25 = vpop.permute.xlu0 %1482 }
 0x235   : > { %7909 = vst [vmem:[#allocation46_spill] sm:$0xff] %v5084_v25 }
 0x237   : > { %3792 = vmatmul.msk.f32.gmra.mxu1 %vm990_vm1, %v1322_v47 }
 0x23a   : > { %2037 = vperm.xlu2 %3919, %v4937_v50  }
 0x23b   : > { %2029 = vperm.xlu1 %3918, %v4902_v26  }
 0x23c   : > { %3796 = vmatmul.msk.f32.gmra.mxu0 %vm990_vm1, %v1322_v47  ;;  %v5089_v47 = vpop.permute.xlu0 %1693 }
 0x23d   : > { %7910 = vst [vmem:[#allocation47_spill] sm:$0xff] %v5089_v47 }
 0x242   : > { %3922 = vset.pattern.permute.xlu2 %v7907_v13 }
 0x243   : > { %2257 = vperm.xlu2 %3922, %v4804_v55   ;;  %3921 = vset.pattern.permute.xlu1 %v7908_v20  ;;  %v5155_v20 = vpop.permute.xlu1 %1492 }
 0x244   : > { %3797 = vmatmul.msk.f32.gmra.mxu0 %vm990_vm1, %v1323_v10  ;;  %2153 = vperm.xlu1 %3921, %v4895_v15   ;;  %v5093_v14 = vpop.permute.xlu0 %1921  ;;  %v1331_v15 = vpop.permute.xlu2 %1330  ;;  %7927 = vst [vmem:[#allocation61_spill] sm:$0xff] %v5155_v20 }
 0x245   : > { %7911 = vst [vmem:[#allocation48_spill] sm:$0xff] %v5093_v14 }
 0x24b   : > { %3925 = vset.pattern.permute.xlu2 %v4010_v24  ;;  %v5168_v57 = vpop.permute.xlu1 %1697 }
 0x24c   : > { %2369 = vperm.xlu2 %3925, %v4804_v55   ;;  %2149 = vperm.xlu1 %3921, %v4937_v50   ;;  %v5096_v61 = vpop.permute.xlu0 %1925  ;;  %v5100_v40 = vpop.permute.xlu2 %1487  ;;  %7930 = vst [vmem:[#allocation64_spill] sm:$0xff] %v5168_v57 }
 0x24d   : > { %7912 = vst [vmem:[#allocation49_spill] sm:$0xff] %v5096_v61 }
 0x24e   : > { %7914 = vst [vmem:[#allocation51_spill] sm:$0xff] %v5100_v40 }
 0x254   : > { %3924 = vset.pattern.permute.xlu1 %v7907_v13  ;;  %v5098_v27 = vpop.permute.xlu0 %2145  ;;  %v5104_v38 = vpop.permute.xlu2 %1593 }
 0x255   : > { %2261 = vperm.xlu1 %3924, %v4937_v50   ;;  %7913 = vst [vmem:[#allocation50_spill] sm:$0xff] %v5098_v27 }
 0x25c   : > { %v5102_v55 = vpop.permute.xlu0 %2141  ;;  %v5114_v2 = vpop.permute.xlu2 %1581 }
 0x25d   : > { %3928 = vset.pattern.permute.xlu1 %v4010_v24  ;;  %7915 = vst [vmem:[#allocation52_spill] sm:$0xff] %v5102_v55 }
 0x25e   : > { %7917 = vst [vmem:[#allocation54_spill] sm:$0xff] %v5114_v2 }
 0x264   : > { %v5112_v24 = vpop.permute.xlu0 %2265  ;;  %v5122_v45 = vpop.permute.xlu2 %1705 }
 0x265   : > { %7916 = vst [vmem:[#allocation53_spill] sm:$0xff] %v5112_v24 }
 0x26c   : > { %v5120_v18 = vpop.permute.xlu0 %2253 }
 0x26d   : > { %7919 = vst [vmem:[#allocation55_spill] sm:$0xff] %v5120_v18  ;;  %v5134_v21 = vpop.permute.xlu2 %1809 }
 0x26e   : > { %7923 = vst [vmem:[#allocation58_spill] sm:$0xff] %v5134_v21 }
 0x274   : > { %v5132_v59 = vpop.permute.xlu0 %2377 }
 0x275   : > { %7922 = vst [vmem:[#allocation57_spill] sm:$0xff] %v5132_v59  ;;  %v5148_v49 = vpop.permute.xlu2 %1813 }
 0x276   : > { %7926 = vst [vmem:[#allocation60_spill] sm:$0xff] %v5148_v49 }
 0x27c   : > { %v5146_v42 = vpop.permute.xlu0 %1335 }
 0x284   : > { %v5270_v56 = vpop.permute.xlu0 %1589 }
 0x285   : > { %7945 = vst [vmem:[#allocation79_spill] sm:$0xff] %v5270_v56 }
 0x28b   : > { %v1464_v36 = vpop.f32.mrf.mxu3 }
 0x28c   : > { %v5206_v9 = vadd.f32 %v1464_v36, %v1331_v15 }
 0x28d   : > { %v1377_v41 = vpop.f32.mrf.mxu2 }
 0x28e   : > { %v5106_v10 = vadd.f32 %v1377_v41, %v1331_v15 }
 0x290   : > { %1852 = vrot.lane.b32.xlu2 %v5106_v10, %s7858_s28  ;;  %1516 = vrot.lane.b32.xlu0 %v5106_v10, %s7862_s21 }
 0x295   : > { %v1380_v6 = vpop.f32.mrf.mxu2 }
 0x296   : > { %v5153_v13 = vadd.f32 %v1380_v6, %v5146_v42 }
 0x298   : > { %1964 = vrot.lane.b32.xlu2 %v5106_v10, %s7918_s3 }
 0x29d   : > { %v1383_v36 = vpop.f32.mrf.mxu2 }
 0x2a4   : > { %v1406_v31 = vpop.f32.mrf.mxu1 }
 0x2a5   : > { %v5126_v29 = vadd.f32 %v1406_v31, %v1331_v15 }
 0x2a7   : > { %7920 = vst [vmem:[#allocation56_spill] sm:$0xff] %v5126_v29  ;;  %2196 = vrot.lane.b32.xlu0 %v5126_v29, %s7921_s22  ;;  %1972 = vrot.lane.b32.xlu2 %v5126_v29, %s7918_s3 }
 0x2a9   : > { %v1435_v53 = vpop.f32.mrf.mxu0 }
 0x2aa   : > { %v5136_v30 = vadd.f32 %v1435_v53, %v1331_v15  ;;  %v5166_v53 = vpop.permute.xlu2 %1917 }
 0x2ab   : > { %7929 = vst [vmem:[#allocation63_spill] sm:$0xff] %v5166_v53 }
 0x2ac   : > { %1532 = vrot.lane.b32.xlu1 %v5136_v30, %s7862_s21  ;;  %v1409_v41 = vpop.f32.mrf.mxu1 }
 0x2ad   : > { %v5164_v31 = vadd.f32 %v1409_v41, %v5146_v42  ;;  %v5182_v41 = vpop.permute.xlu1 %1701 }
 0x2ae   : > { %7932 = vst [vmem:[#allocation66_spill] sm:$0xff] %v5182_v41 }
 0x2af   : > { %1748 = vrot.lane.b32.xlu0 %v5126_v29, %s7861_s30  ;;  %2076 = vrot.lane.b32.xlu2 %v5106_v10, %s7925_s23  ;;  %7928 = vst [vmem:[#allocation62_spill] sm:$0xff] %v5164_v31 }
 0x2b1   : > { %v1438_v5 = vpop.f32.mrf.mxu0 }
 0x2b2   : > { %v5180_v6 = vpop.permute.xlu2 %2041  ;;  %v5213_v11 = vadd.f32 %v1438_v5, %v5146_v42  ;;  %v5228_v5 = vadd.f32 %v1383_v36, %v5124_v58 }
 0x2b3   : > { %7931 = vst [vmem:[#allocation65_spill] sm:$0xff] %v5180_v6 }
 0x2b4   : > { %1628 = vrot.lane.b32.xlu1 %v5106_v10, %s7864_s1  ;;  %v1412_v18 = vpop.f32.mrf.mxu1 }
 0x2b5   : > { %v5192_v8 = vpop.permute.xlu1 %1817  ;;  %v5241_v55 = vadd.f32 %v1412_v18, %v5124_v58 }
 0x2b7   : > { %1524 = vrot.lane.b32.xlu2 %v5126_v29, %s7862_s21  ;;  %1966 = vrot.lane.b32.xlu0 %v5153_v13, %s7918_s3  ;;  %7940 = vst [vmem:[#allocation74_spill] sm:$0xff] %v5241_v55 }
 0x2b9   : > { %v1441_v61 = vpop.f32.mrf.mxu0 }
 0x2ba   : > { %v5190_v16 = vpop.permute.xlu2 %2037 }
 0x2bb   : > { %7933 = vst [vmem:[#allocation67_spill] sm:$0xff] %v5190_v16 }
 0x2bc   : > { %1740 = vrot.lane.b32.xlu1 %v5106_v10, %s7861_s30 }
 0x2bd   : > { %v5202_v33 = vpop.permute.xlu1 %1805 }
 0x2be   : > { %7935 = vst [vmem:[#allocation69_spill] sm:$0xff] %v5202_v33  ;;  %v1386_v33 = vpop.f32.mrf.mxu2 }
 0x2bf   : > { %2300 = vrot.lane.b32.xlu2 %v5106_v10, %s7860_s24  ;;  %2086 = vrot.lane.b32.xlu0 %v5164_v31, %s7925_s23 }
 0x2c2   : > { %v5200_v3 = vpop.permute.xlu2 %2257 }
 0x2c3   : > { %7934 = vst [vmem:[#allocation68_spill] sm:$0xff] %v5200_v3 }
 0x2c4   : > { %2084 = vrot.lane.b32.xlu1 %v5126_v29, %s7925_s23 }
 0x2c5   : > { %v5215_v39 = vpop.permute.xlu1 %1929 }
 0x2c6   : > { %7936 = vst [vmem:[#allocation70_spill] sm:$0xff] %v5215_v39  ;;  %v1415_v56 = vpop.f32.mrf.mxu2 }
 0x2c7   : > { %1526 = vrot.lane.b32.xlu0 %v5164_v31, %s7862_s21  ;;  %1518 = vrot.lane.b32.xlu2 %v5153_v13, %s7862_s21  ;;  %v5358_v27 = vadd.f32 %v1415_v56, %v5118_v1 }
 0x2ca   : > { %v5219_v17 = vpop.permute.xlu2 %2369 }
 0x2cb   : > { %7937 = vst [vmem:[#allocation71_spill] sm:$0xff] %v5219_v17 }
 0x2cc   : > { %2188 = vrot.lane.b32.xlu1 %v5106_v10, %s7921_s22 }
 0x2cd   : > { %v5230_v15 = vpop.permute.xlu1 %2033 }
 0x2ce   : > { %7938 = vst [vmem:[#allocation72_spill] sm:$0xff] %v5230_v15 }
 0x2cf   : > { %2190 = vrot.lane.b32.xlu0 %v5153_v13, %s7921_s22  ;;  %1742 = vrot.lane.b32.xlu2 %v5153_v13, %s7861_s30 }
 0x2d4   : > { %1636 = vrot.lane.b32.xlu1 %v5126_v29, %s7864_s1 }
 0x2d5   : > { %v5247_v36 = vpop.permute.xlu1 %2029 }
 0x2d6   : > { %7941 = vst [vmem:[#allocation75_spill] sm:$0xff] %v5247_v36  ;;  %v5264_v36 = vadd.f32 %v1441_v61, %v5124_v58 }
 0x2d7   : > { %1750 = vrot.lane.b32.xlu0 %v5164_v31, %s7861_s30  ;;  %1854 = vrot.lane.b32.xlu2 %v5153_v13, %s7858_s28 }
 0x2dc   : > { %2308 = vrot.lane.b32.xlu1 %v5126_v29, %s7860_s24 }
 0x2dd   : > { %v5259_v53 = vpop.permute.xlu1 %2153 }
 0x2de   : > { %7944 = vst [vmem:[#allocation78_spill] sm:$0xff] %v5259_v53 }
 0x2df   : > { %1652 = vrot.lane.b32.xlu0 %v5206_v9, %s7864_s1  ;;  %1974 = vrot.lane.b32.xlu2 %v5164_v31, %s7918_s3 }
 0x2e4   : > { %1534 = vrot.lane.b32.xlu1 %v5213_v11, %s7862_s21 }
 0x2e5   : > { %v5274_v47 = vpop.permute.xlu1 %2149 }
 0x2e6   : > { %7947 = vst [vmem:[#allocation81_spill] sm:$0xff] %v5274_v47 }
 0x2e7   : > { %1764 = vrot.lane.b32.xlu0 %v5206_v9, %s7861_s30  ;;  %2198 = vrot.lane.b32.xlu2 %v5164_v31, %s7921_s22 }
 0x2ea   : > { %v5232_v0 = vpop.permute.xlu2 %1852 }
 0x2eb   : > { %7939 = vst [vmem:[#allocation73_spill] sm:$0xff] %v5232_v0 }
 0x2ec   : > { %1646 = vrot.lane.b32.xlu1 %v5213_v11, %s7864_s1 }
 0x2ed   : > { %v5291_v47 = vpop.permute.xlu1 %2261 }
 0x2ee   : > { %7950 = vst [vmem:[#allocation84_spill] sm:$0xff] %v5291_v47 }
 0x2ef   : > { %1856 = vrot.lane.b32.xlu0 %v5228_v5, %s7858_s28  ;;  %1638 = vrot.lane.b32.xlu2 %v5164_v31, %s7864_s1 }
 0x2f2   : > { %v5249_v16 = vpop.permute.xlu2 %1964 }
 0x2f3   : > { %7942 = vst [vmem:[#allocation76_spill] sm:$0xff] %v5249_v16 }
 0x2f4   : > { %1630 = vrot.lane.b32.xlu1 %v5153_v13, %s7864_s1 }
 0x2f7   : > { %1976 = vrot.lane.b32.xlu0 %v5241_v55, %s7918_s3  ;;  %2302 = vrot.lane.b32.xlu2 %v5153_v13, %s7860_s24 }
 0x2fc   : > { %2078 = vrot.lane.b32.xlu1 %v5153_v13, %s7925_s23 }
 0x2ff   : > { %2080 = vrot.lane.b32.xlu0 %v5228_v5, %s7925_s23  ;;  %1862 = vrot.lane.b32.xlu2 %v5164_v31, %s7858_s28 }
 0x301   : > { %v5257_v18 = vpop.permute.xlu2 %1972 }
 0x302   : > { %7943 = vst [vmem:[#allocation77_spill] sm:$0xff] %v5257_v18  ;;  %v5285_v61 = vpop.permute.xlu0 %1516 }
 0x303   : > { %7948 = vst [vmem:[#allocation82_spill] sm:$0xff] %v5285_v61 }
 0x304   : > { %2310 = vrot.lane.b32.xlu1 %v5164_v31, %s7860_s24  ;;  %v5279_v31 = vadd.f32 %v1386_v33, %v5118_v1 }
 0x307   : > { %2304 = vrot.lane.b32.xlu0 %v5228_v5, %s7860_s24  ;;  %1536 = vrot.lane.b32.xlu2 %v5264_v36, %s7862_s21 }
 0x309   : > { %v5272_v0 = vpop.permute.xlu2 %2076 }
 0x30a   : > { %7946 = vst [vmem:[#allocation80_spill] sm:$0xff] %v5272_v0  ;;  %v1467_v0 = vpop.f32.mrf.mxu3 }
 0x30b   : > { %v5294_v17 = vadd.f32 %v1467_v0, %v5146_v42 }
 0x30c   : > { %1520 = vrot.lane.b32.xlu1 %v5228_v5, %s7862_s21 }
 0x30f   : > { %1522 = vrot.lane.b32.xlu0 %v5279_v31, %s7862_s21  ;;  %1540 = vrot.lane.b32.xlu2 %v5206_v9, %s7862_s21 }
 0x311   : > { %v5287_v59 = vpop.permute.xlu2 %1524 }
 0x312   : > { %7949 = vst [vmem:[#allocation83_spill] sm:$0xff] %v5287_v59  ;;  %v1470_v24 = vpop.f32.mrf.mxu3 }
 0x313   : > { %v5343_v6 = vadd.f32 %v1470_v24, %v5124_v58 }
 0x314   : > { %1876 = vrot.lane.b32.xlu1 %v5206_v9, %s7858_s28 }
 0x317   : > { %1654 = vrot.lane.b32.xlu0 %v5294_v17, %s7864_s1  ;;  %1632 = vrot.lane.b32.xlu2 %v5228_v5, %s7864_s1 }
 0x319   : > { %v5300_v33 = vpop.permute.xlu2 %2300  ;;  %v5302_v34 = vpop.permute.xlu0 %2196 }
 0x31a   : > { %7951 = vst [vmem:[#allocation85_spill] sm:$0xff] %v5300_v33 }
 0x31b   : > { %7952 = vst [vmem:[#allocation86_spill] sm:$0xff] %v5302_v34 }
 0x31c   : > { %1968 = vrot.lane.b32.xlu1 %v5228_v5, %s7918_s3 }
 0x31e   : > { %v5306_v49 = vpop.permute.xlu1 %1532 }
 0x31f   : > { %1746 = vrot.lane.b32.xlu0 %v5279_v31, %s7861_s30  ;;  %1744 = vrot.lane.b32.xlu2 %v5228_v5, %s7861_s30 }
 0x321   : > { %v5312_v0 = vpop.permute.xlu2 %1518  ;;  %v5314_v42 = vpop.permute.xlu0 %1748 }
 0x322   : > { %7953 = vst [vmem:[#allocation87_spill] sm:$0xff] %v5312_v0 }
 0x323   : > { %7954 = vst [vmem:[#allocation88_spill] sm:$0xff] %v5314_v42 }
 0x324   : > { %1528 = vrot.lane.b32.xlu1 %v5241_v55, %s7862_s21 }
 0x326   : > { %v5318_v47 = vpop.permute.xlu1 %1628 }
 0x327   : > { %7955 = vst [vmem:[#allocation89_spill] sm:$0xff] %v5318_v47  ;;  %1858 = vrot.lane.b32.xlu0 %v5279_v31, %s7858_s28  ;;  %2088 = vrot.lane.b32.xlu2 %v5241_v55, %s7925_s23 }
 0x329   : > { %v5324_v33 = vpop.permute.xlu2 %1742  ;;  %v5326_v34 = vpop.permute.xlu0 %1966 }
 0x32a   : > { %7956 = vst [vmem:[#allocation90_spill] sm:$0xff] %v5324_v33 }
 0x32b   : > { %7957 = vst [vmem:[#allocation91_spill] sm:$0xff] %v5326_v34 }
 0x32c   : > { %2200 = vrot.lane.b32.xlu1 %v5241_v55, %s7921_s22 }
 0x32e   : > { %v5330_v41 = vpop.permute.xlu1 %1740 }
 0x32f   : > { %7958 = vst [vmem:[#allocation92_spill] sm:$0xff] %v5330_v41  ;;  %2306 = vrot.lane.b32.xlu0 %v5279_v31, %s7860_s24  ;;  %2192 = vrot.lane.b32.xlu2 %v5228_v5, %s7921_s22  ;;  %v1444_v41 = vpop.f32.mrf.mxu0 }
 0x330   : > { %v5373_v54 = vadd.f32 %v1444_v41, %v5118_v1 }
 0x331   : > { %v5336_v42 = vpop.permute.xlu2 %1854  ;;  %v5338_v53 = vpop.permute.xlu0 %2086 }
 0x332   : > { %7959 = vst [vmem:[#allocation93_spill] sm:$0xff] %v5336_v42 }
 0x333   : > { %7960 = vst [vmem:[#allocation94_spill] sm:$0xff] %v5338_v53 }
 0x334   : > { %1752 = vrot.lane.b32.xlu1 %v5241_v55, %s7861_s30 }
 0x336   : > { %v5345_v39 = vpop.permute.xlu1 %2084 }
 0x337   : > { %7961 = vst [vmem:[#allocation95_spill] sm:$0xff] %v5345_v39  ;;  %1544 = vrot.lane.b32.xlu0 %v5343_v6, %s7862_s21  ;;  %1640 = vrot.lane.b32.xlu2 %v5241_v55, %s7864_s1 }
 0x339   : > { %v5351_v48 = vpop.permute.xlu2 %1974  ;;  %v5353_v28 = vpop.permute.xlu0 %1526 }
 0x33a   : > { %7962 = vst [vmem:[#allocation96_spill] sm:$0xff] %v5351_v48 }
 0x33b   : > { %7963 = vst [vmem:[#allocation97_spill] sm:$0xff] %v5353_v28 }
 0x33c   : > { %1542 = vrot.lane.b32.xlu1 %v5294_v17, %s7862_s21 }
 0x33e   : > { %v5360_v24 = vpop.permute.xlu1 %2188 }
 0x33f   : > { %7964 = vst [vmem:[#allocation98_spill] sm:$0xff] %v5360_v24  ;;  %1978 = vrot.lane.b32.xlu0 %v5358_v27, %s7918_s3  ;;  %2312 = vrot.lane.b32.xlu2 %v5241_v55, %s7860_s24 }
 0x341   : > { %v5366_v58 = vpop.permute.xlu2 %2198  ;;  %v5368_v39 = vpop.permute.xlu0 %2190 }
 0x342   : > { %7965 = vst [vmem:[#allocation99_spill] sm:$0xff] %v5366_v58 }
 0x343   : > { %7966 = vst [vmem:[#allocation100_spill] sm:$0xff] %v5368_v39 }
 0x344   : > { %1766 = vrot.lane.b32.xlu1 %v5294_v17, %s7861_s30 }
 0x346   : > { %v5375_v56 = vpop.permute.xlu1 %1636 }
 0x347   : > { %7967 = vst [vmem:[#allocation101_spill] sm:$0xff] %v5375_v56  ;;  %2202 = vrot.lane.b32.xlu0 %v5358_v27, %s7921_s22  ;;  %1538 = vrot.lane.b32.xlu2 %v5373_v54, %s7862_s21 }
 0x349   : > { %v5381_v24 = vpop.permute.xlu2 %1638  ;;  %v5383_v61 = vpop.permute.xlu0 %1750 }
 0x34a   : > { %7968 = vst [vmem:[#allocation102_spill] sm:$0xff] %v5381_v24 }
 0x34b   : > { %7969 = vst [vmem:[#allocation103_spill] sm:$0xff] %v5383_v61 }
 0x34c   : > { %1878 = vrot.lane.b32.xlu1 %v5294_v17, %s7858_s28 }
 0x34e   : > { %v5387_v3 = vpop.permute.xlu1 %2308 }
 0x34f   : > { %7970 = vst [vmem:[#allocation104_spill] sm:$0xff] %v5387_v3  ;;  %1642 = vrot.lane.b32.xlu0 %v5358_v27, %s7864_s1  ;;  %1650 = vrot.lane.b32.xlu2 %v5373_v54, %s7864_s1 }
 0x351   : > { %v5393_v41 = vpop.permute.xlu2 %2302  ;;  %v5395_v56 = vpop.permute.xlu0 %1652 }
 0x352   : > { %7971 = vst [vmem:[#allocation105_spill] sm:$0xff] %v5393_v41 }
 0x353   : > { %7972 = vst [vmem:[#allocation106_spill] sm:$0xff] %v5395_v56 }
 0x354   : > { %1970 = vrot.lane.b32.xlu1 %v5279_v31, %s7918_s3 }
 0x356   : > { %v5399_v24 = vpop.permute.xlu1 %1534 }
 0x357   : > { %7973 = vst [vmem:[#allocation107_spill] sm:$0xff] %v5399_v24  ;;  %1866 = vrot.lane.b32.xlu0 %v5358_v27, %s7858_s28  ;;  %1634 = vrot.lane.b32.xlu2 %v5279_v31, %s7864_s1 }
 0x359   : > { %v5405_v3 = vpop.permute.xlu2 %1862  ;;  %v5407_v61 = vpop.permute.xlu0 %1764 }
 0x35a   : > { %7974 = vst [vmem:[#allocation108_spill] sm:$0xff] %v5405_v3 }
 0x35b   : > { %7975 = vst [vmem:[#allocation109_spill] sm:$0xff] %v5407_v61 }
 0x35c   : > { %2194 = vrot.lane.b32.xlu1 %v5279_v31, %s7921_s22 }
 0x35e   : > { %v5411_v41 = vpop.permute.xlu1 %1646 }
 0x35f   : > { %7976 = vst [vmem:[#allocation110_spill] sm:$0xff] %v5411_v41  ;;  %1644 = vrot.lane.b32.xlu0 %v5136_v30, %s7864_s1  ;;  %2082 = vrot.lane.b32.xlu2 %v5279_v31, %s7925_s23 }
 0x361   : > { %v5417_v12 = vpop.permute.xlu2 %1536  ;;  %v5419_v14 = vpop.permute.xlu0 %1856 }
 0x362   : > { %7977 = vst [vmem:[#allocation111_spill] sm:$0xff] %v5417_v12  ;;  %v1473_v12 = vpop.f32.mrf.mxu3 }
 0x363   : > { %7978 = vst [vmem:[#allocation112_spill] sm:$0xff] %v5419_v14 }
 0x364   : > { %1656 = vrot.lane.b32.xlu1 %v5343_v6, %s7864_s1 }
 0x366   : > { %v5423_v3 = vpop.permute.xlu1 %1630 }
 0x367   : > { %7979 = vst [vmem:[#allocation113_spill] sm:$0xff] %v5423_v3  ;;  %1762 = vrot.lane.b32.xlu0 %v5373_v54, %s7861_s30  ;;  %1880 = vrot.lane.b32.xlu2 %v5343_v6, %s7858_s28 }
 0x369   : > { %v5429_v41 = vpop.permute.xlu2 %1540  ;;  %v5431_v61 = vpop.permute.xlu0 %1976 }
 0x36a   : > { %7980 = vst [vmem:[#allocation114_spill] sm:$0xff] %v5429_v41 }
 0x36b   : > { %7981 = vst [vmem:[#allocation115_spill] sm:$0xff] %v5431_v61  ;;  %v2415_v61 = vld [vmem:[%s7985_s7 + $0x18] sm:$0xff] }
 0x36c   : > { %1768 = vrot.lane.b32.xlu1 %v5343_v6, %s7861_s30 }
 0x36e   : > { %v5435_v56 = vpop.permute.xlu1 %2078 }
 0x36f   : > { %7982 = vst [vmem:[#allocation116_spill] sm:$0xff] %v5435_v56  ;;  %1982 = vrot.lane.b32.xlu0 %v5213_v11, %s7918_s3  ;;  %2314 = vrot.lane.b32.xlu2 %v5358_v27, %s7860_s24 }
 0x371   : > { %v5441_v14 = vpop.permute.xlu2 %1632  ;;  %v5443_v47 = vpop.permute.xlu0 %2080 }
 0x372   : > { %7983 = vst [vmem:[#allocation117_spill] sm:$0xff] %v5441_v14 }
 0x373   : > { %7984 = vst [vmem:[#allocation118_spill] sm:$0xff] %v5443_v47  ;;  %v5460_v47 = vadd.f32 %v1473_v12, %v5118_v1 }
 0x374   : > { %2090 = vrot.lane.b32.xlu1 %v5358_v27, %s7925_s23 }
 0x376   : > { %v5450_v41 = vpop.permute.xlu1 %2310 }
 0x377   : > { %7986 = vst [vmem:[#allocation119_spill] sm:$0xff] %v5450_v41  ;;  %2433 = vperm.xlu0 %3927, %v2415_v61   ;;  %2373 = vperm.xlu2 %3925, %v4937_v50  }
 0x379   : > { %v5453_v15 = vpop.permute.xlu2 %1744  ;;  %v5455_v21 = vpop.permute.xlu0 %2304 }
 0x37a   : > { %7987 = vst [vmem:[#allocation120_spill] sm:$0xff] %v5453_v15 }
 0x37b   : > { %7988 = vst [vmem:[#allocation121_spill] sm:$0xff] %v5455_v21 }
 0x37c   : > { %1530 = vrot.lane.b32.xlu1 %v5358_v27, %s7862_s21 }
 0x37e   : > { %v5462_v14 = vpop.permute.xlu1 %1520 }
 0x37f   : > { %7989 = vst [vmem:[#allocation122_spill] sm:$0xff] %v5462_v14  ;;  %1980 = vrot.lane.b32.xlu0 %v5136_v30, %s7918_s3  ;;  %1546 = vrot.lane.b32.xlu2 %v5460_v47, %s7862_s21 }
 0x380   : > { %3929 = vset.pattern.permute.xlu2 %v7895_v4 }
 0x381   : > { %v5469_v50 = vpop.permute.xlu2 %2088  ;;  %v5471_v61 = vpop.permute.xlu0 %1522 }
 0x382   : > { %7990 = vst [vmem:[#allocation123_spill] sm:$0xff] %v5469_v50 }
 0x384   : > { %1754 = vrot.lane.b32.xlu1 %v5358_v27, %s7861_s30 }
 0x386   : > { %v5475_v21 = vpop.permute.xlu1 %1876 }
 0x387   : > { %7991 = vst [vmem:[#allocation124_spill] sm:$0xff] %v5475_v21  ;;  %2098 = vrot.lane.b32.xlu0 %v5373_v54, %s7925_s23  ;;  %1770 = vrot.lane.b32.xlu2 %v5460_v47, %s7861_s30 }
 0x389   : > { %v5481_v12 = vpop.permute.xlu2 %2192  ;;  %v5483_v1 = vpop.permute.xlu0 %1654 }
 0x38a   : > { %7992 = vst [vmem:[#allocation125_spill] sm:$0xff] %v5481_v12 }
 0x38b   : > { %7993 = vst [vmem:[#allocation126_spill] sm:$0xff] %v5483_v1 }
 0x38c   : > { %2365 = vperm.xlu1 %3928, %v4902_v26  }
 0x38e   : > { %v5486_v50 = vpop.permute.xlu1 %1968 }
 0x38f   : > { %7994 = vst [vmem:[#allocation127_spill] sm:$0xff] %v5486_v50  ;;  %1868 = vrot.lane.b32.xlu0 %v5136_v30, %s7858_s28  ;;  %1882 = vrot.lane.b32.xlu2 %v5460_v47, %s7858_s28 }
 0x391   : > { %v5492_v15 = vpop.permute.xlu2 %1640  ;;  %v5494_v21 = vpop.permute.xlu0 %1746 }
 0x392   : > { %7995 = vst [vmem:[#allocation128_spill] sm:$0xff] %v5492_v15 }
 0x394   : > { %1658 = vrot.lane.b32.xlu1 %v5460_v47, %s7864_s1 }
 0x395   : > { %3930 = vset.pattern.permute.xlu1 %v7895_v4 }
 0x396   : > { %v5499_v12 = vpop.permute.xlu1 %1528 }
 0x397   : > { %7996 = vst [vmem:[#allocation129_spill] sm:$0xff] %v5499_v12  ;;  %1994 = vrot.lane.b32.xlu0 %v5460_v47, %s7918_s3  ;;  %1758 = vrot.lane.b32.xlu2 %v5213_v11, %s7861_s30 }
 0x399   : > { %v5505_v26 = vpop.permute.xlu2 %2312  ;;  %v5507_v50 = vpop.permute.xlu0 %1858 }
 0x39a   : > { %7997 = vst [vmem:[#allocation130_spill] sm:$0xff] %v5505_v26  ;;  %v2413_v26 = vld [vmem:[%s7985_s7 + $0x8] sm:$0xff] }
 0x39b   : > { %7998 = vst [vmem:[#allocation131_spill] sm:$0xff] %v5507_v50 }
 0x39c   : > { %1648 = vrot.lane.b32.xlu1 %v5264_v36, %s7864_s1 }
 0x39e   : > { %v5511_v14 = vpop.permute.xlu1 %2200 }
 0x39f   : > { %7999 = vst [vmem:[#allocation132_spill] sm:$0xff] %v5511_v14  ;;  %2206 = vrot.lane.b32.xlu0 %v5213_v11, %s7921_s22  ;;  %1864 = vrot.lane.b32.xlu2 %v5241_v55, %s7858_s28 }
 0x3a1   : > { %v5517_v4 = vpop.permute.xlu2 %1538  ;;  %v5519_v15 = vpop.permute.xlu0 %2306 }
 0x3a2   : > { %8000 = vst [vmem:[#allocation133_spill] sm:$0xff] %v5517_v4 }
 0x3a3   : > { %8001 = vst [vmem:[#allocation134_spill] sm:$0xff] %v5519_v15 }
 0x3a4   : > { %1860 = vrot.lane.b32.xlu1 %v5126_v29, %s7858_s28 }
 0x3a6   : > { %v5526_v50 = vpop.permute.xlu1 %1752 }
 0x3a7   : > { %8002 = vst [vmem:[#allocation135_spill] sm:$0xff] %v5526_v50  ;;  %1992 = vrot.lane.b32.xlu0 %v5343_v6, %s7918_s3  ;;  %2423 = vperm.xlu2 %3929, %v2413_v26  }
 0x3a9   : > { %v5530_v14 = vpop.permute.xlu2 %1650  ;;  %v5532_v55 = vpop.permute.xlu0 %1544 }
 0x3aa   : > { %8003 = vst [vmem:[#allocation136_spill] sm:$0xff] %v5530_v14 }
 0x3ab   : > { %8004 = vst [vmem:[#allocation137_spill] sm:$0xff] %v5532_v55 }
 0x3ac   : > { %1986 = vrot.lane.b32.xlu1 %v5373_v54, %s7918_s3 }
 0x3ae   : > { %v5536_v15 = vpop.permute.xlu1 %1542 }
 0x3af   : > { %8005 = vst [vmem:[#allocation138_spill] sm:$0xff] %v5536_v15  ;;  %2204 = vrot.lane.b32.xlu0 %v5136_v30, %s7921_s22  ;;  %1760 = vrot.lane.b32.xlu2 %v5264_v36, %s7861_s30 }
 0x3b1   : > { %v5542_v29 = vpop.permute.xlu2 %1634  ;;  %v5544_v50 = vpop.permute.xlu0 %1978 }
 0x3b2   : > { %8006 = vst [vmem:[#allocation139_spill] sm:$0xff] %v5542_v29 }
 0x3b3   : > { %8007 = vst [vmem:[#allocation140_spill] sm:$0xff] %v5544_v50 }
 0x3b4   : > { %1756 = vrot.lane.b32.xlu1 %v5136_v30, %s7861_s30 }
 0x3b6   : > { %v5548_v26 = vpop.permute.xlu1 %1766 }
 0x3b7   : > { %8008 = vst [vmem:[#allocation141_spill] sm:$0xff] %v5548_v26  ;;  %2322 = vrot.lane.b32.xlu0 %v5373_v54, %s7860_s24  ;;  %1874 = vrot.lane.b32.xlu2 %v5373_v54, %s7858_s28 }
 0x3b9   : > { %v5554_v41 = vpop.permute.xlu2 %2082  ;;  %v5556_v55 = vpop.permute.xlu0 %2202 }
 0x3ba   : > { %8009 = vst [vmem:[#allocation142_spill] sm:$0xff] %v5554_v41  ;;  %v2414_v41 = vld [vmem:[%s7985_s7 + $0x10] sm:$0xff] }
 0x3bb   : > { %8010 = vst [vmem:[#allocation143_spill] sm:$0xff] %v5556_v55 }
 0x3bc   : > { %1870 = vrot.lane.b32.xlu1 %v5213_v11, %s7858_s28 }
 0x3be   : > { %v5560_v12 = vpop.permute.xlu1 %1878 }
 0x3bf   : > { %8011 = vst [vmem:[#allocation144_spill] sm:$0xff] %v5560_v12  ;;  %2214 = vrot.lane.b32.xlu0 %v5294_v17, %s7921_s22  ;;  %2094 = vrot.lane.b32.xlu2 %v5213_v11, %s7925_s23 }
 0x3c1   : > { %v5566_v50 = vpop.permute.xlu2 %1880  ;;  %v1643_v57 = vpop.permute.xlu0 %1642 }
 0x3c2   : > { %8012 = vst [vmem:[#allocation145_spill] sm:$0xff] %v5566_v50  ;;  %v2412_v50 = vld [vmem:[%s7985_s7] sm:$0xff] }
 0x3c4   : > { %1984 = vrot.lane.b32.xlu1 %v5264_v36, %s7918_s3 }
 0x3c6   : > { %v5573_v55 = vpop.permute.xlu1 %1970 }
 0x3c7   : > { %8013 = vst [vmem:[#allocation146_spill] sm:$0xff] %v5573_v55  ;;  %2320 = vrot.lane.b32.xlu0 %v5264_v36, %s7860_s24  ;;  %2428 = vperm.xlu2 %3929, %v2414_v41  }
 0x3c9   : > { %v5577_v56 = vpop.permute.xlu2 %2314  ;;  %v5579_v53 = vpop.permute.xlu0 %1866 }
 0x3ca   : > { %8014 = vst [vmem:[#allocation147_spill] sm:$0xff] %v5577_v56 }
 0x3cb   : > { %8015 = vst [vmem:[#allocation148_spill] sm:$0xff] %v5579_v53 }
 0x3cc   : > { %2418 = vperm.xlu1 %3930, %v2412_v50  }
 0x3ce   : > { %v5584_v43 = vpop.permute.xlu1 %2194 }
 0x3cf   : > { %8016 = vst [vmem:[#allocation149_spill] sm:$0xff] %v5584_v43  ;;  %2326 = vrot.lane.b32.xlu0 %v5294_v17, %s7860_s24  ;;  %1990 = vrot.lane.b32.xlu2 %v5294_v17, %s7918_s3 }
 0x3d1   : > { %v5590_v55 = vpop.permute.xlu2 %2373  ;;  %v5592_v41 = vpop.permute.xlu0 %1644 }
 0x3d2   : > { %8017 = vst [vmem:[#allocation150_spill] sm:$0xff] %v5590_v55 }
 0x3d3   : > { %8018 = vst [vmem:[#allocation151_spill] sm:$0xff] %v5592_v41 }
 0x3d4   : > { %1872 = vrot.lane.b32.xlu1 %v5264_v36, %s7858_s28 }
 0x3d6   : > { %v5596_v53 = vpop.permute.xlu1 %1656 }
 0x3d7   : > { %8019 = vst [vmem:[#allocation152_spill] sm:$0xff] %v5596_v53  ;;  %2328 = vrot.lane.b32.xlu0 %v5343_v6, %s7860_s24  ;;  %2096 = vrot.lane.b32.xlu2 %v5264_v36, %s7925_s23 }
 0x3d9   : > { %v5602_v50 = vpop.permute.xlu2 %1546  ;;  %v1763_v56 = vpop.permute.xlu0 %1762 }
 0x3da   : > { %8020 = vst [vmem:[#allocation153_spill] sm:$0xff] %v5602_v50 }
 0x3dc   : > { %2092 = vrot.lane.b32.xlu1 %v5136_v30, %s7925_s23 }
 0x3de   : > { %v5606_v55 = vpop.permute.xlu1 %1768 }
 0x3df   : > { %8021 = vst [vmem:[#allocation154_spill] sm:$0xff] %v5606_v55  ;;  %1988 = vrot.lane.b32.xlu2 %v5206_v9, %s7918_s3 }
 0x3e1   : > { %v5610_v41 = vpop.permute.xlu2 %1770  ;;  %v5612_v53 = vpop.permute.xlu0 %1982 }
 0x3e2   : > { %8022 = vst [vmem:[#allocation155_spill] sm:$0xff] %v5610_v41  ;;  %v5617_v43 = vsel %vm772_vm6, %v1763_v56, %v5610_v41 }
 0x3e3   : > { %8023 = vst [vmem:[#allocation156_spill] sm:$0xff] %v5612_v53  ;;  %v1667_v53 = vsel %vm735_vm7, %v1643_v57, %v5530_v14 }
 0x3e4   : > { %8024 = vst [vmem:[#allocation157_spill] sm:$0xff] %v5617_v43  ;;  %2210 = vrot.lane.b32.xlu1 %v5373_v54, %s7921_s22  ;;  %v1671_v43 = vsel %vm735_vm7, %v5542_v29, %v1643_v57  ;;  %v1690_v52 = vmul.f32 %v1667_v53, %v4858_v60  ;;  %v1513_v57 = vmul.f32 %v5078_v32, %v5358_v27 }
 0x3e6   : > { %v5621_v50 = vpop.permute.xlu1 %2090 }
 0x3e7   : > { %8025 = vst [vmem:[#allocation158_spill] sm:$0xff] %v5621_v50  ;;  %2106 = vrot.lane.b32.xlu2 %v5460_v47, %s7925_s23 }
 0x3e9   : > { %v5625_v55 = vpop.permute.xlu2 %1882  ;;  %v5627_v2 = vpop.permute.xlu0 %2433 }
 0x3ea   : > { %8026 = vst [vmem:[#allocation159_spill] sm:$0xff] %v5625_v55  ;;  %v1689_v55 = vmul.f32 %v1671_v43, %v4798_v22  ;;  %v1561_v43 = vsel %vm698_vm8, %v5536_v15, %v5312_v0  ;;  %v8078_v15 = vld [vmem:[#allocation139_spill] sm:$0xff] }
 0x3eb   : > { %8027 = vst [vmem:[#allocation160_spill] sm:$0xff] %v5627_v2 }
 0x3ec   : > { %2102 = vrot.lane.b32.xlu1 %v5294_v17, %s7925_s23  ;;  %v1721_v27 = vmul.f32 %v5122_v45, %v1689_v55  ;;  %v1568_v55 = vmul.f32 %v1561_v43, %v4650_v62 }
 0x3ee   : > { %v1531_v41 = vpop.permute.xlu1 %1530 }
 0x3ef   : > { %v1555_v50 = vsel %vm698_vm8, %v1531_v41, %v5517_v4  ;;  %v1559_v2 = vsel %vm698_vm8, %v5471_v61, %v1531_v41  ;;  %2318 = vrot.lane.b32.xlu2 %v5213_v11, %s7860_s24 }
 0x3f0   : > { %v1577_v28 = vmul.f32 %v1559_v2, %v4820_v7  ;;  %v1578_v14 = vmul.f32 %v1555_v50, %v4870_v37  ;;  %v1514_v2 = vmul.f32 %v5078_v32, %v5373_v54  ;;  %v5665_v50 = vmul.f32 %v5084_v25, %v5206_v9 }
 0x3f1   : > { %v5651_v29 = vpop.permute.xlu2 %1758  ;;  %v5653_v4 = vpop.permute.xlu0 %1980  ;;  %v5673_v54 = vmul.f32 %v5084_v25, %v5106_v10 }
 0x3f2   : > { %8028 = vst [vmem:[#allocation161_spill] sm:$0xff] %v5651_v29  ;;  %v1609_v53 = vmul.f32 %v5104_v38, %v1577_v28  ;;  %v1610_v41 = vmul.f32 %v5104_v38, %v1578_v14  ;;  %v5677_v28 = vmul.f32 %v5100_v40, %v5294_v17  ;;  %v1504_v14 = vmul.f32 %v5100_v40, %v5153_v13 }
 0x3f3   : > { %8029 = vst [vmem:[#allocation162_spill] sm:$0xff] %v5653_v4  ;;  %v1722_v4 = vmul.f32 %v5122_v45, %v1690_v52  ;;  %v5684_v52 = vmul.f32 %v5155_v20, %v5343_v6  ;;  %v1552_v17 = vsel %vm698_vm8, %v5287_v59, %v5306_v49  ;;  %v5696_v13 = vmul.f32 %v5078_v32, %v5460_v47 }
 0x3f4   : > { %8030 = vst [vmem:[#allocation163_spill] sm:$0xff] %v5665_v50  ;;  %v1625_v22 = vadd.f32 %v1609_v53, %v1513_v57  ;;  %v1626_v7 = vadd.f32 %v1610_v41, %v1514_v2  ;;  %2208 = vrot.lane.b32.xlu1 %v5264_v36, %s7921_s22  ;;  %v5688_v57 = vmul.f32 %v5155_v20, %v5228_v5 }
 0x3f5   : > { %8031 = vst [vmem:[#allocation164_spill] sm:$0xff] %v5677_v28  ;;  %v5726_v59 = vmul.f32 %v5078_v32, %v5279_v31  ;;  %v5743_v32 = vmul.f32 %v5100_v40, %v5213_v11  ;;  %v5764_v11 = vsel %vm846_vm4, %v5249_v16, %v5257_v18  ;;  %v8048_v40 = vld [vmem:[#allocation129_spill] sm:$0xff] }
 0x3f6   : > { %8032 = vst [vmem:[#allocation165_spill] sm:$0xff] %v5688_v57  ;;  %v1755_v2 = vpop.permute.xlu1 %1754  ;;  %v1737_v10 = vadd.f32 %v1721_v27, %v1625_v22  ;;  %v1738_v53 = vadd.f32 %v1722_v4, %v1626_v7  ;;  %v1673_v22 = vsel %vm735_vm7, %v5483_v1, %v5423_v3  ;;  %v1785_v7 = vsel %vm772_vm6, %v5548_v26, %v5324_v33  ;;  %v8053_v28 = vld [vmem:[#allocation137_spill] sm:$0xff]  ;;  %v8059_v26 = vld [vmem:[#allocation114_spill] sm:$0xff]  ;;  %v8076_v1 = vld [vmem:[#allocation159_spill] sm:$0xff] }
 0x3f7   : > { %v1779_v43 = vsel %vm772_vm6, %v1755_v2, %v1763_v56  ;;  %v1783_v5 = vsel %vm772_vm6, %v5494_v21, %v1755_v2  ;;  %2104 = vrot.lane.b32.xlu2 %v5343_v6, %s7925_s23  ;;  %v5717_v56 = vmul.f32 %v5084_v25, %v5136_v30  ;;  %v2005_v27 = vsel %vm846_vm4, %v5326_v34, %v5351_v48  ;;  %v8051_v34 = vld [vmem:[#allocation89_spill] sm:$0xff]  ;;  %v8060_v57 = vld [vmem:[#allocation10_spill] sm:$0xff] }
 0x3f8   : > { %v1801_v4 = vmul.f32 %v1783_v5, %v4776_v35  ;;  %v1802_v41 = vmul.f32 %v1779_v43, %v4846_v44  ;;  %v1600_v2 = vmul.f32 %v5140_v19, %v1568_v55  ;;  %v1566_v43 = vmul.f32 %v1552_v17, %v4870_v37  ;;  %8034 = vst [vmem:[#allocation167_spill] sm:$0xff] %v5743_v32 }
 0x3f9   : > { %v5728_v5 = vpop.permute.xlu2 %1864  ;;  %v1897_v25 = vsel %vm809_vm5, %v5560_v12, %v5336_v42  ;;  %v2229_v55 = vsel %vm920_vm2, %v5368_v39, %v5366_v58  ;;  %v1680_v31 = vmul.f32 %v1673_v22, %v4560_v46  ;;  %v1792_v17 = vmul.f32 %v1785_v7, %v4497_v51  ;;  %v5747_v48 = vpop.permute.xlu0 %2098  ;;  %v8037_v22 = vld [vmem:[#allocation97_spill] sm:$0xff] }
 0x3fa   : > { %8033 = vst [vmem:[#allocation166_spill] sm:$0xff] %v5728_v5  ;;  %v1833_v35 = vmul.f32 %v5192_v8, %v1801_v4  ;;  %v1834_v33 = vmul.f32 %v5192_v8, %v1802_v41  ;;  %v2016_v5 = vmul.f32 %v2005_v27, %v4424_v63  ;;  %v5752_v4 = vmul.f32 %v5155_v20, %v5264_v36  ;;  %v8038_v27 = vld [vmem:[#allocation15_spill] sm:$0xff]  ;;  %v8042_v58 = vld [vmem:[#allocation133_spill] sm:$0xff] }
 0x3fb   : > { %8035 = vst [vmem:[#allocation168_spill] sm:$0xff] %v5747_v48  ;;  %v1553_v7 = vsel %vm698_vm8, %v8037_v22, %v5399_v24  ;;  %v1616_v36 = vadd.f32 %v1600_v2, %v1504_v14  ;;  %v8044_v14 = vld [vmem:[#allocation94_spill] sm:$0xff]  ;;  %v8045_v2 = vld [vmem:[#allocation116_spill] sm:$0xff] }
 0x3fc   : > { %v5754_v41 = vadd.f32 %v1833_v35, %v1737_v10  ;;  %v5756_v42 = vadd.f32 %v1834_v33, %v1738_v53  ;;  %2100 = vrot.lane.b32.xlu1 %v5206_v9, %s7925_s23  ;;  %v1904_v35 = vmul.f32 %v1897_v25, %v8038_v27  ;;  %v8039_v10 = vld [vmem:[#allocation54_spill] sm:$0xff]  ;;  %v8040_v53 = vld [vmem:[#allocation9_spill] sm:$0xff]  ;;  %v2117_v25 = vsel %vm883_vm3, %v8045_v2, %v8044_v14  ;;  %v8050_v22 = vld [vmem:[#allocation72_spill] sm:$0xff] }
 0x3fd   : > { %v5772_v33 = vmul.f32 %v8039_v10, %v1566_v43  ;;  %v2240_v39 = vmul.f32 %v2229_v55, %v8040_v53  ;;  %v8046_v43 = vld [vmem:[#allocation64_spill] sm:$0xff]  ;;  %v8047_v55 = vld [vmem:[#allocation111_spill] sm:$0xff]  ;;  %v2048_v12 = vmul.f32 %v8050_v22, %v2016_v5  ;;  %v8055_v14 = vld [vmem:[#allocation21_spill] sm:$0xff]  ;;  %v2128_v50 = vmul.f32 %v2117_v25, %v8060_v57 }
 0x3fe   : > { %8036 = vst [vmem:[#allocation169_spill] sm:$0xff] %v5754_v41  ;;  %v8041_v41 = vld [vmem:[#allocation153_spill] sm:$0xff]  ;;  %v5783_v18 = vpop.permute.xlu1 %2365  ;;  %v1712_v20 = vmul.f32 %v8046_v43, %v1680_v31  ;;  %v1554_v3 = vsel %vm698_vm8, %v8048_v40, %v8047_v55  ;;  %v1550_v31 = vsel %vm698_vm8, %v8047_v55, %v8053_v28  ;;  %v8054_v40 = vld [vmem:[#allocation48_spill] sm:$0xff] }
 0x3ff   : > { %v1551_v48 = vsel %vm698_vm8, %v8042_v58, %v8041_v41  ;;  %v1563_v16 = vsel %vm698_vm8, %v8041_v41, %v5471_v61  ;;  %8043 = vst [vmem:[#allocation54_spill] sm:$0xff] %v5783_v18  ;;  %v8049_v58 = vld [vmem:[#allocation58_spill] sm:$0xff]  ;;  %v1570_v18 = vmul.f32 %v1553_v7, %v4870_v37  ;;  %2316 = vrot.lane.b32.xlu2 %v5136_v30, %s7860_s24  ;;  %v8066_v25 = vld [vmem:[#allocation92_spill] sm:$0xff] }
 0x400   : > { %v1824_v0 = vmul.f32 %v8049_v58, %v1792_v17  ;;  %v8052_v61 = vld [vmem:[#allocation106_spill] sm:$0xff]  ;;  %v1728_v2 = vadd.f32 %v1712_v20, %v1616_v36  ;;  %v1936_v17 = vmul.f32 %v8054_v40, %v1904_v35  ;;  %v1576_v5 = vmul.f32 %v1563_v16, %v4650_v62  ;;  %v8062_v16 = vld [vmem:[#allocation119_spill] sm:$0xff]  ;;  %v8063_v36 = vld [vmem:[#allocation105_spill] sm:$0xff] }
 0x401   : > { %v1672_v41 = vsel %vm735_vm7, %v8052_v61, %v8051_v34  ;;  %v1579_v22 = vmul.f32 %v1551_v48, %v8055_v14  ;;  %v5810_v58 = vpop.permute.xlu2 %2423  ;;  %v8057_v34 = vld [vmem:[#allocation68_spill] sm:$0xff]  ;;  %v8058_v7 = vld [vmem:[#allocation82_spill] sm:$0xff]  ;;  %v1574_v30 = vmul.f32 %v1554_v3, %v4870_v37  ;;  %v2341_v48 = vsel %vm957_vm0, %v8063_v36, %v8062_v16  ;;  %v8067_v40 = vld [vmem:[#allocation109_spill] sm:$0xff]  ;;  %v5855_v16 = vpop.permute.xlu0 %1868 }
 0x402   : > { %8056 = vst [vmem:[#allocation153_spill] sm:$0xff] %v5810_v58  ;;  %v5813_v29 = vmul.f32 %v8057_v34, %v2240_v39  ;;  %v1560_v55 = vsel %vm698_vm8, %v8059_v26, %v8058_v7  ;;  %v5822_v20 = vmul.f32 %v1672_v41, %v4560_v46  ;;  %v1840_v35 = vadd.f32 %v1824_v0, %v1728_v2  ;;  %v8064_v39 = vld [vmem:[#allocation155_spill] sm:$0xff]  ;;  %v8068_v41 = vld [vmem:[#allocation110_spill] sm:$0xff] }
 0x403   : > { %v1787_v34 = vsel %vm772_vm6, %v8064_v39, %v5494_v21  ;;  %v5833_v7 = vmul.f32 %v5140_v19, %v1570_v18  ;;  %v5839_v3 = vsel %vm772_vm6, %v8067_v40, %v8066_v25  ;;  %v8069_v37 = vld [vmem:[#allocation102_spill] sm:$0xff]  ;;  %v1575_v0 = vmul.f32 %v1550_v31, %v8055_v14  ;;  %v8072_v19 = vld [vmem:[#allocation79_spill] sm:$0xff] }
 0x404   : > { %8061 = vst [vmem:[#allocation133_spill] sm:$0xff] %v5822_v20  ;;  %v5845_v36 = vsel %vm735_vm7, %v8069_v37, %v8068_v41  ;;  %2218 = vrot.lane.b32.xlu1 %v5460_v47, %s7921_s22  ;;  %v5851_v21 = vmul.f32 %v1560_v55, %v4650_v62  ;;  %v1952_v18 = vadd.f32 %v1936_v17, %v1840_v35  ;;  %v8070_v25 = vld [vmem:[#allocation50_spill] sm:$0xff]  ;;  %v5861_v37 = vld [vmem:[%s7856_s25 + $0x20] ss:$0 sm:$0xff] }
 0x405   : > { %8065 = vst [vmem:[#allocation111_spill] sm:$0xff] %v5833_v7  ;;  %v1608_v2 = vmul.f32 %v5104_v38, %v1576_v5  ;;  %v1611_v39 = vmul.f32 %v5104_v38, %v1579_v22  ;;  %v2160_v40 = vmul.f32 %v8070_v25, %v2128_v50  ;;  %v5864_v31 = vmul.f32 %v5861_v37, %v2341_v48  ;;  %v8073_v5 = vld [vmem:[#allocation18_spill] sm:$0xff]  ;;  %v8074_v41 = vld [vmem:[#allocation157_spill] sm:$0xff]  ;;  %v8075_v22 = vld [vmem:[#allocation131_spill] sm:$0xff] }
 0x406   : > { %8071 = vst [vmem:[#allocation137_spill] sm:$0xff] %v5861_v37  ;;  %v1606_v55 = vmul.f32 %v8072_v19, %v1574_v30  ;;  %v1800_v17 = vmul.f32 %v1787_v34, %v4497_v51  ;;  %v1659_v35 = vpop.permute.xlu1 %1658  ;;  %v1803_v38 = vmul.f32 %v8074_v41, %v8073_v5  ;;  %v1899_v50 = vsel %vm809_vm5, %v8076_v1, %v8075_v22  ;;  %v8077_v25 = vld [vmem:[#allocation136_spill] sm:$0xff]  ;;  %v8080_v61 = vld [vmem:[#allocation146_spill] sm:$0xff]  ;;  %v8081_v7 = vld [vmem:[#allocation19_spill] sm:$0xff] }
 0x407   : > { %v1663_v24 = vsel %vm735_vm7, %v8077_v25, %v1659_v35  ;;  %v1675_v48 = vsel %vm735_vm7, %v1659_v35, %v8078_v15  ;;  %v1607_v30 = vmul.f32 %v8072_v19, %v1575_v0  ;;  %v8079_v34 = vld [vmem:[#allocation140_spill] sm:$0xff]  ;;  %2216 = vrot.lane.b32.xlu2 %v5343_v6, %s7921_s22  ;;  %v2064_v22 = vadd.f32 %v2048_v12, %v1952_v18  ;;  %v8082_v25 = vld [vmem:[#allocation143_spill] sm:$0xff]  ;;  %v8083_v62 = vld [vmem:[#allocation149_spill] sm:$0xff] }
 0x408   : > { %v2007_v41 = vsel %vm846_vm4, %v8080_v61, %v8079_v34  ;;  %v1688_v43 = vmul.f32 %v1675_v48, %v4560_v46  ;;  %v1691_v32 = vmul.f32 %v1663_v24, %v8081_v7  ;;  %v2231_v15 = vsel %vm920_vm2, %v8083_v62, %v8082_v25  ;;  %v8084_v19 = vld [vmem:[#allocation158_spill] sm:$0xff] }
 0x409   : > { %v1624_v0 = vadd.f32 %v1608_v2, %v5726_v59  ;;  %v1627_v35 = vadd.f32 %v1611_v39, %v5696_v13  ;;  %v8085_v20 = vld [vmem:[#allocation142_spill] sm:$0xff]  ;;  %v1912_v24 = vmul.f32 %v1899_v50, %v8038_v27  ;;  %v1761_v12 = vpop.permute.xlu2 %1760  ;;  %v1622_v18 = vadd.f32 %v1606_v55, %v5752_v4  ;;  %v8087_v50 = vld [vmem:[#allocation135_spill] sm:$0xff] }
 0x40a   : > { %v2119_v48 = vsel %vm883_vm3, %v8085_v20, %v8084_v19  ;;  %v1720_v34 = vmul.f32 %v5122_v45, %v1688_v43  ;;  %v1723_v6 = vmul.f32 %v5122_v45, %v1691_v32  ;;  %v2024_v62 = vmul.f32 %v2007_v41, %v4424_v63  ;;  %v8086_v25 = vld [vmem:[#allocation154_spill] sm:$0xff]  ;;  %v8088_v55 = vld [vmem:[#allocation147_spill] sm:$0xff] }
 0x40b   : > { %v1832_v59 = vmul.f32 %v5192_v8, %v1800_v17  ;;  %v1835_v13 = vmul.f32 %v5192_v8, %v1803_v38  ;;  %v1774_v20 = vsel %vm772_vm6, %v1761_v12, %v8086_v25  ;;  %v1778_v43 = vsel %vm772_vm6, %v8087_v50, %v1761_v12  ;;  %v8089_v17 = vld [vmem:[#allocation134_spill] sm:$0xff] }
 0x40c   : > { %v1736_v2 = vadd.f32 %v1720_v34, %v1624_v0  ;;  %v1739_v39 = vadd.f32 %v1723_v6, %v1627_v35  ;;  %2212 = vrot.lane.b32.xlu1 %v5206_v9, %s7921_s22  ;;  %v1623_v45 = vadd.f32 %v1607_v30, %v5684_v52  ;;  %v2248_v32 = vmul.f32 %v2231_v15, %v8040_v53  ;;  %v8090_v34 = vld [vmem:[#allocation70_spill] sm:$0xff]  ;;  %v5924_v52 = vpop.permute.xlu0 %1994  ;;  %v8091_v30 = vld [vmem:[#allocation152_spill] sm:$0xff] }
 0x40d   : > { %v2136_v4 = vmul.f32 %v2119_v48, %v8060_v57  ;;  %v2176_v8 = vadd.f32 %v2160_v40, %v2064_v22  ;;  %v2343_v38 = vsel %vm957_vm0, %v8089_v17, %v8088_v55  ;;  %v1944_v41 = vmul.f32 %v8090_v34, %v1912_v24  ;;  %v8092_v22 = vld [vmem:[#allocation128_spill] sm:$0xff]  ;;  %v8093_v48 = vld [vmem:[#allocation65_spill] sm:$0xff] }
 0x40e   : > { %v1848_v0 = vadd.f32 %v1832_v59, %v1736_v2  ;;  %v1649_v35 = vpop.permute.xlu1 %1648  ;;  %v1851_v6 = vadd.f32 %v1835_v13, %v1739_v39  ;;  %v1798_v12 = vmul.f32 %v1778_v43, %v4846_v44  ;;  %v1799_v50 = vmul.f32 %v1774_v20, %v8073_v5  ;;  %v8094_v2 = vld [vmem:[#allocation53_spill] sm:$0xff]  ;;  %v8095_v43 = vld [vmem:[#allocation78_spill] sm:$0xff] }
 0x40f   : > { %v1662_v40 = vsel %vm735_vm7, %v1649_v35, %v8091_v30  ;;  %v1666_v15 = vsel %vm735_vm7, %v8092_v22, %v1649_v35  ;;  %v2056_v17 = vmul.f32 %v8093_v48, %v2024_v62  ;;  %2324 = vrot.lane.b32.xlu2 %v5206_v9, %s7860_s24  ;;  %v2360_v20 = vmul.f32 %v5861_v37, %v2343_v38  ;;  %v8097_v9 = vld [vmem:[#allocation60_spill] sm:$0xff] }
 0x410   : > { %v1960_v24 = vadd.f32 %v1944_v41, %v1848_v0  ;;  %v1686_v59 = vmul.f32 %v1666_v15, %v4858_v60  ;;  %v1687_v13 = vmul.f32 %v1662_v40, %v8081_v7  ;;  %v2280_v39 = vmul.f32 %v8094_v2, %v2248_v32  ;;  %v8096_v41 = vld [vmem:[#allocation66_spill] sm:$0xff] }
 0x411   : > { %v2168_v55 = vmul.f32 %v8095_v43, %v2136_v4  ;;  %v2288_v19 = vadd.f32 %v5813_v29, %v2176_v8  ;;  %v2011_v62 = vsel %vm846_vm4, %v5924_v52, %v8080_v61  ;;  %v1875_v40 = vpop.permute.xlu2 %1874  ;;  %v1830_v15 = vmul.f32 %v8097_v9, %v1798_v12  ;;  %v8098_v29 = vld [vmem:[#allocation148_spill] sm:$0xff]  ;;  %v8100_v12 = vld [vmem:[#allocation71_spill] sm:$0xff]  ;;  %v8102_v43 = vld [vmem:[#allocation14_spill] sm:$0xff] }
 0x412   : > { %v2072_v53 = vadd.f32 %v2056_v17, %v1960_v24  ;;  %v1718_v0 = vmul.f32 %v8096_v41, %v1686_v59  ;;  %v1719_v35 = vmul.f32 %v8096_v41, %v1687_v13  ;;  %v1831_v38 = vmul.f32 %v8097_v9, %v1799_v50  ;;  %v8099_v24 = vld [vmem:[#allocation33_spill] sm:$0xff] }
 0x413   : > { %v1887_v32 = vsel %vm809_vm5, %v1875_v40, %v8076_v1  ;;  %v1891_v4 = vsel %vm809_vm5, %v8098_v29, %v1875_v40  ;;  %v2384_v13 = vmul.f32 %v8100_v12, %v5864_v31  ;;  %v8101_v50 = vld [vmem:[#allocation57_spill] sm:$0xff]  ;;  %v2027_v22 = vmul.f32 %v2011_v62, %v8102_v43 }
 0x414   : > { %v2184_v8 = vadd.f32 %v2168_v55, %v2072_v53  ;;  %v1734_v17 = vadd.f32 %v1718_v0, %v1622_v18  ;;  %v1735_v61 = vadd.f32 %v1719_v35, %v1623_v45  ;;  %v1914_v59 = vmul.f32 %v1891_v4, %v8099_v24  ;;  %2330 = vrot.lane.b32.xlu1 %v5460_v47, %s7860_s24  ;;  %v8103_v1 = vld [vmem:[#allocation17_spill] sm:$0xff]  ;;  %v8105_v35 = vld [vmem:[#allocation122_spill] sm:$0xff] }
 0x415   : > { %v2392_v2 = vmul.f32 %v8101_v50, %v2360_v20  ;;  %v1915_v37 = vmul.f32 %v1887_v32, %v8103_v1  ;;  %v1788_v47 = vmul.f32 %v5839_v3, %v4497_v51  ;;  %v1596_v31 = vmul.f32 %v8039_v10, %v5851_v21  ;;  %v8111_v4 = vld [vmem:[#allocation133_spill] sm:$0xff]  ;;  %v8131_v50 = vld [vmem:[#allocation126_spill] sm:$0xff] }
 0x416   : > { %v1946_v5 = vmul.f32 %v8090_v34, %v1914_v59  ;;  %v5964_v40 = vpop.permute.xlu1 %1860  ;;  %v2296_v53 = vadd.f32 %v2280_v39, %v2184_v8  ;;  %v5966_v18 = vadd.f32 %v1830_v15, %v1734_v17  ;;  %v5968_v45 = vadd.f32 %v1831_v38, %v1735_v61  ;;  %v8112_v8 = vld [vmem:[#allocation47_spill] sm:$0xff]  ;;  %v8113_v61 = vld [vmem:[#allocation24_spill] sm:$0xff] }
 0x417   : > { %v1947_v55 = vmul.f32 %v8090_v34, %v1915_v37  ;;  %v5979_v20 = vsel %vm809_vm5, %v5964_v40, %v5855_v16  ;;  %v1548_v39 = vsel %vm698_vm8, %v5306_v49, %v8059_v26  ;;  %v2400_v62 = vadd.f32 %v2384_v13, %v2288_v19  ;;  %v8106_v26 = vld [vmem:[#allocation160_spill] sm:$0xff] }
 0x418   : > { %8104 = vst [vmem:[#allocation114_spill] sm:$0xff] %v5968_v45  ;;  %v1962_v0 = vadd.f32 %v1946_v5, %v5756_v42  ;;  %v2408_v3 = vadd.f32 %v2392_v2, %v2296_v53  ;;  %v1682_v21 = vmul.f32 %v5845_v36, %v4858_v60  ;;  %v1562_v37 = vsel %vm698_vm8, %v8053_v28, %v8105_v35  ;;  %v8109_v2 = vld [vmem:[#allocation95_spill] sm:$0xff] }
 0x419   : > { %v2059_v15 = vmul.f32 %v8093_v48, %v2027_v22  ;;  %v1963_v38 = vadd.f32 %v1947_v55, %v1851_v6  ;;  %v5995_v32 = vmul.f32 %v5764_v11, %v4424_v63  ;;  %v5999_v19 = vadd.f32 %v5772_v33, %v5717_v56  ;;  %v6002_v42 = vpop.permute.xlu2 %2094  ;;  %v8107_v22 = vld [vmem:[#allocation117_spill] sm:$0xff]  ;;  %v8110_v56 = vld [vmem:[#allocation80_spill] sm:$0xff]  ;;  %v8116_v53 = vld [vmem:[#allocation111_spill] sm:$0xff] }
 0x41a   : > { %v2440_v49 = vadd.f32 %v5810_v58, %v2400_v62  ;;  %v2448_v36 = vadd.f32 %v8106_v26, %v2408_v3  ;;  %v1567_v5 = vmul.f32 %v1548_v39, %v8055_v14  ;;  %v1612_v28 = vadd.f32 %v1596_v31, %v5673_v54  ;;  %v8115_v54 = vld [vmem:[#allocation167_spill] sm:$0xff]  ;;  %v8117_v55 = vld [vmem:[#allocation69_spill] sm:$0xff]  ;;  %v8118_v39 = vld [vmem:[#allocation64_spill] sm:$0xff] }
 0x41b   : > { %v1674_v11 = vsel %vm735_vm7, %v8091_v30, %v8107_v22  ;;  %v6011_v6 = vadd.f32 %v2059_v15, %v1963_v38  ;;  %v6017_v33 = vsel %vm883_vm3, %v8110_v56, %v8109_v2  ;;  %v1708_v17 = vmul.f32 %v8112_v8, %v8111_v4  ;;  %v8119_v3 = vld [vmem:[#allocation73_spill] sm:$0xff]  ;;  %v8120_v15 = vld [vmem:[#allocation124_spill] sm:$0xff]  ;;  %v8122_v56 = vld [vmem:[#allocation151_spill] sm:$0xff] }
 0x41c   : > { %v1572_v59 = vmul.f32 %v1562_v37, %v8113_v61  ;;  %v6022_v13 = vmul.f32 %v2448_v36, %v2440_v49  ;;  %v1618_v31 = vadd.f32 %v8116_v53, %v8115_v54  ;;  %v1820_v30 = vmul.f32 %v8117_v55, %v1788_v47  ;;  %v8123_v37 = vld [vmem:[#allocation101_spill] sm:$0xff]  ;;  %v8124_v47 = vld [vmem:[#allocation120_spill] sm:$0xff]  ;;  %v8126_v45 = vld [vmem:[#allocation107_spill] sm:$0xff] }
 0x41d   : > { %8108 = vst [vmem:[#allocation155_spill] sm:$0xff] %v6011_v6  ;;  %v1714_v62 = vmul.f32 %v8118_v39, %v1682_v21  ;;  %v1896_v38 = vsel %vm809_vm5, %v8120_v15, %v8119_v3  ;;  %v8121_v6 = vld [vmem:[#allocation106_spill] sm:$0xff]  ;;  %v1664_v49 = vsel %vm735_vm7, %v8123_v37, %v8122_v56  ;;  %v1684_v36 = vmul.f32 %v1674_v11, %v4560_v46  ;;  %v8129_v58 = vld [vmem:[#allocation79_spill] sm:$0xff]  ;;  %v8150_v3 = vld [vmem:[#allocation49_spill] sm:$0xff] }
 0x41e   : > { %8114 = vst [vmem:[#allocation157_spill] sm:$0xff] %v6022_v13  ;;  %v1660_v4 = vsel %vm735_vm7, %v8122_v56, %v8121_v6  ;;  %v1786_v21 = vsel %vm772_vm6, %v8086_v25, %v8124_v47  ;;  %v6045_v54 = vpop.permute.xlu1 %1986  ;;  %2482 = vmatpush.msrb.mxu2 %v6022_v13  ;;  %v1599_v53 = vmul.f32 %v8039_v10, %v1567_v5  ;;  %v8125_v6 = vld [vmem:[#allocation138_spill] sm:$0xff]  ;;  %v8127_v56 = vld [vmem:[#allocation123_spill] sm:$0xff] }
 0x41f   : > { %v1724_v61 = vadd.f32 %v1708_v17, %v1612_v28  ;;  %v1549_v26 = vsel %vm698_vm8, %v8126_v45, %v8125_v6  ;;  %v1999_v11 = vsel %vm846_vm4, %v6045_v54, %v5924_v52  ;;  %v8128_v46 = vld [vmem:[#allocation118_spill] sm:$0xff]  ;;  %v1900_v13 = vmul.f32 %v1896_v38, %v8038_v27 }
 0x420   : > { %v2118_v25 = vsel %vm883_vm3, %v8128_v46, %v8127_v56  ;;  %v1604_v5 = vmul.f32 %v8129_v58, %v1572_v59  ;;  %v8130_v28 = vld [vmem:[#allocation30_spill] sm:$0xff]  ;;  %v1678_v6 = vmul.f32 %v1664_v49, %v4858_v60  ;;  %v1679_v52 = vmul.f32 %v1660_v4, %v8081_v7  ;;  %v8134_v56 = vld [vmem:[#allocation163_spill] sm:$0xff]  ;;  %v8135_v49 = vld [vmem:[#allocation112_spill] sm:$0xff] }
 0x421   : > { %v2026_v17 = vmul.f32 %v1999_v11, %v8130_v28  ;;  %v8132_v2 = vld [vmem:[#allocation110_spill] sm:$0xff]  ;;  %v1796_v12 = vmul.f32 %v1786_v21, %v4497_v51  ;;  %v6071_v47 = vadd.f32 %v1714_v62, %v1618_v31  ;;  %v1571_v46 = vmul.f32 %v1549_v26, %v8055_v14  ;;  %v6076_v11 = vpop.permute.xlu2 %2428  ;;  %v8136_v4 = vld [vmem:[#allocation145_spill] sm:$0xff]  ;;  %v8137_v62 = vld [vmem:[#allocation63_spill] sm:$0xff] }
 0x422   : > { %v1661_v45 = vsel %vm735_vm7, %v8132_v2, %v8131_v50  ;;  %v1716_v38 = vmul.f32 %v8096_v41, %v1684_v36  ;;  %8133 = vst [vmem:[#allocation159_spill] sm:$0xff] %v6076_v11  ;;  %v1615_v58 = vadd.f32 %v1599_v53, %v8134_v56  ;;  %v6080_v50 = vmul.f32 %v2118_v25, %v8060_v57  ;;  %v8138_v36 = vld [vmem:[#allocation165_spill] sm:$0xff]  ;;  %v8141_v25 = vld [vmem:[#allocation127_spill] sm:$0xff] }
 0x423   : > { %v2058_v59 = vmul.f32 %v8093_v48, %v2026_v17  ;;  %v1836_v2 = vadd.f32 %v1820_v30, %v1724_v61  ;;  %v1898_v31 = vsel %vm809_vm5, %v8136_v4, %v8135_v49  ;;  %v1932_v21 = vmul.f32 %v8137_v62, %v1900_v13  ;;  %v8140_v30 = vld [vmem:[#allocation115_spill] sm:$0xff]  ;;  %v8149_v49 = vld [vmem:[#allocation164_spill] sm:$0xff] }
 0x424   : > { %v1683_v26 = vmul.f32 %v1661_v45, %v8081_v7  ;;  %v1620_v14 = vadd.f32 %v1604_v5, %v8138_v36  ;;  %v1710_v60 = vmul.f32 %v8112_v8, %v1678_v6  ;;  %v1711_v53 = vmul.f32 %v8112_v8, %v1679_v52  ;;  %v8142_v45 = vld [vmem:[#allocation59_spill] sm:$0xff]  ;;  %v8143_v36 = vld [vmem:[#allocation141_spill] sm:$0xff] }
 0x425   : > { %v6089_v17 = vadd.f32 %v2058_v59, %v1962_v0  ;;  %v1828_v56 = vmul.f32 %v8097_v9, %v1796_v12  ;;  %v1884_v61 = vsel %vm809_vm5, %v5855_v16, %v8120_v15  ;;  %v2006_v13 = vsel %vm846_vm4, %v8141_v25, %v8140_v30  ;;  %v8144_v52 = vld [vmem:[#allocation161_spill] sm:$0xff]  ;;  %v8145_v7 = vld [vmem:[#allocation103_spill] sm:$0xff] }
 0x426   : > { %v1603_v5 = vmul.f32 %v8142_v45, %v1571_v46  ;;  %v1908_v0 = vmul.f32 %v1898_v31, %v8038_v27  ;;  %v1732_v59 = vadd.f32 %v1716_v38, %v1620_v14  ;;  %v1757_v6 = vpop.permute.xlu1 %1756  ;;  %v1773_v12 = vsel %vm772_vm6, %v8144_v52, %v8143_v36  ;;  %v8146_v15 = vld [vmem:[#allocation109_spill] sm:$0xff]  ;;  %v8148_v36 = vld [vmem:[#allocation18_spill] sm:$0xff] }
 0x427   : > { %8139 = vst [vmem:[#allocation136_spill] sm:$0xff] %v6089_v17  ;;  %v1777_v16 = vsel %vm772_vm6, %v8145_v7, %v8144_v52  ;;  %v1772_v51 = vsel %vm772_vm6, %v1757_v6, %v8146_v15  ;;  %v8147_v17 = vld [vmem:[#allocation88_spill] sm:$0xff]  ;;  %v1903_v14 = vmul.f32 %v1884_v61, %v8103_v1  ;;  %v1902_v38 = vmul.f32 %v5979_v20, %v8099_v24 }
 0x428   : > { %v1776_v46 = vsel %vm772_vm6, %v8147_v17, %v1757_v6  ;;  %v1791_v27 = vmul.f32 %v1772_v51, %v8148_v36  ;;  %v2020_v25 = vmul.f32 %v2006_v13, %v4424_v63  ;;  %v1726_v52 = vadd.f32 %v1710_v60, %v5999_v19  ;;  %v6132_v63 = vpop.permute.xlu0 %2206 }
 0x429   : > { %v1790_v31 = vmul.f32 %v1776_v46, %v4846_v44  ;;  %v1727_v4 = vadd.f32 %v1711_v53, %v1615_v58  ;;  %v1844_v9 = vadd.f32 %v1828_v56, %v1732_v59  ;;  %v1794_v15 = vmul.f32 %v1777_v16, %v4846_v44  ;;  %v1991_v30 = vpop.permute.xlu2 %1990  ;;  %v8151_v56 = vld [vmem:[#allocation67_spill] sm:$0xff]  ;;  %v8165_v44 = vld [vmem:[#allocation104_spill] sm:$0xff] }
 0x42a   : > { %v1795_v41 = vmul.f32 %v1773_v12, %v8148_v36  ;;  %v1823_v61 = vmul.f32 %v8117_v55, %v1791_v27  ;;  %v1948_v20 = vadd.f32 %v1932_v21, %v1836_v2  ;;  %v1715_v46 = vmul.f32 %v8118_v39, %v1683_v26  ;;  %v8152_v27 = vld [vmem:[#allocation156_spill] sm:$0xff]  ;;  %v8153_v21 = vld [vmem:[#allocation91_spill] sm:$0xff]  ;;  %v8154_v26 = vld [vmem:[#allocation58_spill] sm:$0xff] }
 0x42b   : > { %v1822_v6 = vmul.f32 %v8117_v55, %v1790_v31  ;;  %v1619_v51 = vadd.f32 %v1603_v5, %v8149_v49  ;;  %v1940_v13 = vmul.f32 %v8150_v3, %v1908_v0  ;;  %v1935_v60 = vmul.f32 %v8137_v62, %v1903_v14 }
 0x42c   : > { %v1934_v58 = vmul.f32 %v8137_v62, %v1902_v38  ;;  %v1839_v53 = vadd.f32 %v1823_v61, %v1727_v4  ;;  %v2052_v59 = vmul.f32 %v8151_v56, %v2020_v25  ;;  %v1997_v2 = vsel %vm846_vm4, %v8152_v27, %v1991_v30  ;;  %v8157_v4 = vld [vmem:[#allocation132_spill] sm:$0xff]  ;;  %v8158_v25 = vld [vmem:[#allocation125_spill] sm:$0xff] }
 0x42d   : > { %v1838_v19 = vadd.f32 %v1822_v6, %v1726_v52  ;;  %v1956_v12 = vadd.f32 %v1940_v13, %v1844_v9  ;;  %v2009_v49 = vsel %vm846_vm4, %v1991_v30, %v8153_v21  ;;  %v1826_v5 = vmul.f32 %v8154_v26, %v1794_v15  ;;  %v8159_v52 = vld [vmem:[#allocation144_spill] sm:$0xff] }
 0x42e   : > { %v1827_v0 = vmul.f32 %v8154_v26, %v1795_v41  ;;  %v1871_v16 = vpop.permute.xlu1 %1870  ;;  %v6147_v38 = vadd.f32 %v1935_v60, %v1839_v53  ;;  %v2230_v9 = vsel %vm920_vm2, %v8158_v25, %v8157_v4  ;;  %v1731_v31 = vadd.f32 %v1715_v46, %v1619_v51  ;;  %v8160_v30 = vld [vmem:[#allocation108_spill] sm:$0xff]  ;;  %v8162_v51 = vld [vmem:[#allocation86_spill] sm:$0xff]  ;;  %v8172_v4 = vld [vmem:[#allocation121_spill] sm:$0xff] }
 0x42f   : > { %v6145_v14 = vadd.f32 %v1934_v58, %v1838_v19  ;;  %v1885_v6 = vsel %vm809_vm5, %v1871_v16, %v8159_v52  ;;  %v1889_v15 = vsel %vm809_vm5, %v8160_v30, %v1871_v16  ;;  %v2018_v41 = vmul.f32 %v1997_v2, %v8130_v28  ;;  %v8161_v58 = vld [vmem:[#allocation75_spill] sm:$0xff]  ;;  %v8163_v53 = vld [vmem:[#allocation98_spill] sm:$0xff] }
 0x430   : > { %8156 = vst [vmem:[#allocation146_spill] sm:$0xff] %v6147_v38  ;;  %v2019_v61 = vmul.f32 %v2009_v49, %v8102_v43  ;;  %v1906_v13 = vmul.f32 %v1889_v15, %v8099_v24  ;;  %v1907_v60 = vmul.f32 %v1885_v6, %v8103_v1  ;;  %v2044_v19 = vmul.f32 %v8161_v58, %v5995_v32  ;;  %v8164_v49 = vld [vmem:[#allocation48_spill] sm:$0xff]  ;;  %v8166_v32 = vld [vmem:[#allocation85_spill] sm:$0xff]  ;;  %v6187_v43 = vpop.permute.xlu0 %1992 }
 0x431   : > { %8155 = vst [vmem:[#allocation139_spill] sm:$0xff] %v6145_v14  ;;  %v2124_v46 = vmul.f32 %v6017_v33, %v8060_v57  ;;  %v2228_v21 = vsel %vm920_vm2, %v8163_v53, %v8162_v51  ;;  %v2068_v16 = vadd.f32 %v2052_v59, %v1956_v12  ;;  %v1842_v2 = vadd.f32 %v1826_v5, %v6071_v47  ;;  %v6174_v6 = vpop.permute.xlu2 %2096  ;;  %v8167_v57 = vld [vmem:[#allocation81_spill] sm:$0xff]  ;;  %v8169_v12 = vld [vmem:[#allocation72_spill] sm:$0xff] }
 0x432   : > { %v1843_v52 = vadd.f32 %v1827_v0, %v1731_v31  ;;  %v1938_v36 = vmul.f32 %v8164_v49, %v1906_v13  ;;  %v1939_v15 = vmul.f32 %v8164_v49, %v1907_v60  ;;  %v2340_v33 = vsel %vm957_vm0, %v8166_v32, %v8165_v44  ;;  %v8168_v53 = vld [vmem:[#allocation9_spill] sm:$0xff]  ;;  %v8170_v13 = vld [vmem:[#allocation52_spill] sm:$0xff]  ;;  %v8171_v32 = vld [vmem:[#allocation130_spill] sm:$0xff] }
 0x433   : > { %v2164_v38 = vmul.f32 %v8167_v57, %v6080_v50  ;;  %v2060_v14 = vadd.f32 %v2044_v19, %v1948_v20  ;;  %v2244_v59 = vmul.f32 %v2230_v9, %v8168_v53  ;;  %v2050_v47 = vmul.f32 %v8169_v12, %v2018_v41  ;;  %v8175_v19 = vld [vmem:[#allocation84_spill] sm:$0xff] }
 0x434   : > { %v2051_v5 = vmul.f32 %v8169_v12, %v2019_v61  ;;  %v1954_v0 = vadd.f32 %v1938_v36, %v1842_v2  ;;  %v1955_v31 = vadd.f32 %v1939_v15, %v1843_v52  ;;  %v2156_v60 = vmul.f32 %v8170_v13, %v2124_v46  ;;  %v8174_v36 = vld [vmem:[#allocation137_spill] sm:$0xff] }
 0x435   : > { %v2236_v25 = vmul.f32 %v2228_v21, %v8168_v53  ;;  %v2180_v1 = vadd.f32 %v2164_v38, %v2068_v16  ;;  %v2342_v50 = vsel %vm957_vm0, %v8172_v4, %v8171_v32  ;;  %v2348_v61 = vmul.f32 %v8174_v36, %v2340_v33  ;;  %v8176_v21 = vld [vmem:[#allocation55_spill] sm:$0xff]  ;;  %v8177_v16 = vld [vmem:[#allocation54_spill] sm:$0xff] }
 0x436   : > { %v6193_v20 = vpop.permute.xlu1 %1984  ;;  %v6195_v9 = vadd.f32 %v2050_v47, %v1954_v0  ;;  %v6197_v41 = vadd.f32 %v2051_v5, %v1955_v31  ;;  %v2276_v46 = vmul.f32 %v8175_v19, %v2244_v59  ;;  %v2172_v2 = vadd.f32 %v2156_v60, %v2060_v14  ;;  %v8179_v4 = vld [vmem:[#allocation150_spill] sm:$0xff]  ;;  %v8180_v0 = vld [vmem:[#allocation97_spill] sm:$0xff]  ;;  %v8181_v5 = vld [vmem:[#allocation87_spill] sm:$0xff] }
 0x437   : > { %v2268_v52 = vmul.f32 %v8176_v21, %v2236_v25  ;;  %v2356_v38 = vmul.f32 %v8174_v36, %v2342_v50  ;;  %v2380_v15 = vmul.f32 %v8177_v16, %v2348_v61  ;;  %v1557_v33 = vsel %vm698_vm8, %v8181_v5, %v8180_v0  ;;  %v8182_v14 = vld [vmem:[#allocation102_spill] sm:$0xff]  ;;  %v8183_v60 = vld [vmem:[#allocation113_spill] sm:$0xff]  ;;  %v8190_v5 = vld [vmem:[#allocation83_spill] sm:$0xff] }
 0x438   : > { %8173 = vst [vmem:[#allocation154_spill] sm:$0xff] %v6197_v41  ;;  %v2292_v53 = vadd.f32 %v2276_v46, %v2180_v1  ;;  %v1669_v25 = vsel %vm735_vm7, %v8183_v60, %v8182_v14  ;;  %v8185_v1 = vld [vmem:[#allocation32_spill] sm:$0xff]  ;;  %v6219_v46 = vpop.permute.xlu0 %2204  ;;  %v8193_v14 = vld [vmem:[#allocation51_spill] sm:$0xff] }
 0x439   : > { %v6204_v13 = vpop.permute.xlu2 %1988  ;;  %v2388_v32 = vmul.f32 %v8179_v4, %v2356_v38  ;;  %v2284_v47 = vadd.f32 %v2268_v52, %v2172_v2  ;;  %v1569_v36 = vmul.f32 %v1557_v33, %v8185_v1  ;;  %v8186_v52 = vld [vmem:[#allocation31_spill] sm:$0xff]  ;;  %v8191_v33 = vld [vmem:[#allocation82_spill] sm:$0xff] }
 0x43a   : > { %8178 = vst [vmem:[#allocation70_spill] sm:$0xff] %v6204_v13  ;;  %v1681_v38 = vmul.f32 %v1669_v25, %v8186_v52  ;;  %v8209_v13 = vld [vmem:[#allocation129_spill] sm:$0xff] }
 0x43b   : > { %v2404_v31 = vadd.f32 %v2388_v32, %v2292_v53  ;;  %v2396_v59 = vadd.f32 %v2380_v15, %v2284_v47  ;;  %v1601_v32 = vmul.f32 %v8142_v45, %v1569_v36  ;;  %v8189_v15 = vld [vmem:[#allocation90_spill] sm:$0xff]  ;;  %v1998_v45 = vsel %vm846_vm4, %v6193_v20, %v6187_v43  ;;  %v8194_v36 = vld [vmem:[#allocation29_spill] sm:$0xff] }
 0x43c   : > { %v1781_v47 = vsel %vm772_vm6, %v8189_v15, %v8145_v7  ;;  %v1713_v25 = vmul.f32 %v8118_v39, %v1681_v38  ;;  %v8195_v15 = vld [vmem:[#allocation93_spill] sm:$0xff] }
 0x43d   : > { %v2444_v61 = vadd.f32 %v6076_v11, %v2404_v31  ;;  %v1556_v31 = vsel %vm698_vm8, %v8191_v33, %v8190_v5  ;;  %v1893_v5 = vsel %vm809_vm5, %v8195_v15, %v8160_v30  ;;  %v8196_v33 = vld [vmem:[#allocation166_spill] sm:$0xff]  ;;  %v8199_v30 = vld [vmem:[#allocation89_spill] sm:$0xff] }
 0x43e   : > { %v6215_v50 = vpop.permute.xlu1 %2418  ;;  %v1565_v38 = vmul.f32 %v1556_v31, %v8185_v1  ;;  %v1668_v15 = vsel %vm735_vm7, %v8199_v30, %v8123_v37  ;;  %v8200_v31 = vld [vmem:[#allocation26_spill] sm:$0xff] }
 0x43f   : > { %8184 = vst [vmem:[#allocation152_spill] sm:$0xff] %v6215_v50  ;;  %v2436_v2 = vadd.f32 %v6215_v50, %v2396_v59  ;;  %v8192_v59 = vld [vmem:[#allocation62_spill] sm:$0xff] }
 0x440   : > { %v1505_v60 = vmul.f32 %v8193_v14, %v8192_v59  ;;  %v8197_v59 = vld [vmem:[#allocation96_spill] sm:$0xff]  ;;  %v2022_v14 = vmul.f32 %v1998_v45, %v8130_v28  ;;  %v8203_v45 = vld [vmem:[#allocation25_spill] sm:$0xff]  ;;  %v1597_v30 = vmul.f32 %v8039_v10, %v1565_v38  ;;  %v8210_v10 = vld [vmem:[#allocation23_spill] sm:$0xff] }
 0x441   : > { %v6223_v0 = vmul.f32 %v2444_v61, %v2436_v2  ;;  %v6225_v53 = vpop.permute.xlu2 %2106  ;;  %v1793_v61 = vmul.f32 %v1781_v47, %v8194_v36  ;;  %v2001_v47 = vsel %vm846_vm4, %v8197_v59, %v8152_v27  ;;  %v8202_v27 = vld [vmem:[#allocation131_spill] sm:$0xff]  ;;  %v8207_v59 = vld [vmem:[#allocation46_spill] sm:$0xff] }
 0x442   : > { %8188 = vst [vmem:[#allocation148_spill] sm:$0xff] %v6225_v53  ;;  %v1617_v2 = vadd.f32 %v1601_v32, %v1505_v60  ;;  %v1905_v53 = vmul.f32 %v1893_v5, %v8200_v31  ;;  %v8206_v5 = vld [vmem:[#allocation56_spill] sm:$0xff] }
 0x443   : > { %8187 = vst [vmem:[#allocation65_spill] sm:$0xff] %v6223_v0  ;;  %2483 = vmatpush.msrb.mxu2 %v6223_v0  ;;  %v6262_v0 = vpop.permute.xlu0 %2322  ;;  %v1825_v41 = vmul.f32 %v8154_v26, %v1793_v61  ;;  %v8205_v26 = vld [vmem:[#allocation140_spill] sm:$0xff] }
 0x444   : > { %v1729_v60 = vadd.f32 %v1713_v25, %v1617_v2  ;;  %8198 = vst [vmem:[#allocation122_spill] sm:$0xff] %v6262_v0  ;;  %v1895_v25 = vsel %vm809_vm5, %v8202_v27, %v8098_v29  ;;  %v2017_v2 = vmul.f32 %v2001_v47, %v8203_v45  ;;  %v2003_v61 = vsel %vm846_vm4, %v8205_v26, %v6045_v54  ;;  %v8208_v47 = vld [vmem:[#allocation92_spill] sm:$0xff] }
 0x445   : > { %v1780_v27 = vsel %vm772_vm6, %v8208_v47, %v8147_v17  ;;  %v1558_v54 = vsel %vm698_vm8, %v8105_v35, %v8209_v13  ;;  %v1913_v26 = vmul.f32 %v1895_v25, %v8200_v31  ;;  %v8211_v17 = vld [vmem:[#allocation74_spill] sm:$0xff]  ;;  %v6312_v35 = vld [vmem:[%s8213_s8] sm:$0xff]  ;;  %v8215_v25 = vld [vmem:[#allocation168_spill] sm:$0xff] }
 0x446   : > { %v6245_v7 = vpop.permute.xlu1 %1872  ;;  %v1841_v28 = vadd.f32 %v1825_v41, %v1729_v60  ;;  %v2049_v41 = vmul.f32 %v8169_v12, %v2017_v2  ;;  %8214 = vst [vmem:[#allocation133_spill] sm:$0xff] %v6312_v35  ;;  %v1789_v60 = vmul.f32 %v1780_v27, %v8194_v36  ;;  %3802 = vmatmul.msk.f32.vlgmr.msrb.gmra.mxu2 %vm990_vm1, %v6312_v35 }
 0x447   : > { %v1890_v39 = vsel %vm809_vm5, %v8196_v33, %v6245_v7  ;;  %v1573_v2 = vmul.f32 %v1558_v54, %v8185_v1  ;;  %v1945_v27 = vmul.f32 %v8090_v34, %v1913_v26  ;;  %v8222_v54 = vld [vmem:[#allocation22_spill] sm:$0xff]  ;;  %v8223_v34 = vld [vmem:[#allocation73_spill] sm:$0xff]  ;;  %v8227_v1 = vld [vmem:[#allocation135_spill] sm:$0xff] }
 0x448   : > { %v1910_v32 = vmul.f32 %v1890_v39, %v8099_v24  ;;  %v8204_v39 = vld [vmem:[#allocation94_spill] sm:$0xff]  ;;  %v2054_v24 = vmul.f32 %v8151_v56, %v2022_v14  ;;  %v2025_v14 = vmul.f32 %v2003_v61, %v8203_v45  ;;  %v1892_v26 = vsel %vm809_vm5, %v8223_v34, %v5964_v40 }
 0x449   : > { %v6271_v50 = vpop.permute.xlu2 %2318  ;;  %v2113_v37 = vsel %vm883_vm3, %v8204_v39, %v6002_v42  ;;  %v1677_v39 = vmul.f32 %v1668_v15, %v8186_v52 }
 0x44a   : > { %v1942_v11 = vmul.f32 %v8150_v3, %v1910_v32  ;;  %8201 = vst [vmem:[#allocation117_spill] sm:$0xff] %v6271_v50  ;;  %v1501_v32 = vmul.f32 %v8207_v59, %v8206_v5  ;;  %v2129_v38 = vmul.f32 %v2113_v37, %v8210_v10  ;;  %v1937_v5 = vmul.f32 %v8164_v49, %v1905_v53  ;;  %v8212_v59 = vld [vmem:[#allocation61_spill] sm:$0xff]  ;;  %v8216_v37 = vld [vmem:[#allocation158_spill] sm:$0xff]  ;;  %v8217_v49 = vld [vmem:[#allocation99_spill] sm:$0xff] }
 0x44b   : > { %v1509_v15 = vmul.f32 %v8212_v59, %v8211_v17  ;;  %v2225_v53 = vsel %vm920_vm2, %v8217_v49, %v6132_v63  ;;  %v1709_v12 = vmul.f32 %v8112_v8, %v1677_v39  ;;  %v8220_v17 = vld [vmem:[#allocation50_spill] sm:$0xff]  ;;  %v6342_v49 = vpop.permute.xlu0 %2214 }
 0x44c   : > { %v1958_v29 = vadd.f32 %v1942_v11, %v5966_v18  ;;  %v1613_v13 = vadd.f32 %v1597_v30, %v1501_v32  ;;  %v1953_v61 = vadd.f32 %v1937_v5, %v1841_v28  ;;  %v8218_v32 = vld [vmem:[#allocation119_spill] sm:$0xff]  ;;  %v2161_v59 = vmul.f32 %v8220_v17, %v2129_v38 }
 0x44d   : > { %v2337_v30 = vsel %vm957_vm0, %v8218_v32, %v6271_v50  ;;  %v2241_v5 = vmul.f32 %v2225_v53, %v8222_v54  ;;  %v8226_v32 = vld [vmem:[#allocation79_spill] sm:$0xff]  ;;  %v8228_v50 = vld [vmem:[#allocation120_spill] sm:$0xff] }
 0x44e   : > { %v6303_v18 = vpop.permute.xlu1 %2092  ;;  %v2070_v11 = vadd.f32 %v2054_v24, %v1958_v29  ;;  %v2115_v24 = vsel %vm883_vm3, %v8216_v37, %v8215_v25  ;;  %v8219_v29 = vld [vmem:[#allocation128_spill] sm:$0xff]  ;;  %v2057_v37 = vmul.f32 %v8093_v48, %v2025_v14  ;;  %v2065_v39 = vadd.f32 %v2049_v41, %v1953_v61  ;;  %v8224_v48 = vld [vmem:[#allocation169_spill] sm:$0xff]  ;;  %v6356_v14 = vld [vmem:[%s7856_s25 + $0x28] ss:$0 sm:$0xff] }
 0x44f   : > { %v1670_v47 = vsel %vm735_vm7, %v8107_v22, %v8219_v29  ;;  %v2137_v28 = vmul.f32 %v2115_v24, %v8210_v10  ;;  %v1961_v38 = vadd.f32 %v1945_v27, %v8224_v48  ;;  %v2353_v41 = vmul.f32 %v6356_v14, %v2337_v30  ;;  %v8225_v24 = vld [vmem:[#allocation28_spill] sm:$0xff]  ;;  %v8229_v27 = vld [vmem:[#allocation147_spill] sm:$0xff] }
 0x450   : > { %v1685_v61 = vmul.f32 %v1670_v47, %v8186_v52  ;;  %v1605_v29 = vmul.f32 %v8226_v32, %v1573_v2  ;;  %v1782_v40 = vsel %vm772_vm6, %v8228_v50, %v8227_v1  ;;  %v2339_v34 = vsel %vm957_vm0, %v8229_v27, %v6262_v0  ;;  %v8230_v48 = vld [vmem:[#allocation112_spill] sm:$0xff]  ;;  %v8232_v32 = vld [vmem:[#allocation78_spill] sm:$0xff]  ;;  %v8238_v0 = vld [vmem:[#allocation77_spill] sm:$0xff] }
 0x451   : > { %v6338_v8 = vpop.permute.xlu2 %2104  ;;  %v1894_v30 = vsel %vm809_vm5, %v8230_v48, %v8196_v33  ;;  %v2073_v35 = vadd.f32 %v2057_v37, %v1961_v38  ;;  %v2169_v52 = vmul.f32 %v8232_v32, %v2137_v28  ;;  %v8233_v25 = vld [vmem:[#allocation68_spill] sm:$0xff]  ;;  %v1901_v1 = vmul.f32 %v1892_v26, %v8200_v31  ;;  %v6387_v33 = vld [vmem:[%s8213_s8 + $0x8] sm:$0xff]  ;;  %v8235_v37 = vld [vmem:[#allocation71_spill] sm:$0xff] }
 0x452   : > { %8221 = vst [vmem:[#allocation47_spill] sm:$0xff] %v6338_v8  ;;  %v2110_v22 = vsel %vm883_vm3, %v6174_v6, %v6338_v8  ;;  %v2273_v50 = vmul.f32 %v8233_v25, %v2241_v5  ;;  %v8234_v8 = vld [vmem:[#allocation143_spill] sm:$0xff]  ;;  %3803 = vmatmul.msk.f32.gmra.mxu2 %vm990_vm1, %v6387_v33  ;;  %v1821_v5 = vmul.f32 %v8117_v55, %v1789_v60  ;;  %v8237_v48 = vld [vmem:[#allocation162_spill] sm:$0xff] }
 0x453   : > { %v2134_v53 = vmul.f32 %v2110_v22, %v8225_v24  ;;  %v2177_v22 = vadd.f32 %v2161_v59, %v2065_v39  ;;  %v2361_v59 = vmul.f32 %v6356_v14, %v2339_v34  ;;  %v2385_v39 = vmul.f32 %v8235_v37, %v2353_v41  ;;  %v8242_v60 = vld [vmem:[#allocation66_spill] sm:$0xff] }
 0x454   : > { %v1725_v26 = vadd.f32 %v1709_v12, %v1613_v13  ;;  %v2000_v34 = vsel %vm846_vm4, %v8238_v0, %v8237_v48  ;;  %v2185_v41 = vadd.f32 %v2169_v52, %v2073_v35  ;;  %v1933_v37 = vmul.f32 %v8137_v62, %v1901_v1  ;;  %v8243_v12 = vld [vmem:[#allocation57_spill] sm:$0xff] }
 0x455   : > { %v2166_v47 = vmul.f32 %v8167_v57, %v2134_v53  ;;  %v1797_v53 = vmul.f32 %v1782_v40, %v8194_v36  ;;  %v1717_v0 = vmul.f32 %v8242_v60, %v1685_v61  ;;  %v2393_v52 = vmul.f32 %v8243_v12, %v2361_v59  ;;  %v8244_v40 = vld [vmem:[#allocation60_spill] sm:$0xff] }
 0x456   : > { %v6375_v2 = vpop.permute.xlu1 %2210  ;;  %v2013_v62 = vmul.f32 %v2000_v34, %v8203_v45  ;;  %v8246_v34 = vld [vmem:[#allocation153_spill] sm:$0xff] }
 0x457   : > { %8231 = vst [vmem:[#allocation167_spill] sm:$0xff] %v6375_v2  ;;  %v2227_v27 = vsel %vm920_vm2, %v8234_v8, %v6375_v2  ;;  %v6391_v38 = vadd.f32 %v2166_v47, %v2070_v11  ;;  %v1621_v8 = vadd.f32 %v1605_v29, %v1509_v15  ;;  %v2289_v2 = vadd.f32 %v2273_v50, %v2177_v22  ;;  %v8239_v11 = vld [vmem:[#allocation53_spill] sm:$0xff]  ;;  %v8241_v15 = vld [vmem:[#allocation95_spill] sm:$0xff]  ;;  %v6421_v50 = vpop.permute.xlu0 %2320 }
 0x458   : > { %v2249_v28 = vmul.f32 %v2227_v27, %v8222_v54  ;;  %v1909_v27 = vmul.f32 %v1894_v30, %v8200_v31  ;;  %v2112_v13 = vsel %vm883_vm3, %v8241_v15, %v6303_v18  ;;  %v1829_v30 = vmul.f32 %v8244_v40, %v1797_v53 }
 0x459   : > { %8236 = vst [vmem:[#allocation111_spill] sm:$0xff] %v6391_v38  ;;  %v8240_v38 = vld [vmem:[#allocation115_spill] sm:$0xff]  ;;  %v2401_v35 = vadd.f32 %v2385_v39, %v2289_v2  ;;  %v1837_v22 = vadd.f32 %v1821_v5, %v1725_v26  ;;  %v1733_v1 = vadd.f32 %v1717_v0, %v1621_v8  ;;  %v2125_v61 = vmul.f32 %v2112_v13, %v8210_v10  ;;  %v6425_v2 = vpop.permute.xlu2 %2316  ;;  %v8249_v0 = vld [vmem:[#allocation52_spill] sm:$0xff] }
 0x45a   : > { %v2281_v47 = vmul.f32 %v8239_v11, %v2249_v28  ;;  %v2002_v55 = vsel %vm846_vm4, %v8240_v38, %v6193_v20  ;;  %v2221_v20 = vsel %vm920_vm2, %v6132_v63, %v6342_v49  ;;  %v1941_v28 = vmul.f32 %v8150_v3, %v1909_v27  ;;  %v8245_v8 = vld [vmem:[#allocation27_spill] sm:$0xff] }
 0x45b   : > { %v2021_v38 = vmul.f32 %v2002_v55, %v8203_v45  ;;  %v1949_v5 = vadd.f32 %v1933_v37, %v1837_v22  ;;  %v2224_v63 = vsel %vm920_vm2, %v8162_v51, %v6219_v46  ;;  %v2242_v53 = vmul.f32 %v2221_v20, %v8245_v8  ;;  %v8247_v55 = vld [vmem:[#allocation160_spill] sm:$0xff]  ;;  %v8248_v13 = vld [vmem:[#allocation123_spill] sm:$0xff] }
 0x45c   : > { %v2297_v29 = vadd.f32 %v2281_v47, %v2185_v41  ;;  %v2441_v41 = vadd.f32 %v8246_v34, %v2401_v35  ;;  %v1845_v27 = vadd.f32 %v1829_v30, %v1733_v1  ;;  %v2045_v37 = vmul.f32 %v8161_v58, %v2013_v62  ;;  %v8250_v1 = vld [vmem:[#allocation130_spill] sm:$0xff] }
 0x45d   : > { %v2114_v51 = vsel %vm883_vm3, %v8248_v13, %v6174_v6  ;;  %v2053_v60 = vmul.f32 %v8151_v56, %v2021_v38  ;;  %v2237_v30 = vmul.f32 %v2224_v63, %v8222_v54  ;;  %v2274_v6 = vmul.f32 %v8233_v25, %v2242_v53 }
 0x45e   : > { %v2409_v59 = vadd.f32 %v2393_v52, %v2297_v29  ;;  %v6427_v39 = vpop.permute.xlu1 %2102  ;;  %v2157_v52 = vmul.f32 %v8249_v0, %v2125_v61  ;;  %v1957_v40 = vadd.f32 %v1941_v28, %v1845_v27  ;;  %v2061_v62 = vadd.f32 %v2045_v37, %v1949_v5 }
 0x45f   : > { %v2109_v26 = vsel %vm883_vm3, %v6002_v42, %v6427_v39  ;;  %v2336_v42 = vsel %vm957_vm0, %v8165_v44, %v6425_v2  ;;  %v2133_v22 = vmul.f32 %v2114_v51, %v8210_v10  ;;  %v2338_v38 = vsel %vm957_vm0, %v8250_v1, %v6421_v50 }
 0x460   : > { %v2130_v47 = vmul.f32 %v2109_v26, %v8225_v24  ;;  %v2449_v15 = vadd.f32 %v8247_v55, %v2409_v59  ;;  %v2349_v20 = vmul.f32 %v6356_v14, %v2336_v42  ;;  %v2069_v61 = vadd.f32 %v2053_v60, %v1957_v40  ;;  %v8251_v26 = vld [vmem:[#allocation132_spill] sm:$0xff]  ;;  %v8252_v42 = vld [vmem:[#allocation145_spill] sm:$0xff] }
 0x461   : > { %v2173_v59 = vadd.f32 %v2157_v52, %v2061_v62  ;;  %v2269_v63 = vmul.f32 %v8176_v21, %v2237_v30  ;;  %v1886_v60 = vsel %vm809_vm5, %v6245_v7, %v8252_v42  ;;  %v8253_v52 = vld [vmem:[#allocation127_spill] sm:$0xff]  ;;  %v8254_v62 = vld [vmem:[#allocation70_spill] sm:$0xff]  ;;  %v8256_v7 = vld [vmem:[#allocation17_spill] sm:$0xff] }
 0x462   : > { %v2162_v35 = vmul.f32 %v8220_v17, %v2130_v47  ;;  %v6454_v29 = vmul.f32 %v2449_v15, %v2441_v41  ;;  %v2357_v41 = vmul.f32 %v6356_v14, %v2338_v38  ;;  %v2327_v47 = vpop.permute.xlu0 %2326  ;;  %v2381_v15 = vmul.f32 %v8177_v16, %v2349_v20 }
 0x463   : > { %v2285_v37 = vadd.f32 %v2269_v63, %v2173_v59  ;;  %v8258_v59 = vld [vmem:[#allocation30_spill] sm:$0xff] }
 0x464   : > { %v2178_v44 = vadd.f32 %v2162_v35, %v6195_v9  ;;  %2505 = vmatpush.msrb.mxu1 %v6454_v29  ;;  %v2165_v9 = vmul.f32 %v8167_v57, %v2133_v22  ;;  %v2010_v35 = vsel %vm846_vm4, %v6187_v43, %v8253_v52  ;;  %v2389_v14 = vmul.f32 %v8179_v4, %v2357_v41  ;;  %v8260_v41 = vld [vmem:[#allocation159_spill] sm:$0xff] }
 0x465   : > { %v2397_v40 = vadd.f32 %v2381_v15, %v2285_v37  ;;  %v1996_v22 = vsel %vm846_vm4, %v8237_v48, %v8254_v62 }
 0x466   : > { %v6466_v28 = vadd.f32 %v2274_v6, %v2178_v44  ;;  %v2209_v5 = vpop.permute.xlu1 %2208  ;;  %v2181_v13 = vadd.f32 %v2165_v9, %v2069_v61  ;;  %v8255_v6 = vld [vmem:[#allocation76_spill] sm:$0xff]  ;;  %v1911_v44 = vmul.f32 %v1886_v60, %v8256_v7  ;;  %v8257_v61 = vld [vmem:[#allocation14_spill] sm:$0xff]  ;;  %v2014_v63 = vmul.f32 %v1996_v22, %v8258_v59  ;;  %v8266_v22 = vld [vmem:[#allocation125_spill] sm:$0xff] }
 0x467   : > { %v2226_v53 = vsel %vm920_vm2, %v8251_v26, %v2209_v5  ;;  %v2008_v20 = vsel %vm846_vm4, %v8254_v62, %v8255_v6  ;;  %v2023_v43 = vmul.f32 %v2010_v35, %v8257_v61  ;;  %v2217_v26 = vpop.permute.xlu2 %2216  ;;  %v8263_v35 = vld [vmem:[#allocation148_spill] sm:$0xff] }
 0x468   : > { %v2245_v27 = vmul.f32 %v2226_v53, %v8222_v54  ;;  %v8259_v53 = vld [vmem:[#allocation152_spill] sm:$0xff]  ;;  %v2015_v48 = vmul.f32 %v2008_v20, %v8257_v61  ;;  %v2046_v62 = vmul.f32 %v8161_v58, %v2014_v63  ;;  %v2234_v6 = vsel %vm920_vm2, %v2217_v26, %v8266_v22 }
 0x469   : > { %v2437_v9 = vadd.f32 %v8259_v53, %v2397_v40  ;;  %v2055_v52 = vmul.f32 %v8151_v56, %v2023_v43  ;;  %v2222_v20 = vsel %vm920_vm2, %v2209_v5, %v2217_v26  ;;  %v8268_v43 = vld [vmem:[#allocation13_spill] sm:$0xff] }
 0x46a   : > { %v2277_v51 = vmul.f32 %v8175_v19, %v2245_v27  ;;  %v1943_v27 = vmul.f32 %v8150_v3, %v1911_v44  ;;  %v2329_v37 = vpop.permute.xlu0 %2328  ;;  %v2047_v56 = vmul.f32 %v8161_v58, %v2015_v48  ;;  %v8267_v44 = vld [vmem:[#allocation142_spill] sm:$0xff]  ;;  %v8270_v26 = vld [vmem:[#allocation105_spill] sm:$0xff] }
 0x46b   : > { %v2345_v58 = vsel %vm957_vm0, %v2327_v47, %v8270_v26 }
 0x46c   : > { %v2293_v30 = vadd.f32 %v2277_v51, %v2181_v13  ;;  %v8261_v13 = vld [vmem:[#allocation118_spill] sm:$0xff]  ;;  %v8262_v51 = vld [vmem:[#allocation47_spill] sm:$0xff] }
 0x46d   : > { %v2122_v42 = vsel %vm883_vm3, %v8262_v51, %v8261_v13  ;;  %v8272_v13 = vld [vmem:[#allocation116_spill] sm:$0xff] }
 0x46e   : > { %v2101_v1 = vpop.permute.xlu1 %2100  ;;  %v2405_v38 = vadd.f32 %v2389_v14, %v2293_v30  ;;  %v8264_v14 = vld [vmem:[#allocation168_spill] sm:$0xff]  ;;  %v2135_v63 = vmul.f32 %v2122_v42, %v8268_v43  ;;  %v2121_v51 = vsel %vm883_vm3, %v6427_v39, %v8272_v13  ;;  %v2246_v42 = vmul.f32 %v2222_v20, %v8245_v8  ;;  %v6557_v39 = vld [vmem:[%s7856_s25 + $0x30] ss:$0 sm:$0xff]  ;;  %v8276_v20 = vld [vmem:[#allocation117_spill] sm:$0xff] }
 0x46f   : > { %v2111_v40 = vsel %vm883_vm3, %v8264_v14, %v8263_v35  ;;  %v8265_v30 = vld [vmem:[#allocation100_spill] sm:$0xff]  ;;  %v8277_v13 = vld [vmem:[#allocation121_spill] sm:$0xff] }
 0x470   : > { %v2445_v15 = vadd.f32 %v8260_v41, %v2405_v38  ;;  %v2233_v3 = vsel %vm920_vm2, %v6342_v49, %v8265_v30  ;;  %v2123_v38 = vsel %vm883_vm3, %v8263_v35, %v8267_v44  ;;  %v2334_v49 = vsel %vm957_vm0, %v6421_v50, %v2329_v37  ;;  %v8273_v50 = vld [vmem:[#allocation12_spill] sm:$0xff]  ;;  %v8275_v44 = vld [vmem:[#allocation139_spill] sm:$0xff] }
 0x471   : > { %v2138_v5 = vmul.f32 %v2111_v40, %v8225_v24  ;;  %v2247_v14 = vmul.f32 %v2234_v6, %v8273_v50  ;;  %v2108_v40 = vsel %vm883_vm3, %v6303_v18, %v2101_v1  ;;  %v8274_v30 = vld [vmem:[#allocation80_spill] sm:$0xff]  ;;  %v2062_v26 = vadd.f32 %v2046_v62, %v8275_v44 }
 0x472   : > { %v6505_v60 = vmul.f32 %v2445_v15, %v2437_v9  ;;  %v8269_v9 = vld [vmem:[#allocation133_spill] sm:$0xff]  ;;  %v8271_v15 = vld [vmem:[#allocation114_spill] sm:$0xff]  ;;  %v2120_v22 = vsel %vm883_vm3, %v2101_v1, %v8274_v30  ;;  %v2358_v6 = vmul.f32 %v6557_v39, %v2334_v49  ;;  %v2333_v18 = vsel %vm957_vm0, %v8276_v20, %v2327_v47  ;;  %v3958_v44 = vld [vmem:[%s7856_s25 + $0x38] ss:$0 sm:$0xff]  ;;  %v2325_v49 = vpop.permute.xlu2 %2324 }
 0x473   : > { %v1959_v48 = vadd.f32 %v1943_v27, %v8271_v15  ;;  %v2243_v27 = vmul.f32 %v2233_v3, %v8273_v50  ;;  %v2139_v15 = vmul.f32 %v2123_v38, %v8268_v43  ;;  %v2346_v1 = vsel %vm957_vm0, %v2329_v37, %v8277_v13  ;;  %v8278_v38 = vld [vmem:[#allocation146_spill] sm:$0xff] }
 0x474   : > { %2506 = vmatpush.msrb.mxu1 %v6505_v60  ;;  %v2167_v3 = vmul.f32 %v8167_v57, %v2135_v63  ;;  %v2131_v62 = vmul.f32 %v2121_v51, %v8268_v43  ;;  %v2063_v30 = vadd.f32 %v2047_v56, %v8278_v38  ;;  %v2355_v7 = vmul.f32 %v3958_v44, %v2345_v58 }
 0x475   : > { %3804 = vmatmul.msk.f32.vlgmr.msrb.gmra.mxu1 %vm990_vm1, %v8269_v9  ;;  %v2126_v61 = vmul.f32 %v2108_v40, %v8225_v24  ;;  %v2127_v47 = vmul.f32 %v2120_v22, %v8268_v43  ;;  %v2170_v20 = vmul.f32 %v8232_v32, %v2138_v5  ;;  %v2071_v59 = vadd.f32 %v2055_v52, %v1959_v48  ;;  %v8279_v5 = vld [vmem:[#allocation85_spill] sm:$0xff]  ;;  %v8280_v48 = vld [vmem:[#allocation167_spill] sm:$0xff] }
 0x476   : > { %v2219_v35 = vpop.permute.xlu1 %2218  ;;  %v2279_v37 = vmul.f32 %v8175_v19, %v2247_v14  ;;  %v2278_v57 = vmul.f32 %v8175_v19, %v2246_v42  ;;  %v2171_v63 = vmul.f32 %v8232_v32, %v2139_v15  ;;  %v2354_v56 = vmul.f32 %v6557_v39, %v2333_v18  ;;  %v8282_v22 = vld [vmem:[#allocation111_spill] sm:$0xff]  ;;  %v8283_v18 = vld [vmem:[#allocation98_spill] sm:$0xff] }
 0x477   : > { %v2359_v51 = vmul.f32 %v3958_v44, %v2346_v1  ;;  %v2390_v13 = vmul.f32 %v8179_v4, %v2358_v6  ;;  %v2183_v58 = vadd.f32 %v2167_v3, %v2071_v59  ;;  %v2163_v38 = vmul.f32 %v8220_v17, %v2131_v62  ;;  %v8281_v17 = vld [vmem:[#allocation149_spill] sm:$0xff] }
 0x478   : > { %v2332_v40 = vsel %vm957_vm0, %v6425_v2, %v2325_v49  ;;  %v2344_v52 = vsel %vm957_vm0, %v2325_v49, %v8279_v5  ;;  %v2158_v19 = vmul.f32 %v8249_v0, %v2126_v61  ;;  %v2159_v32 = vmul.f32 %v8249_v0, %v2127_v47  ;;  %v8284_v49 = vld [vmem:[#allocation154_spill] sm:$0xff] }
 0x479   : > { %v2223_v59 = vsel %vm920_vm2, %v8280_v48, %v2219_v35  ;;  %v2235_v14 = vsel %vm920_vm2, %v2219_v35, %v8281_v17  ;;  %v2295_v42 = vadd.f32 %v2279_v37, %v2183_v58  ;;  %v2294_v15 = vadd.f32 %v2278_v57, %v8282_v22 }
 0x47a   : > { %v2350_v61 = vmul.f32 %v6557_v39, %v2332_v40  ;;  %v2351_v1 = vmul.f32 %v3958_v44, %v2344_v52  ;;  %v2391_v35 = vmul.f32 %v8179_v4, %v2359_v51  ;;  %v2179_v47 = vadd.f32 %v2163_v38, %v8284_v49  ;;  %v8285_v52 = vld [vmem:[#allocation71_spill] sm:$0xff] }
 0x47b   : > { %v2250_v37 = vmul.f32 %v2223_v59, %v8245_v8  ;;  %v2251_v57 = vmul.f32 %v2235_v14, %v8273_v50  ;;  %v2175_v58 = vadd.f32 %v2159_v32, %v2063_v30  ;;  %v2275_v40 = vmul.f32 %v8233_v25, %v2243_v27 }
 0x47c   : > { %v2387_v17 = vmul.f32 %v8285_v52, %v2355_v7  ;;  %v2407_v22 = vadd.f32 %v2391_v35, %v2295_v42  ;;  %v2382_v4 = vmul.f32 %v8177_v16, %v2350_v61  ;;  %v2383_v51 = vmul.f32 %v8177_v16, %v2351_v1  ;;  %v8288_v42 = vld [vmem:[#allocation122_spill] sm:$0xff] }
 0x47d   : > { %3805 = vmatmul.msk.f32.gmra.mxu1 %vm990_vm1, %v6387_v33  ;;  %v2282_v30 = vmul.f32 %v8239_v11, %v2250_v37  ;;  %v2386_v25 = vmul.f32 %v8285_v52, %v2354_v56 }
 0x47e   : > { %v2213_v2 = vpop.permute.xlu1 %2212 }
 0x47f   : > { %v2220_v6 = vsel %vm920_vm2, %v6219_v46, %v2213_v2  ;;  %v2232_v0 = vsel %vm920_vm2, %v2213_v2, %v8283_v18  ;;  %v2174_v46 = vadd.f32 %v2158_v19, %v2062_v26  ;;  %v2406_v2 = vadd.f32 %v2390_v13, %v2294_v15  ;;  %v8289_v15 = vld [vmem:[#allocation134_spill] sm:$0xff] }
 0x480   : > { %v2238_v3 = vmul.f32 %v2220_v6, %v8245_v8  ;;  %v2239_v62 = vmul.f32 %v2232_v0, %v8273_v50  ;;  %v8286_v6 = vld [vmem:[#allocation136_spill] sm:$0xff]  ;;  %v2291_v26 = vadd.f32 %v2275_v40, %v2179_v47  ;;  %v2283_v19 = vmul.f32 %v8239_v11, %v2251_v57 }
 0x481   : > { %v2186_v14 = vadd.f32 %v2170_v20, %v8286_v6  ;;  %v2446_v18 = vadd.f32 %v8260_v41, %v2406_v2  ;;  %v2447_v0 = vadd.f32 %v8260_v41, %v2407_v22  ;;  %v2402_v1 = vadd.f32 %v2386_v25, %v6466_v28 }
 0x482   : > { %v2270_v5 = vmul.f32 %v8176_v21, %v2238_v3  ;;  %v2271_v48 = vmul.f32 %v8176_v21, %v2239_v62  ;;  %v8287_v21 = vld [vmem:[#allocation155_spill] sm:$0xff]  ;;  %v2403_v3 = vadd.f32 %v2387_v17, %v2291_v26 }
 0x483   : > { %v2187_v32 = vadd.f32 %v2171_v63, %v8287_v21  ;;  %v2298_v62 = vadd.f32 %v2282_v30, %v2186_v14 }
 0x484   : > { %v2286_v38 = vadd.f32 %v2270_v5, %v2174_v46  ;;  %v2287_v59 = vadd.f32 %v2271_v48, %v2175_v58  ;;  %v2443_v28 = vadd.f32 %v8246_v34, %v2403_v3 }
 0x485   : > { %v2299_v35 = vadd.f32 %v2283_v19, %v2187_v32  ;;  %v2575_v19 = vld [vmem:[%s8290_s9] sm:$0xff] }
 0x486   : > { %v2331_v7 = vpop.permute.xlu1 %2330  ;;  %v2398_v27 = vadd.f32 %v2382_v4, %v2286_v38  ;;  %v2399_v13 = vadd.f32 %v2383_v51, %v2287_v59  ;;  %v4013_v38 = vmov 256.0  }
 0x487   : > { %v2335_v16 = vsel %vm957_vm0, %v8288_v42, %v2331_v7  ;;  %v2347_v20 = vsel %vm957_vm0, %v2331_v7, %v8289_v15  ;;  %3945 = vrcp.f32 %v4013_v38  ;;  %v2576_v7 = vld [vmem:[%s8290_s9 + $0x8] sm:$0xff] }
 0x488   : > { %v2362_v11 = vmul.f32 %v6557_v39, %v2335_v16  ;;  %v2363_v63 = vmul.f32 %v3958_v44, %v2347_v20  ;;  %v2438_v56 = vadd.f32 %v8259_v53, %v2398_v27  ;;  %v2439_v61 = vadd.f32 %v8259_v53, %v2399_v13  ;;  %v2620_v42 = vld [vmem:[%s7565_s11 + $0x8] sm:$0xff]  ;;  %v2895_v20 = vld [vmem:[%s7569_s15 + $0x10] sm:$0xff] }
 0x489   : > { %v2442_v53 = vadd.f32 %v8246_v34, %v2402_v1  ;;  %v2894_v15 = vld [vmem:[%s7569_s15 + $0x8] sm:$0xff]  ;;  %v2729_v1 = vld [vmem:[%s7566_s12] sm:$0xff] }
 0x48a   : > { %v2394_v49 = vmul.f32 %v8243_v12, %v2362_v11  ;;  %v2395_v47 = vmul.f32 %v8243_v12, %v2363_v63  ;;  %v6636_v37 = vmul.f32 %v2446_v18, %v2438_v56  ;;  %v6638_v57 = vmul.f32 %v2447_v0, %v2439_v61  ;;  %v3166_v18 = vld [vmem:[%s7567_s13 + $0x8] sm:$0xff] }
 0x48c   : > { %v2410_v41 = vadd.f32 %v2394_v49, %v2298_v62  ;;  %v2411_v39 = vadd.f32 %v2395_v47, %v2299_v35  ;;  %v2896_v62 = vld [vmem:[%s7569_s15 + $0x18] sm:$0xff]  ;;  %v2619_v35 = vld [vmem:[%s7565_s11] sm:$0xff]  ;;  %v3056_v49 = vld [vmem:[%s7571_s17 + $0x8] sm:$0xff] }
 0x48d   : > { %v3946_v59 = vpop.eup %3945  ;;  %v2730_v47 = vld [vmem:[%s7566_s12 + $0x8] sm:$0xff] }
 0x48e   : > { %v2450_v44 = vadd.f32 %v8247_v55, %v2410_v41  ;;  %v2451_v46 = vadd.f32 %v8247_v55, %v2411_v39  ;;  %vm2571_vm15 = vweird.f32 %v3946_v59  ;;  %v3165_v41 = vld [vmem:[%s7567_s13] sm:$0xff] }
 0x48f   : > { %v2893_v39 = vld [vmem:[%s7569_s15] sm:$0xff] }
 0x490   : > { %v6644_v58 = vmul.f32 %v2450_v44, %v2442_v53  ;;  %v6646_v5 = vmul.f32 %v2451_v46, %v2443_v28  ;;  %v3055_v44 = vld [vmem:[%s7571_s17] sm:$0xff] }
 0x491   : > { %v8291_v28 = vld [vmem:[#allocation157_spill] sm:$0xff] }
 0x492   : > { %2528 = vmatpush.msrb.mxu0 %v6644_v58  ;;  %2551 = vmatpush.msra.mxu2 %v6646_v5 }
 0x494   : > { %2529 = vmatpush.msrb.mxu0 %v6636_v37  ;;  %2552 = vmatpush.msra.mxu2 %v6638_v57 }
 0x495   : > { %3808 = vmatmul.msk.f32.vlgmr.msra.gmra.mxu2 %vm990_vm1, %v8269_v9  ;;  %3806 = vmatmul.msk.f32.vlgmr.msrb.gmra.mxu0 %vm990_vm1, %v8269_v9 }
 0x49d   : > { %3809 = vmatmul.msk.f32.gmra.mxu2 %vm990_vm1, %v6387_v33  ;;  %3807 = vmatmul.msk.f32.gmra.mxu0 %vm990_vm1, %v6387_v33  ;;  %v2567_v33 = vmul.f32 256.0, %v3946_v59 }
 0x49f   : > { %v2568_v6 = vsub.f32 1.0, %v2567_v33 }
 0x4a1   : > { %v2569_v14 = vmul.f32 %v3946_v59, %v2568_v6 }
 0x4a3   : > { %v2570_v26 = vadd.f32 %v3946_v59, %v2569_v14 }
 0x4a5   : > { %v2572_v30 = vsel %vm2571_vm15, %v3946_v59, %v2570_v26 }
 0x4c9   : > { %v2485_v12 = vpop.f32.mrf.mxu2 }
 0x4d5   : > { %v2488_v48 = vpop.f32.mrf.mxu2 }
 0x4f2   : > { %v2508_v34 = vpop.f32.mrf.mxu1 }
 0x4f3   : > { %v2560_v55 = vadd.f32 %v2508_v34, %v2485_v12 }
 0x4f5   : > { %2561 = vadd.xlane.f32.xlu2 %v2560_v55  ;;  %v8292_v55 = vld [vmem:[#allocation65_spill] sm:$0xff] }
 0x4fa   : > { %v2511_v40 = vpop.f32.mrf.mxu1 }
 0x4fb   : > { %v2563_v52 = vadd.f32 %v2511_v40, %v2488_v48 }
 0x4fd   : > { %2564 = vadd.xlane.f32.xlu1 %v2563_v52  ;;  %v2617_v52 = vld [vmem:[%s7564_s10] sm:$0xff] }
 0x512   : > { %v2531_v17 = vpop.f32.mrf.mxu0 }
 0x518   : > { %v2554_v2 = vpop.f32.mrf.mxu2 }
 0x519   : > { %v2593_v22 = vadd.f32 %v2554_v2, %v2531_v17 }
 0x51a   : > { %v2534_v4 = vpop.f32.mrf.mxu0 }
 0x51b   : > { %2594 = vadd.xlane.f32.xlu2 %v2593_v22 }
 0x520   : > { %v2557_v9 = vpop.f32.mrf.mxu2 }
 0x521   : > { %v2596_v51 = vadd.f32 %v2557_v9, %v2534_v4 }
 0x523   : > { %2597 = vadd.xlane.f32.xlu0 %v2596_v51 }
 0x568   : > { %v2562_v21 = vpop.xlane.xlu2 %2561 }
 0x569   : > { %v2573_v32 = vmul.f32 %v2572_v30, %v2562_v21 }
 0x56b   : > { %v2577_v25 = vadd.f32 %v2575_v19, %v2573_v32  ;;  %v8294_v32 = vld [vmem:[#allocation40_spill] sm:$0xff] }
 0x56d   : > { %2581 = vperm.xlu2 %3929, %v2577_v25  }
 0x570   : > { %v2565_v27 = vpop.xlane.xlu1 %2564 }
 0x571   : > { %v2574_v13 = vmul.f32 %v2572_v30, %v2565_v27 }
 0x573   : > { %v2578_v16 = vadd.f32 %v2576_v7, %v2574_v13 }
 0x575   : > { %2586 = vperm.xlu1 %3930, %v2578_v16   ;;  %2628 = vperm.xlu2 %3929, %v2620_v42  }
 0x57d   : > { %2904 = vperm.xlu2 %3929, %v2894_v15  }
 0x585   : > { %2909 = vperm.xlu2 %3929, %v2895_v20   ;;  %v8295_v20 = vld [vmem:[#allocation42_spill] sm:$0xff] }
 0x58d   : > { %3174 = vperm.xlu2 %3929, %v3166_v18  }
 0x58e   : > { %v2595_v0 = vpop.xlane.xlu2 %2594 }
 0x58f   : > { %v2599_v11 = vmul.f32 %v2595_v0, %v2572_v30 }
 0x591   : > { %v2601_v63 = vadd.f32 %v2599_v11, %v2575_v19  ;;  %v8293_v19 = vld [vmem:[#allocation39_spill] sm:$0xff] }
 0x592   : > { %v8296_v11 = vld [vmem:[#allocation43_spill] sm:$0xff] }
 0x593   : > { %2605 = vperm.xlu1 %3930, %v2601_v63  }
 0x596   : > { %v2598_v56 = vpop.xlane.xlu0 %2597 }
 0x597   : > { %v2600_v61 = vmul.f32 %v2598_v56, %v2572_v30 }
 0x599   : > { %v2602_v3 = vadd.f32 %v2600_v61, %v2576_v7 }
 0x59b   : > { %2733 = vperm.xlu1 %3930, %v2729_v1   ;;  %2610 = vperm.xlu0 %3927, %v2602_v3  }
 0x5a3   : > { %2914 = vperm.xlu1 %3930, %v2896_v62   ;;  %2623 = vperm.xlu0 %3927, %v2619_v35  }
 0x5ab   : > { %3064 = vperm.xlu1 %3930, %v3056_v49   ;;  %2738 = vperm.xlu0 %3927, %v2730_v47  }
 0x5b3   : > { %3169 = vperm.xlu1 %3930, %v3165_v41   ;;  %2899 = vperm.xlu0 %3927, %v2893_v39   ;;  %v8297_v41 = vld [vmem:[#allocation41_spill] sm:$0xff] }
 0x5bb   : > { %3059 = vperm.xlu0 %3927, %v3055_v44  }
 0x5c7   : > { %v2582_v46 = vpop.permute.xlu2 %2581 }
 0x5c8   : > { %v2589_v48 = vmul.f32 %v2582_v46, %v8292_v55  ;;  %v2590_v40 = vmul.f32 %v2582_v46, %v6505_v60 }
 0x5cf   : > { %v6724_v59 = vpop.permute.xlu2 %2628 }
 0x5e7   : > { %v2587_v53 = vpop.permute.xlu1 %2586 }
 0x5e8   : > { %v2591_v12 = vmul.f32 %v2587_v53, %v8291_v28  ;;  %v2592_v34 = vmul.f32 %v2587_v53, %v6454_v29  ;;  %v2618_v29 = vld [vmem:[%s7564_s10 + $0x8] sm:$0xff] }
 0x5ea   : > { %2651 = vmatpush.msra.mxu1 %v2591_v12  ;;  %2674 = vmatpush.msrb.mxu3 %v2592_v34 }
 0x5ec   : > { %2652 = vmatpush.msra.mxu1 %v2589_v48  ;;  %2675 = vmatpush.msrb.mxu3 %v2590_v40 }
 0x5ed   : > { %3810 = vmatmul.msk.f32.vlgmr.msra.gmra.mxu1 %vm990_vm1, %v2617_v52  ;;  %3812 = vmatmul.msk.f32.vlgmr.msrb.gmra.mxu3 %vm990_vm1, %v2617_v52 }
 0x5f5   : > { %3811 = vmatmul.msk.f32.gmra.mxu1 %vm990_vm1, %v2618_v29  ;;  %3813 = vmatmul.msk.f32.gmra.mxu3 %vm990_vm1, %v2618_v29 }
 0x605   : > { %v2606_v60 = vpop.permute.xlu1 %2605 }
 0x606   : > { %v2613_v4 = vmul.f32 %v2606_v60, %v6636_v37  ;;  %v2614_v9 = vmul.f32 %v2606_v60, %v6638_v57 }
 0x60d   : > { %v2611_v17 = vpop.permute.xlu0 %2610  ;;  %v6726_v37 = vpop.permute.xlu1 %2733 }
 0x60e   : > { %v2615_v2 = vmul.f32 %v2611_v17, %v6644_v58  ;;  %v2616_v22 = vmul.f32 %v2611_v17, %v6646_v5 }
 0x610   : > { %2697 = vmatpush.msra.mxu0 %v2615_v2  ;;  %2720 = vmatpush.msrb.mxu2 %v2616_v22 }
 0x612   : > { %2698 = vmatpush.msra.mxu0 %v2613_v4  ;;  %2721 = vmatpush.msrb.mxu2 %v2614_v9 }
 0x613   : > { %3814 = vmatmul.msk.f32.vlgmr.msra.gmra.mxu0 %vm990_vm1, %v2617_v52  ;;  %3816 = vmatmul.msk.f32.vlgmr.msrb.gmra.mxu2 %vm990_vm1, %v2617_v52 }
 0x615   : > { %v2624_v51 = vpop.permute.xlu0 %2623 }
 0x61b   : > { %3815 = vmatmul.msk.f32.gmra.mxu0 %vm990_vm1, %v2618_v29  ;;  %3817 = vmatmul.msk.f32.gmra.mxu2 %vm990_vm1, %v2618_v29 }
 0x61d   : > { %v6730_v14 = vpop.permute.xlu0 %2738 }
 0x66a   : > { %v2654_v58 = vpop.f32.mrf.mxu1 }
 0x66b   : > { %v2655_v38 = vadd.f32 %v2654_v58, %v2624_v51 }
 0x66d   : > { %v2741_v33 = vmul.f32 %v6726_v37, %v2655_v38 }
 0x66f   : > { %v6734_v21 = vadd.f32 %v2741_v33, %v8293_v19 }
 0x670   : > { %v2677_v5 = vpop.f32.mrf.mxu3 }
 0x671   : > { %v2678_v26 = vadd.f32 %v2677_v5, %v2624_v51 }
 0x672   : > { %v2657_v57 = vpop.f32.mrf.mxu1 }
 0x673   : > { %v2658_v6 = vadd.f32 %v2657_v57, %v6724_v59  ;;  %v2742_v27 = vmul.f32 %v6726_v37, %v2678_v26 }
 0x675   : > { %v2745_v30 = vmul.f32 %v6730_v14, %v2658_v6  ;;  %v6745_v18 = vadd.f32 %v2742_v27, %v8295_v20 }
 0x677   : > { %v6737_v25 = vadd.f32 %v2745_v30, %v8294_v32 }
 0x678   : > { %v2680_v7 = vpop.f32.mrf.mxu3 }
 0x679   : > { %v2757_v13 = vadd.f32 %v6737_v25, %v6734_v21  ;;  %v2681_v42 = vadd.f32 %v2680_v7, %v6724_v59 }
 0x67b   : > { %v2758_v16 = vrot.slane %v2757_v13, 4  ;;  %v2746_v15 = vmul.f32 %v6730_v14, %v2681_v42 }
 0x67d   : > { %v2759_v0 = vadd.f32 %v2758_v16, %v2757_v13  ;;  %v6748_v63 = vadd.f32 %v2746_v15, %v8296_v11 }
 0x67f   : > { %v2760_v56 = vrot.slane %v2759_v0, 2  ;;  %v2764_v61 = vadd.f32 %v6748_v63, %v6745_v18 }
 0x681   : > { %v2761_v1 = vadd.f32 %v2760_v56, %v2759_v0  ;;  %v2765_v3 = vrot.slane %v2764_v61, 4  ;;  %v8298_v0 = vld [vmem:[#allocation44_spill] sm:$0xff]  ;;  %v8299_v56 = vld [vmem:[#allocation45_spill] sm:$0xff] }
 0x683   : > { %v2762_v62 = vrot.slane %v2761_v1, 1  ;;  %v2766_v35 = vadd.f32 %v2765_v3, %v2764_v61 }
 0x685   : > { %v2763_v49 = vadd.f32 %v2762_v62, %v2761_v1  ;;  %v2767_v47 = vrot.slane %v2766_v35, 2 }
 0x687   : > { %v2785_v39 = vmul.f32 %v2763_v49, %v8297_v41  ;;  %v2768_v44 = vadd.f32 %v2767_v47, %v2766_v35 }
 0x689   : > { %v6754_v46 = vsub.f32 %v6734_v21, %v2785_v39  ;;  %v6757_v53 = vsub.f32 %v6737_v25, %v2785_v39  ;;  %v2769_v28 = vrot.slane %v2768_v44, 1 }
 0x68b   : > { %v2797_v12 = vmul.f32 %v6754_v46, %v6754_v46  ;;  %v2801_v34 = vmul.f32 %v6757_v53, %v6757_v53  ;;  %v2770_v55 = vadd.f32 %v2769_v28, %v2768_v44  ;;  %v8300_v28 = vld [vmem:[#allocation37_spill] sm:$0xff] }
 0x68d   : > { %v2805_v48 = vadd.f32 %v2801_v34, %v2797_v12  ;;  %v2786_v40 = vmul.f32 %v2770_v55, %v8297_v41  ;;  %v8301_v55 = vld [vmem:[#allocation38_spill] sm:$0xff] }
 0x68f   : > { %v2806_v52 = vrot.slane %v2805_v48, 4  ;;  %v6765_v29 = vsub.f32 %v6745_v18, %v2786_v40  ;;  %v6768_v60 = vsub.f32 %v6748_v63, %v2786_v40 }
 0x690   : > { %v2700_v17 = vpop.f32.mrf.mxu0 }
 0x691   : > { %v2807_v2 = vadd.f32 %v2806_v52, %v2805_v48  ;;  %v2798_v22 = vmul.f32 %v6765_v29, %v6765_v29  ;;  %v2802_v4 = vmul.f32 %v6768_v60, %v6768_v60  ;;  %v2701_v57 = vadd.f32 %v2700_v17, %v2624_v51 }
 0x693   : > { %v2808_v9 = vrot.slane %v2807_v2, 2  ;;  %v2812_v58 = vadd.f32 %v2802_v4, %v2798_v22  ;;  %v2743_v32 = vmul.f32 %v6726_v37, %v2701_v57 }
 0x695   : > { %v2809_v38 = vadd.f32 %v2808_v9, %v2807_v2  ;;  %v2813_v5 = vrot.slane %v2812_v58, 4  ;;  %v6779_v11 = vadd.f32 %v2743_v32, %v8298_v0 }
 0x696   : > { %v2723_v33 = vpop.f32.mrf.mxu2 }
 0x697   : > { %v2810_v6 = vrot.slane %v2809_v38, 1  ;;  %v2814_v26 = vadd.f32 %v2813_v5, %v2812_v58  ;;  %v2724_v42 = vadd.f32 %v2723_v33, %v2624_v51 }
 0x698   : > { %v2703_v30 = vpop.f32.mrf.mxu0 }
 0x699   : > { %v2815_v19 = vrot.slane %v2814_v26, 2  ;;  %v2704_v7 = vadd.f32 %v2703_v30, %v6724_v59  ;;  %v2811_v27 = vadd.f32 %v2810_v6, %v2809_v38  ;;  %v2744_v62 = vmul.f32 %v6726_v37, %v2724_v42 }
 0x69b   : > { %v2816_v13 = vadd.f32 %v2815_v19, %v2814_v26  ;;  %v2747_v16 = vmul.f32 %v6730_v14, %v2704_v7  ;;  %v2833_v15 = vmul.f32 %v2811_v27, %v8297_v41  ;;  %v6791_v12 = vadd.f32 %v2744_v62, %v8300_v28 }
 0x69d   : > { %v2817_v20 = vrot.slane %v2816_v13, 1  ;;  %v6782_v61 = vadd.f32 %v2747_v16, %v8299_v56  ;;  %v2837_v1 = vadd.f32 1e-06, %v2833_v15 }
 0x69e   : > { %v2726_v3 = vpop.f32.mrf.mxu2 }
 0x69f   : > { %v2771_v35 = vadd.f32 %v6782_v61, %v6779_v11  ;;  %v2727_v51 = vadd.f32 %v2726_v3, %v6724_v59  ;;  %3947 = vrsqrt.f32 %v2837_v1  ;;  %v2818_v49 = vadd.f32 %v2817_v20, %v2816_v13 }
 0x6a0   : > { %vm2847_vm10 = vweird.f32 %v2837_v1 }
 0x6a1   : > { %v2772_v47 = vrot.slane %v2771_v35, 4  ;;  %v2748_v39 = vmul.f32 %v6730_v14, %v2727_v51  ;;  %v2834_v44 = vmul.f32 %v2818_v49, %v8297_v41 }
 0x6a3   : > { %v2773_v34 = vadd.f32 %v2772_v47, %v2771_v35  ;;  %v6794_v48 = vadd.f32 %v2748_v39, %v8301_v55  ;;  %v2838_v37 = vadd.f32 1e-06, %v2834_v44  ;;  %v6815_v35 = vld [vmem:[%s7568_s14] sm:$0xff] }
 0x6a5   : > { %v3948_v40 = vpop.eup %3947  ;;  %v2774_v52 = vrot.slane %v2773_v34, 2  ;;  %v2778_v59 = vadd.f32 %v6794_v48, %v6791_v12  ;;  %3949 = vrsqrt.f32 %v2838_v37  ;;  %vm2857_vm13 = vweird.f32 %v2838_v37 }
 0x6a6   : > { %v2842_v17 = vmul.f32 %v3948_v40, %v2837_v1  ;;  %vm2848_vm9 = vweird.f32 %v3948_v40 }
 0x6a7   : > { %v2775_v2 = vadd.f32 %v2774_v52, %v2773_v34  ;;  %v2779_v22 = vrot.slane %v2778_v59, 4  ;;  %vm2849_vm11 = vmor %vm2847_vm10, %vm2848_vm9 }
 0x6a8   : > { %v2843_v14 = vmul.f32 %v3948_v40, %v2842_v17 }
 0x6a9   : > { %v2776_v4 = vrot.slane %v2775_v2, 1  ;;  %v2780_v9 = vadd.f32 %v2779_v22, %v2778_v59 }
 0x6aa   : > { %v2844_v58 = vmul.f32 0.5, %v2843_v14 }
 0x6ab   : > { %v2777_v38 = vadd.f32 %v2776_v4, %v2775_v2  ;;  %v2781_v5 = vrot.slane %v2780_v9, 2  ;;  %v3950_v57 = vpop.eup %3949 }
 0x6ac   : > { %v2845_v33 = vsub.f32 1.5, %v2844_v58  ;;  %v2852_v30 = vmul.f32 %v3950_v57, %v2838_v37  ;;  %vm2858_vm12 = vweird.f32 %v3950_v57  ;;  %v2890_v37 = vld [vmem:[%s7568_s14 + $0x8] sm:$0xff] }
 0x6ad   : > { %v2787_v6 = vmul.f32 %v2777_v38, %v8297_v41  ;;  %v2782_v26 = vadd.f32 %v2781_v5, %v2780_v9  ;;  %vm2859_vm14 = vmor %vm2857_vm13, %vm2858_vm12 }
 0x6ae   : > { %v2846_v19 = vmul.f32 %v3948_v40, %v2845_v33  ;;  %v2853_v13 = vmul.f32 %v3950_v57, %v2852_v30  ;;  %v2892_v30 = vld [vmem:[%s7568_s14 + $0x18] sm:$0xff] }
 0x6af   : > { %v6800_v32 = vsub.f32 %v6779_v11, %v2787_v6  ;;  %v6803_v7 = vsub.f32 %v6782_v61, %v2787_v6  ;;  %v2783_v27 = vrot.slane %v2782_v26, 1 }
 0x6b0   : > { %v2850_v42 = vsel %vm2849_vm11, %v3948_v40, %v2846_v19  ;;  %v2854_v56 = vmul.f32 0.5, %v2853_v13 }
 0x6b1   : > { %v2799_v16 = vmul.f32 %v6800_v32, %v6800_v32  ;;  %v2803_v15 = vmul.f32 %v6803_v7, %v6803_v7  ;;  %v2784_v20 = vadd.f32 %v2783_v27, %v2782_v26  ;;  %v2885_v0 = vmul.f32 %v2850_v42, %v6757_v53 }
 0x6b2   : > { %v2881_v62 = vmul.f32 %v2850_v42, %v6754_v46  ;;  %v2855_v51 = vsub.f32 1.5, %v2854_v56 }
 0x6b3   : > { %v2819_v1 = vadd.f32 %v2803_v15, %v2799_v16  ;;  %v2788_v3 = vmul.f32 %v2784_v20, %v8297_v41  ;;  %2943 = vmatpush.msrb.mxu1 %v2885_v0 }
 0x6b4   : > { %v2856_v39 = vmul.f32 %v3950_v57, %v2855_v51 }
 0x6b5   : > { %v2820_v49 = vrot.slane %v2819_v1, 4  ;;  %v6818_v47 = vsub.f32 %v6791_v12, %v2788_v3  ;;  %v6821_v53 = vsub.f32 %v6794_v48, %v2788_v3  ;;  %2944 = vmatpush.msrb.mxu1 %v2881_v62 }
 0x6b6   : > { %3818 = vmatmul.msk.f32.vlgmr.msrb.gmra.mxu1 %vm990_vm1, %v6815_v35  ;;  %v2860_v34 = vsel %vm2859_vm14, %v3950_v57, %v2856_v39 }
 0x6b7   : > { %v2821_v46 = vadd.f32 %v2820_v49, %v2819_v1  ;;  %v2800_v44 = vmul.f32 %v6818_v47, %v6818_v47  ;;  %v2804_v28 = vmul.f32 %v6821_v53, %v6821_v53  ;;  %v2886_v52 = vmul.f32 %v2860_v34, %v6768_v60 }
 0x6b8   : > { %v2882_v2 = vmul.f32 %v2860_v34, %v6765_v29  ;;  %v2891_v29 = vld [vmem:[%s7568_s14 + $0x10] sm:$0xff] }
 0x6b9   : > { %v2822_v55 = vrot.slane %v2821_v46, 2  ;;  %v2826_v40 = vadd.f32 %v2804_v28, %v2800_v44  ;;  %2972 = vmatpush.msra.mxu3 %v2886_v52 }
 0x6bb   : > { %v2823_v59 = vadd.f32 %v2822_v55, %v2821_v46  ;;  %v2827_v17 = vrot.slane %v2826_v40, 4  ;;  %2973 = vmatpush.msra.mxu3 %v2882_v2 }
 0x6bc   : > { %3822 = vmatmul.msk.f32.vlgmr.msra.gmra.mxu3 %vm990_vm1, %v6815_v35 }
 0x6bd   : > { %v2824_v22 = vrot.slane %v2823_v59, 1  ;;  %v2828_v14 = vadd.f32 %v2827_v17, %v2826_v40  ;;  %v2900_v17 = vpop.permute.xlu0 %2899 }
 0x6be   : > { %3819 = vmatmul.msk.f32.gmra.mxu1 %vm990_vm1, %v2890_v37 }
 0x6bf   : > { %v2829_v4 = vrot.slane %v2828_v14, 2  ;;  %v2825_v9 = vadd.f32 %v2824_v22, %v2823_v59 }
 0x6c1   : > { %v2830_v60 = vadd.f32 %v2829_v4, %v2828_v14  ;;  %v2835_v58 = vmul.f32 %v2825_v9, %v8297_v41  ;;  %v3053_v14 = vld [vmem:[%s7570_s16] sm:$0xff]  ;;  %v3054_v9 = vld [vmem:[%s7570_s16 + $0x8] sm:$0xff] }
 0x6c3   : > { %v2831_v38 = vrot.slane %v2830_v60, 1  ;;  %v2839_v5 = vadd.f32 1e-06, %v2835_v58 }
 0x6c4   : > { %3823 = vmatmul.msk.f32.gmra.mxu3 %vm990_vm1, %v2890_v37 }
 0x6c5   : > { %3951 = vrsqrt.f32 %v2839_v5  ;;  %v2832_v57 = vadd.f32 %v2831_v38, %v2830_v60  ;;  %vm2867_vm9 = vweird.f32 %v2839_v5 }
 0x6c6   : > { %3820 = vmatmul.msk.f32.gmra.mxu1 %vm990_vm1, %v2891_v29 }
 0x6c7   : > { %v2836_v33 = vmul.f32 %v2832_v57, %v8297_v41 }
 0x6c9   : > { %v2840_v6 = vadd.f32 1e-06, %v2836_v33 }
 0x6cb   : > { %v3952_v26 = vpop.eup %3951  ;;  %3953 = vrsqrt.f32 %v2840_v6  ;;  %vm2877_vm12 = vweird.f32 %v2840_v6 }
 0x6cc   : > { %v2862_v19 = vmul.f32 %v3952_v26, %v2839_v5  ;;  %3824 = vmatmul.msk.f32.gmra.mxu3 %vm990_vm1, %v2891_v29  ;;  %vm2868_vm15 = vweird.f32 %v3952_v26 }
 0x6cd   : > { %vm2869_vm10 = vmor %vm2867_vm9, %vm2868_vm15 }
 0x6ce   : > { %3821 = vmatmul.msk.f32.gmra.mxu1 %vm990_vm1, %v2892_v30  ;;  %v2863_v27 = vmul.f32 %v3952_v26, %v2862_v19 }
 0x6d0   : > { %v2864_v13 = vmul.f32 0.5, %v2863_v27 }
 0x6d1   : > { %v3954_v42 = vpop.eup %3953 }
 0x6d2   : > { %v2865_v16 = vsub.f32 1.5, %v2864_v13  ;;  %v2872_v15 = vmul.f32 %v3954_v42, %v2840_v6  ;;  %vm2878_vm11 = vweird.f32 %v3954_v42 }
 0x6d3   : > { %vm2879_vm13 = vmor %vm2877_vm12, %vm2878_vm11 }
 0x6d4   : > { %v2866_v20 = vmul.f32 %v3952_v26, %v2865_v16  ;;  %v2873_v41 = vmul.f32 %v3954_v42, %v2872_v15  ;;  %3825 = vmatmul.msk.f32.gmra.mxu3 %vm990_vm1, %v2892_v30 }
 0x6d6   : > { %v2870_v0 = vsel %vm2869_vm10, %v3952_v26, %v2866_v20  ;;  %v2874_v56 = vmul.f32 0.5, %v2873_v41 }
 0x6d7   : > { %v2887_v1 = vmul.f32 %v2870_v0, %v6803_v7  ;;  %v2883_v62 = vmul.f32 %v2870_v0, %v6800_v32 }
 0x6d8   : > { %v2875_v3 = vsub.f32 1.5, %v2874_v56 }
 0x6d9   : > { %3001 = vmatpush.msrb.mxu0 %v2887_v1 }
 0x6da   : > { %v2876_v51 = vmul.f32 %v3954_v42, %v2875_v3 }
 0x6db   : > { %3002 = vmatpush.msrb.mxu0 %v2883_v62 }
 0x6dc   : > { %3826 = vmatmul.msk.f32.vlgmr.msrb.gmra.mxu0 %vm990_vm1, %v6815_v35  ;;  %v2880_v49 = vsel %vm2879_vm13, %v3954_v42, %v2876_v51 }
 0x6dd   : > { %v2888_v39 = vmul.f32 %v2880_v49, %v6821_v53  ;;  %v2884_v46 = vmul.f32 %v2880_v49, %v6818_v47  ;;  %v2905_v53 = vpop.permute.xlu2 %2904 }
 0x6df   : > { %3030 = vmatpush.msra.mxu2 %v2888_v39 }
 0x6e1   : > { %3031 = vmatpush.msra.mxu2 %v2884_v46 }
 0x6e2   : > { %3830 = vmatmul.msk.f32.vlgmr.msra.gmra.mxu2 %vm990_vm1, %v6815_v35  ;;  %v2915_v35 = vpop.permute.xlu1 %2914 }
 0x6e4   : > { %3827 = vmatmul.msk.f32.gmra.mxu0 %vm990_vm1, %v2890_v37 }
 0x6e5   : > { %v2910_v34 = vpop.permute.xlu2 %2909 }
 0x6ea   : > { %3831 = vmatmul.msk.f32.gmra.mxu2 %vm990_vm1, %v2890_v37 }
 0x6ec   : > { %3828 = vmatmul.msk.f32.gmra.mxu0 %vm990_vm1, %v2891_v29 }
 0x6f2   : > { %3832 = vmatmul.msk.f32.gmra.mxu2 %vm990_vm1, %v2891_v29 }
 0x6f4   : > { %3829 = vmatmul.msk.f32.gmra.mxu0 %vm990_vm1, %v2892_v30 }
 0x6fa   : > { %3833 = vmatmul.msk.f32.gmra.mxu2 %vm990_vm1, %v2892_v30 }
 0x733   : > { %v2946_v32 = vpop.f32.mrf.mxu1 }
 0x734   : > { %v2947_v2 = vadd.f32 %v2946_v32, %v2900_v17  ;;  %v6878_v32 = vpop.permute.xlu1 %3064 }
 0x73b   : > { %v2949_v7 = vpop.f32.mrf.mxu1 }
 0x73c   : > { %v2950_v40 = vadd.f32 %v2949_v7, %v2905_v53  ;;  %v6880_v7 = vpop.permute.xlu0 %3059 }
 0x73f   : > { %v2975_v47 = vpop.f32.mrf.mxu3 }
 0x740   : > { %v2976_v57 = vadd.f32 %v2975_v47, %v2900_v17 }
 0x743   : > { %v2952_v44 = vpop.f32.mrf.mxu1 }
 0x744   : > { %v2953_v52 = vadd.f32 %v2952_v44, %v2910_v34  ;;  %v6883_v44 = vpop.permute.xlu1 %3169 }
 0x746   : > { %v3045_v22 = vmul.f32 %v2953_v52, %v2947_v2 }
 0x747   : > { %v2978_v28 = vpop.f32.mrf.mxu3 }
 0x748   : > { %v2979_v38 = vadd.f32 %v2978_v28, %v2905_v53 }
 0x74b   : > { %v2955_v55 = vpop.f32.mrf.mxu1 }
 0x74c   : > { %v2956_v59 = vadd.f32 %v2955_v55, %v2915_v35 }
 0x74e   : > { %v3049_v37 = vmul.f32 %v2956_v59, %v2950_v40  ;;  %v6896_v40 = vpop.permute.xlu2 %3174 }
 0x74f   : > { %v2981_v4 = vpop.f32.mrf.mxu3 }
 0x750   : > { %3087 = vmatpush.msra.mxu1 %v3049_v37  ;;  %v2982_v29 = vadd.f32 %v2981_v4, %v2910_v34 }
 0x752   : > { %3088 = vmatpush.msra.mxu1 %v3045_v22  ;;  %v3046_v6 = vmul.f32 %v2982_v29, %v2976_v57 }
 0x753   : > { %3834 = vmatmul.msk.f32.vlgmr.msra.gmra.mxu1 %vm990_vm1, %v3053_v14 }
 0x757   : > { %v2984_v60 = vpop.f32.mrf.mxu3 }
 0x758   : > { %v2985_v5 = vadd.f32 %v2984_v60, %v2915_v35 }
 0x759   : > { %v3004_v58 = vpop.f32.mrf.mxu0 }
 0x75a   : > { %v3050_v33 = vmul.f32 %v2985_v5, %v2979_v38  ;;  %v3005_v20 = vadd.f32 %v3004_v58, %v2900_v17 }
 0x75b   : > { %3835 = vmatmul.msk.f32.gmra.mxu1 %vm990_vm1, %v3054_v9 }
 0x75c   : > { %3110 = vmatpush.msrb.mxu3 %v3050_v33 }
 0x75e   : > { %3111 = vmatpush.msrb.mxu3 %v3046_v6 }
 0x75f   : > { %3836 = vmatmul.msk.f32.vlgmr.msrb.gmra.mxu3 %vm990_vm1, %v3053_v14 }
 0x761   : > { %v3007_v26 = vpop.f32.mrf.mxu0 }
 0x762   : > { %v3008_v42 = vadd.f32 %v3007_v26, %v2905_v53 }
 0x765   : > { %v3033_v30 = vpop.f32.mrf.mxu2 }
 0x766   : > { %v3034_v49 = vadd.f32 %v3033_v30, %v2900_v17 }
 0x767   : > { %3837 = vmatmul.msk.f32.gmra.mxu3 %vm990_vm1, %v3054_v9 }
 0x769   : > { %v3010_v19 = vpop.f32.mrf.mxu0 }
 0x76a   : > { %v3011_v16 = vadd.f32 %v3010_v19, %v2910_v34 }
 0x76c   : > { %v3047_v56 = vmul.f32 %v3011_v16, %v3005_v20 }
 0x76d   : > { %v3036_v27 = vpop.f32.mrf.mxu2 }
 0x76e   : > { %v3037_v3 = vadd.f32 %v3036_v27, %v2905_v53 }
 0x771   : > { %v3013_v13 = vpop.f32.mrf.mxu0 }
 0x772   : > { %v3014_v15 = vadd.f32 %v3013_v13, %v2915_v35 }
 0x774   : > { %v3051_v41 = vmul.f32 %v3014_v15, %v3008_v42 }
 0x775   : > { %v3039_v0 = vpop.f32.mrf.mxu2 }
 0x776   : > { %3133 = vmatpush.msra.mxu0 %v3051_v41  ;;  %v3040_v62 = vadd.f32 %v3039_v0, %v2910_v34 }
 0x778   : > { %3134 = vmatpush.msra.mxu0 %v3047_v56  ;;  %v3048_v46 = vmul.f32 %v3040_v62, %v3034_v49 }
 0x779   : > { %3838 = vmatmul.msk.f32.vlgmr.msra.gmra.mxu0 %vm990_vm1, %v3053_v14 }
 0x77d   : > { %v3042_v1 = vpop.f32.mrf.mxu2 }
 0x77e   : > { %v3043_v51 = vadd.f32 %v3042_v1, %v2915_v35 }
 0x780   : > { %v3052_v39 = vmul.f32 %v3043_v51, %v3037_v3 }
 0x781   : > { %3839 = vmatmul.msk.f32.gmra.mxu0 %vm990_vm1, %v3054_v9 }
 0x782   : > { %3156 = vmatpush.msrb.mxu2 %v3052_v39 }
 0x784   : > { %3157 = vmatpush.msrb.mxu2 %v3048_v46 }
 0x785   : > { %3840 = vmatmul.msk.f32.vlgmr.msrb.gmra.mxu2 %vm990_vm1, %v3053_v14 }
 0x78d   : > { %3841 = vmatmul.msk.f32.gmra.mxu2 %vm990_vm1, %v3054_v9 }
 0x7d0   : > { %v3090_v47 = vpop.f32.mrf.mxu1 }
 0x7d1   : > { %v3091_v53 = vadd.f32 %v3090_v47, %v6880_v7 }
 0x7d3   : > { %v3177_v28 = vmul.f32 %v6883_v44, %v3091_v53 }
 0x7d5   : > { %v6887_v34 = vadd.f32 %v3177_v28, %v6734_v21  ;;  %v3453_v28 = vld [vmem:[%s7573_s19] sm:$0xff] }
 0x7d7   : > { %3421 = vrot.lane.b32.xlu2 %v6887_v34, %s7860_s24  ;;  %3293 = vrot.lane.b32.xlu0 %v6887_v34, %s7858_s28 }
 0x7d8   : > { %3389 = vrot.lane.b32.xlu1 %v6887_v34, %s7921_s22  ;;  %v3093_v35 = vpop.f32.mrf.mxu1 }
 0x7d9   : > { %v3094_v55 = vadd.f32 %v3093_v35, %v6878_v32  ;;  %v3454_v35 = vld [vmem:[%s7573_s19 + $0x8] sm:$0x1] }
 0x7db   : > { %v3181_v52 = vmul.f32 %v6896_v40, %v3094_v55 }
 0x7dd   : > { %v6900_v59 = vadd.f32 %v3181_v52, %v6737_v25 }
 0x7df   : > { %3229 = vrot.lane.b32.xlu2 %v6887_v34, %s7864_s1  ;;  %3391 = vrot.lane.b32.xlu0 %v6900_v59, %s7921_s22 }
 0x7e0   : > { %3357 = vrot.lane.b32.xlu1 %v6887_v34, %s7925_s23 }
 0x7e2   : > { %v3113_v37 = vpop.f32.mrf.mxu3 }
 0x7e3   : > { %v3114_v14 = vadd.f32 %v3113_v37, %v6880_v7 }
 0x7e7   : > { %3197 = vrot.lane.b32.xlu2 %v6887_v34, %s7862_s21  ;;  %3295 = vrot.lane.b32.xlu0 %v6900_v59, %s7858_s28 }
 0x7e8   : > { %3325 = vrot.lane.b32.xlu1 %v6887_v34, %s7918_s3 }
 0x7ef   : > { %3263 = vrot.lane.b32.xlu2 %v6900_v59, %s7861_s30  ;;  %3199 = vrot.lane.b32.xlu0 %v6900_v59, %s7862_s21 }
 0x7f0   : > { %3261 = vrot.lane.b32.xlu1 %v6887_v34, %s7861_s30 }
 0x7f6   : > { %v3136_v21 = vpop.f32.mrf.mxu0 }
 0x7f7   : > { %v3137_v25 = vadd.f32 %v3136_v21, %v6880_v7  ;;  %3231 = vrot.lane.b32.xlu2 %v6900_v59, %s7864_s1 }
 0x7f8   : > { %3359 = vrot.lane.b32.xlu1 %v6900_v59, %s7925_s23 }
 0x7f9   : > { %v3179_v17 = vmul.f32 %v6883_v44, %v3137_v25 }
 0x7fb   : > { %v6927_v2 = vadd.f32 %v3179_v17, %v6779_v11  ;;  %v3178_v11 = vmul.f32 %v6883_v44, %v3114_v14 }
 0x7fd   : > { %3333 = vrot.lane.b32.xlu0 %v6927_v2, %s7918_s3  ;;  %v6946_v60 = vadd.f32 %v3178_v11, %v6745_v18  ;;  %v3116_v18 = vpop.f32.mrf.mxu3 }
 0x7fe   : > { %v3139_v22 = vpop.f32.mrf.mxu0 }
 0x7ff   : > { %3397 = vrot.lane.b32.xlu2 %v6927_v2, %s7921_s22  ;;  %v3140_v4 = vadd.f32 %v3139_v22, %v6878_v32 }
 0x800   : > { %3327 = vrot.lane.b32.xlu1 %v6900_v59, %s7918_s3 }
 0x801   : > { %v3183_v9 = vmul.f32 %v6896_v40, %v3140_v4 }
 0x803   : > { %v6949_v58 = vadd.f32 %v3183_v9, %v6782_v61  ;;  %v3117_v61 = vadd.f32 %v3116_v18, %v6878_v32 }
 0x805   : > { %3301 = vrot.lane.b32.xlu0 %v6927_v2, %s7858_s28  ;;  %v3182_v38 = vmul.f32 %v6896_v40, %v3117_v61  ;;  %v8307_v61 = vld [vmem:[#allocation9_spill] sm:$0xff] }
 0x807   : > { %3365 = vrot.lane.b32.xlu2 %v6927_v2, %s7925_s23  ;;  %v6980_v29 = vadd.f32 %v3182_v38, %v6748_v63 }
 0x808   : > { %3423 = vrot.lane.b32.xlu1 %v6900_v59, %s7860_s24  ;;  %v3159_v57 = vpop.f32.mrf.mxu2 }
 0x809   : > { %v3160_v33 = vadd.f32 %v3159_v57, %v6880_v7 }
 0x80b   : > { %v3180_v6 = vmul.f32 %v6883_v44, %v3160_v33 }
 0x80d   : > { %3393 = vrot.lane.b32.xlu0 %v6946_v60, %s7921_s22  ;;  %v7001_v26 = vadd.f32 %v3180_v6, %v6791_v12 }
 0x80f   : > { %3399 = vrot.lane.b32.xlu2 %v6949_v58, %s7921_s22  ;;  %8302 = vst [vmem:[#allocation69_spill] sm:$0xff] %v7001_v26 }
 0x810   : > { %3429 = vrot.lane.b32.xlu1 %v6927_v2, %s7860_s24  ;;  %v3162_v19 = vpop.f32.mrf.mxu2 }
 0x811   : > { %v3163_v27 = vadd.f32 %v3162_v19, %v6878_v32 }
 0x813   : > { %v3184_v42 = vmul.f32 %v6896_v40, %v3163_v27 }
 0x815   : > { %3361 = vrot.lane.b32.xlu0 %v6946_v60, %s7925_s23  ;;  %v7026_v15 = vadd.f32 %v3184_v42, %v6794_v48 }
 0x817   : > { %3367 = vrot.lane.b32.xlu2 %v6949_v58, %s7925_s23  ;;  %8303 = vst [vmem:[#allocation64_spill] sm:$0xff] %v7026_v15 }
 0x818   : > { %3425 = vrot.lane.b32.xlu1 %v6946_v60, %s7860_s24 }
 0x81d   : > { %3329 = vrot.lane.b32.xlu0 %v6946_v60, %s7918_s3 }
 0x81f   : > { %3335 = vrot.lane.b32.xlu2 %v6949_v58, %s7918_s3 }
 0x820   : > { %3233 = vrot.lane.b32.xlu1 %v6946_v60, %s7864_s1 }
 0x825   : > { %3297 = vrot.lane.b32.xlu0 %v6946_v60, %s7858_s28 }
 0x827   : > { %3303 = vrot.lane.b32.xlu2 %v6949_v58, %s7858_s28 }
 0x828   : > { %3201 = vrot.lane.b32.xlu1 %v6946_v60, %s7862_s21 }
 0x82d   : > { %3265 = vrot.lane.b32.xlu0 %v6946_v60, %s7861_s30 }
 0x82f   : > { %3271 = vrot.lane.b32.xlu2 %v6949_v58, %s7861_s30 }
 0x830   : > { %3235 = vrot.lane.b32.xlu1 %v6980_v29, %s7864_s1 }
 0x831   : > { %v6986_v5 = vpop.permute.xlu2 %3421 }
 0x835   : > { %3431 = vrot.lane.b32.xlu0 %v6949_v58, %s7860_s24 }
 0x837   : > { %3395 = vrot.lane.b32.xlu2 %v6980_v29, %s7921_s22 }
 0x838   : > { %3203 = vrot.lane.b32.xlu1 %v6980_v29, %s7862_s21 }
 0x839   : > { %v6995_v63 = vpop.permute.xlu2 %3229 }
 0x83d   : > { %3363 = vrot.lane.b32.xlu0 %v6980_v29, %s7925_s23 }
 0x83f   : > { %3299 = vrot.lane.b32.xlu2 %v6980_v29, %s7858_s28 }
 0x840   : > { %3369 = vrot.lane.b32.xlu1 %v7001_v26, %s7925_s23 }
 0x841   : > { %v7007_v30 = vpop.permute.xlu2 %3197 }
 0x845   : > { %3331 = vrot.lane.b32.xlu0 %v6980_v29, %s7918_s3 }
 0x847   : > { %3401 = vrot.lane.b32.xlu2 %v7001_v26, %s7921_s22 }
 0x848   : > { %3305 = vrot.lane.b32.xlu1 %v7001_v26, %s7858_s28 }
 0x849   : > { %v7016_v12 = vpop.permute.xlu2 %3263  ;;  %v7018_v13 = vpop.permute.xlu0 %3293 }
 0x84a   : > { %v7021_v16 = vpop.permute.xlu1 %3389 }
 0x84d   : > { %3267 = vrot.lane.b32.xlu0 %v6980_v29, %s7861_s30 }
 0x84f   : > { %3337 = vrot.lane.b32.xlu2 %v7001_v26, %s7918_s3 }
 0x850   : > { %3403 = vrot.lane.b32.xlu1 %v7026_v15, %s7921_s22 }
 0x851   : > { %v7032_v20 = vpop.permute.xlu2 %3231  ;;  %v7036_v0 = vpop.permute.xlu0 %3391 }
 0x852   : > { %v7034_v41 = vpop.permute.xlu1 %3357 }
 0x855   : > { %3427 = vrot.lane.b32.xlu0 %v6980_v29, %s7860_s24 }
 0x857   : > { %3273 = vrot.lane.b32.xlu2 %v7001_v26, %s7861_s30 }
 0x858   : > { %3371 = vrot.lane.b32.xlu1 %v7026_v15, %s7925_s23  ;;  %s8336_s23 = sld [smem:[#allocation180_spill]] (%p4149_p5) }
 0x859   : > { %v7044_v48 = vpop.permute.xlu2 %3397  ;;  %v7048_v1 = vpop.permute.xlu0 %3295 }
 0x85a   : > { %v7046_v56 = vpop.permute.xlu1 %3325 }
 0x85d   : > { %3241 = vrot.lane.b32.xlu0 %v7001_v26, %s7864_s1 }
 0x85f   : > { %3307 = vrot.lane.b32.xlu2 %v7026_v15, %s7858_s28 }
 0x860   : > { %3275 = vrot.lane.b32.xlu1 %v7026_v15, %s7861_s30 }
 0x861   : > { %v7056_v3 = vpop.permute.xlu2 %3365  ;;  %v7062_v51 = vpop.permute.xlu0 %3199 }
 0x862   : > { %v7058_v62 = vpop.permute.xlu1 %3261 }
 0x865   : > { %3209 = vrot.lane.b32.xlu0 %v7001_v26, %s7862_s21 }
 0x867   : > { %3211 = vrot.lane.b32.xlu2 %v7026_v15, %s7862_s21 }
 0x868   : > { %3243 = vrot.lane.b32.xlu1 %v7026_v15, %s7864_s1 }
 0x869   : > { %v7068_v49 = vpop.permute.xlu2 %3399 }
 0x86a   : > { %v7070_v39 = vpop.permute.xlu1 %3359 }
 0x86d   : > { %3339 = vrot.lane.b32.xlu0 %v7026_v15, %s7918_s3  ;;  %s8334_s3 = sld [smem:[#allocation5_spill]] (%p4149_p5) }
 0x86f   : > { %3239 = vrot.lane.b32.xlu2 %v6949_v58, %s7864_s1  ;;  %v7076_v46 = vpop.permute.xlu0 %3333 }
 0x870   : > { %3237 = vrot.lane.b32.xlu1 %v6927_v2, %s7864_s1 }
 0x871   : > { %v7080_v32 = vpop.permute.xlu2 %3367 }
 0x872   : > { %v7082_v7 = vpop.permute.xlu1 %3327 }
 0x875   : > { %3269 = vrot.lane.b32.xlu0 %v6927_v2, %s7861_s30  ;;  %s7512_s30 = scalar_lea.vmem [#allocation3], %s4162_s4 }
 0x877   : > { %3205 = vrot.lane.b32.xlu2 %v6927_v2, %s7862_s21  ;;  %v7088_v47 = vpop.permute.xlu0 %3301 }
 0x878   : > { %8304 = vst [vmem:[#allocation124_spill] sm:$0xff] %v7088_v47  ;;  %3435 = vrot.lane.b32.xlu1 %v7026_v15, %s7860_s24 }
 0x879   : > { %v7092_v53 = vpop.permute.xlu2 %3335 }
 0x87a   : > { %v7094_v44 = vpop.permute.xlu1 %3423 }
 0x87d   : > { %3207 = vrot.lane.b32.xlu0 %v6949_v58, %s7862_s21 }
 0x87f   : > { %3457 = vperm.xlu2 %3929, %v3453_v28   ;;  %v3394_v55 = vpop.permute.xlu0 %3393 }
 0x880   : > { %3462 = vperm.xlu1 %3930, %v3454_v35   ;;  %v3407_v14 = vsel %vm920_vm2, %v3394_v55, %v7044_v48  ;;  %v3409_v4 = vsel %vm920_vm2, %v7021_v16, %v3394_v55 }
 0x881   : > { %v7104_v40 = vpop.permute.xlu2 %3303  ;;  %v3413_v33 = vmul.f32 %v3409_v4, %v8307_v61  ;;  %v3414_v6 = vmul.f32 %v3407_v14, %v8222_v54 }
 0x882   : > { %8305 = vst [vmem:[#allocation106_spill] sm:$0xff] %v7104_v40  ;;  %v7106_v52 = vpop.permute.xlu1 %3429 }
 0x885   : > { %3433 = vrot.lane.b32.xlu0 %v7001_v26, %s7860_s24  ;;  %s8335_s24 = sadd.s32 (%p4149_p5), 4294967295, %s8334_s3  }
 0x886   : > { %s3856_s21 = sshll.u32 (%p4149_p5), %s8335_s24, 5 }
 0x887   : > { %v3362_v21 = vpop.permute.xlu0 %3361  ;;  %s3680_s8 = scalar_lea.vmem (%p4149_p5), %s8336_s23, %s3856_s21 }
 0x889   : > { %v7110_v25 = vpop.permute.xlu2 %3271 }
 0x88a   : > { %8306 = vst [vmem:[#allocation151_spill] sm:$0xff] %v7110_v25  ;;  %v7112_v17 = vpop.permute.xlu1 %3425 }
 0x88f   : > { %v3330_v37 = vpop.permute.xlu0 %3329 }
 0x891   : > { %v3396_v22 = vpop.permute.xlu2 %3395 }
 0x892   : > { %v3408_v11 = vsel %vm920_vm2, %v3396_v22, %v7068_v49  ;;  %v3410_v9 = vsel %vm920_vm2, %v7036_v0, %v3396_v22  ;;  %v7126_v18 = vpop.permute.xlu1 %3233 }
 0x893   : > { %v3417_v38 = vmul.f32 %v3410_v9, %v8307_v61  ;;  %v3418_v57 = vmul.f32 %v3408_v11, %v8222_v54  ;;  %v3375_v61 = vsel %vm883_vm3, %v3362_v21, %v7056_v3 }
 0x895   : > { %3471 = vmatpush.msrb.mxu1 %v3417_v38  ;;  %3517 = vmatpush.msrb.mxu0 %v3418_v57  ;;  %v3377_v38 = vsel %vm883_vm3, %v7034_v41, %v3362_v21  ;;  %v3382_v21 = vmul.f32 %v3375_v61, %v8210_v10 }
 0x897   : > { %3518 = vmatpush.msrb.mxu0 %v3414_v6  ;;  %v3298_v19 = vpop.permute.xlu0 %3297  ;;  %3472 = vmatpush.msrb.mxu1 %v3413_v33  ;;  %v8309_v6 = vld [vmem:[#allocation10_spill] sm:$0xff] }
 0x898   : > { %v7135_v27 = vsel %vm809_vm5, %v3298_v19, %v7088_v47 }
 0x899   : > { %8308 = vst [vmem:[#allocation101_spill] sm:$0xff] %v7135_v27  ;;  %v3300_v42 = vpop.permute.xlu2 %3299  ;;  %v3381_v27 = vmul.f32 %v3377_v38, %v8309_v6 }
 0x89a   : > { %v7140_v28 = vsel %vm809_vm5, %v3300_v42, %v7104_v40  ;;  %v7142_v35 = vpop.permute.xlu1 %3201 }
 0x89f   : > { %v7144_v55 = vpop.permute.xlu0 %3265 }
 0x8a1   : > { %v7146_v54 = vpop.permute.xlu2 %3401 }
 0x8a2   : > { %v7148_v22 = vpop.permute.xlu1 %3235 }
 0x8a7   : > { %v7150_v14 = vpop.permute.xlu0 %3431 }
 0x8a9   : > { %v7152_v4 = vpop.permute.xlu2 %3337 }
 0x8aa   : > { %v7154_v11 = vpop.permute.xlu1 %3203 }
 0x8af   : > { %v3364_v9 = vpop.permute.xlu0 %3363 }
 0x8b0   : > { %v3376_v57 = vsel %vm883_vm3, %v3364_v9, %v7080_v32  ;;  %v3378_v33 = vsel %vm883_vm3, %v7070_v39, %v3364_v9  ;;  %v3345_v9 = vsel %vm846_vm4, %v7046_v56, %v3330_v37 }
 0x8b1   : > { %v3385_v26 = vmul.f32 %v3378_v33, %v8309_v6  ;;  %v3386_v47 = vmul.f32 %v3376_v57, %v8210_v10  ;;  %v7170_v15 = vpop.permute.xlu2 %3273  ;;  %v3343_v10 = vsel %vm846_vm4, %v3330_v37, %v7076_v46  ;;  %v3314_v37 = vsel %vm809_vm5, %v7048_v1, %v3300_v42 }
 0x8b2   : > { %v7172_v40 = vpop.permute.xlu1 %3369 }
 0x8b3   : > { %3473 = vmatpush.msrb.mxu1 %v3385_v26  ;;  %3519 = vmatpush.msrb.mxu0 %v3386_v47  ;;  %v8310_v26 = vld [vmem:[#allocation11_spill] sm:$0xff] }
 0x8b4   : > { %v3349_v38 = vmul.f32 %v3345_v9, %v8310_v26  ;;  %v3313_v9 = vsel %vm809_vm5, %v7018_v13, %v3298_v19  ;;  %v3439_v19 = vsel %vm957_vm0, %v7112_v17, %v7106_v52 }
 0x8b5   : > { %3474 = vmatpush.msrb.mxu1 %v3381_v27  ;;  %3520 = vmatpush.msrb.mxu0 %v3382_v21  ;;  %v3350_v21 = vmul.f32 %v3343_v10, %v8203_v45 }
 0x8b7   : > { %v3332_v25 = vpop.permute.xlu0 %3331 }
 0x8b8   : > { %v3344_v57 = vsel %vm846_vm4, %v3332_v25, %v7092_v53  ;;  %v3346_v33 = vsel %vm846_vm4, %v7082_v7, %v3332_v25 }
 0x8b9   : > { %v3353_v47 = vmul.f32 %v3346_v33, %v8310_v26  ;;  %v3354_v27 = vmul.f32 %v3344_v57, %v8203_v45  ;;  %v7193_v6 = vpop.permute.xlu2 %3307  ;;  %v8311_v33 = vld [vmem:[#allocation15_spill] sm:$0xff] }
 0x8ba   : > { %v7190_v61 = vpop.permute.xlu1 %3305  ;;  %v3316_v25 = vsel %vm809_vm5, %v7193_v6, %v7048_v1  ;;  %v3322_v1 = vmul.f32 %v3314_v37, %v8200_v31 }
 0x8bb   : > { %3475 = vmatpush.msrb.mxu1 %v3353_v47  ;;  %3521 = vmatpush.msrb.mxu0 %v3354_v27  ;;  %v3315_v45 = vsel %vm809_vm5, %v7190_v61, %v7018_v13  ;;  %v3321_v10 = vmul.f32 %v3316_v25, %v8311_v33  ;;  %v3318_v13 = vmul.f32 %v3313_v9, %v8200_v31  ;;  %v8312_v9 = vld [vmem:[#allocation31_spill] sm:$0xff] }
 0x8bc   : > { %v3317_v42 = vmul.f32 %v3315_v45, %v8311_v33  ;;  %v3250_v31 = vsel %vm735_vm7, %v7032_v20, %v7148_v22  ;;  %v3441_v47 = vsel %vm957_vm0, %v6986_v5, %v7112_v17  ;;  %v3249_v25 = vsel %vm735_vm7, %v6995_v63, %v7126_v18  ;;  %v3959_v17 = vld [vmem:[%s7856_s25 + $0x20] ss:$0 sm:$0xff] }
 0x8bd   : > { %3476 = vmatpush.msrb.mxu1 %v3349_v38  ;;  %3522 = vmatpush.msrb.mxu0 %v3350_v21  ;;  %v3258_v33 = vmul.f32 %v3250_v31, %v8312_v9 }
 0x8bf   : > { %v7203_v57 = vpop.permute.xlu0 %3267  ;;  %3477 = vmatpush.msrb.mxu1 %v6900_v59  ;;  %3523 = vmatpush.msrb.mxu0 %v6980_v29 }
 0x8c0   : > { %v3282_v29 = vsel %vm772_vm6, %v7016_v12, %v7203_v57 }
 0x8c1   : > { %3478 = vmatpush.msrb.mxu1 %v6887_v34  ;;  %3524 = vmatpush.msrb.mxu0 %v6946_v60  ;;  %v3281_v34 = vsel %vm772_vm6, %v7058_v62, %v7144_v55  ;;  %v3290_v60 = vmul.f32 %v3282_v29, %v8194_v36 }
 0x8c2   : > { %v7218_v59 = vpop.permute.xlu1 %3403  ;;  %v3286_v27 = vmul.f32 %v3281_v34, %v8194_v36  ;;  %v3960_v36 = vld [vmem:[%s7856_s25 + $0x28] ss:$0 sm:$0xff] }
 0x8c3   : > { %3479 = vmatpush.msrb.mxu1 %v3321_v10  ;;  %3525 = vmatpush.msrb.mxu0 %v3322_v1  ;;  %v3406_v10 = vsel %vm920_vm2, %v7068_v49, %v7218_v59  ;;  %v3446_v29 = vmul.f32 %v3960_v36, %v3439_v19  ;;  %v7274_v34 = vld [vmem:[%s7572_s18 + $0x8] sm:$0xff]  ;;  %v3405_v49 = vsel %vm920_vm2, %v7044_v48, %v7146_v54 }
 0x8c4   : > { %v3217_v19 = vsel %vm698_vm8, %v7007_v30, %v7142_v35  ;;  %v3419_v31 = vmul.f32 %v3406_v10, %v8245_v8  ;;  %v3415_v48 = vmul.f32 %v3405_v49, %v8245_v8  ;;  %v7339_v10 = vpop.permute.xlu2 %3211 }
 0x8c5   : > { %3480 = vmatpush.msrb.mxu1 %v3317_v42  ;;  %3526 = vmatpush.msrb.mxu0 %v3318_v13  ;;  %v3445_v42 = vmul.f32 %v3959_v17, %v3441_v47  ;;  %v3218_v13 = vsel %vm698_vm8, %v7062_v51, %v7154_v11 }
 0x8c7   : > { %v3428_v26 = vpop.permute.xlu0 %3427  ;;  %3527 = vmatpush.msrb.mxu0 %v3290_v60  ;;  %v3254_v60 = vmul.f32 %v3249_v25, %v8312_v9  ;;  %v3373_v25 = vsel %vm883_vm3, %v7056_v3, %v7172_v40  ;;  %v3283_v3 = vsel %vm772_vm6, %v7170_v15, %v7058_v62  ;;  %v8314_v9 = vld [vmem:[#allocation16_spill] sm:$0xff] }
 0x8c8   : > { %v3440_v38 = vsel %vm957_vm0, %v3428_v26, %v7150_v14  ;;  %v3442_v21 = vsel %vm957_vm0, %v7094_v44, %v3428_v26  ;;  %v8313_v26 = vld [vmem:[#allocation32_spill] sm:$0xff]  ;;  %v3285_v62 = vmul.f32 %v3283_v3, %v8314_v9 }
 0x8c9   : > { %v3449_v37 = vmul.f32 %v3959_v17, %v3442_v21  ;;  %v3450_v45 = vmul.f32 %v3960_v36, %v3440_v38  ;;  %3528 = vmatpush.msrb.mxu0 %v3286_v27  ;;  %v3226_v47 = vmul.f32 %v3218_v13, %v8313_v26  ;;  %v3222_v21 = vmul.f32 %v3217_v19, %v8313_v26 }
 0x8ca   : > { %v7265_v1 = vpop.permute.xlu1 %3371  ;;  %v3220_v19 = vsel %vm698_vm8, %v7339_v10, %v7062_v51 }
 0x8cb   : > { %3508 = vmatpush.msra.mxu3 %v3449_v37  ;;  %3554 = vmatpush.msra.mxu2 %v3450_v45  ;;  %v3374_v27 = vsel %vm883_vm3, %v7080_v32, %v7265_v1  ;;  %v7304_v32 = vld [vmem:[%s7572_s18] sm:$0xff]  ;;  %v3383_v37 = vmul.f32 %v3373_v25, %v8225_v24  ;;  %v7324_v45 = vld [vmem:[%s7572_s18 + $0x18] sm:$0x1] }
 0x8cc   : > { %3529 = vmatpush.msrb.mxu0 %v3258_v33  ;;  %v3387_v8 = vmul.f32 %v3374_v27, %v8225_v24 }
 0x8cd   : > { %3509 = vmatpush.msra.mxu3 %v3445_v42  ;;  %3555 = vmatpush.msra.mxu2 %v3446_v29 }
 0x8ce   : > { %3530 = vmatpush.msrb.mxu0 %v3254_v60  ;;  %3844 = vmatmul.msk.f32.vlgmr.msra.gmra.mxu2 %vm990_vm1, %v7274_v34  ;;  %v8315_v60 = vld [vmem:[#allocation20_spill] sm:$0xff] }
 0x8cf   : > { %3563 = vmatpush.msrb.mxu3 %v3419_v31  ;;  %v7294_v38 = vpop.permute.xlu0 %3241 }
 0x8d0   : > { %3531 = vmatpush.msrb.mxu0 %v3226_v47  ;;  %3842 = vmatmul.msk.f32.vlgmr.msra.gmra.mxu3 %vm990_vm1, %v7274_v34  ;;  %v3251_v29 = vsel %vm735_vm7, %v7294_v38, %v6995_v63  ;;  %v8316_v47 = vld [vmem:[#allocation24_spill] sm:$0xff] }
 0x8d1   : > { %3564 = vmatpush.msrb.mxu3 %v3415_v48  ;;  %v3253_v31 = vmul.f32 %v3251_v29, %v8315_v60  ;;  %v3225_v27 = vmul.f32 %v3220_v19, %v8316_v47  ;;  %v3412_v48 = vsel %vm920_vm2, %v7218_v59, %v7036_v0  ;;  %v3380_v0 = vsel %vm883_vm3, %v7265_v1, %v7070_v39  ;;  %v8318_v39 = vld [vmem:[#allocation33_spill] sm:$0xff] }
 0x8d2   : > { %3532 = vmatpush.msrb.mxu0 %v3222_v21  ;;  %v7309_v17 = vpop.permute.xlu1 %3275  ;;  %v8317_v21 = vld [vmem:[#allocation30_spill] sm:$0xff]  ;;  %v3420_v3 = vmul.f32 %v3412_v48, %v8273_v50  ;;  %v3323_v1 = vmul.f32 %v7140_v28, %v8318_v39  ;;  %v3347_v28 = vsel %vm846_vm4, %v7152_v4, %v7046_v56  ;;  %v8325_v48 = vld [vmem:[#allocation64_spill] sm:$0xff] }
 0x8d3   : > { %v3284_v36 = vsel %vm772_vm6, %v7309_v17, %v7016_v12  ;;  %3533 = vmatmul.f32.vlgmr.msrb.gmra.mxu0 %v7304_v32  ;;  %3565 = vmatpush.msrb.mxu3 %v3387_v8  ;;  %v7335_v12 = vld [vmem:[%s7572_s18 + $0x10] sm:$0x1] }
 0x8d4   : > { %v3289_v33 = vmul.f32 %v3284_v36, %v8314_v9  ;;  %v3388_v36 = vmul.f32 %v3380_v0, %v8268_v43 }
 0x8d5   : > { %3566 = vmatpush.msrb.mxu3 %v3383_v37 }
 0x8d6   : > { %3481 = vmatpush.msrb.mxu1 %v3289_v33  ;;  %3845 = vmatmul.msk.f32.gmra.mxu2 %vm990_vm1, %v7324_v45  ;;  %v8320_v33 = vld [vmem:[#allocation101_spill] sm:$0xff] }
 0x8d7   : > { %v7330_v24 = vpop.permute.xlu0 %3209 }
 0x8d8   : > { %3482 = vmatpush.msrb.mxu1 %v3285_v62  ;;  %3843 = vmatmul.msk.f32.gmra.mxu3 %vm990_vm1, %v7324_v45  ;;  %v3219_v63 = vsel %vm698_vm8, %v7330_v24, %v7007_v30  ;;  %v3319_v62 = vmul.f32 %v8320_v33, %v8318_v39 }
 0x8d9   : > { %v3221_v25 = vmul.f32 %v3219_v63, %v8316_v47  ;;  %v8324_v47 = vld [vmem:[#allocation35_spill] sm:$0xff] }
 0x8da   : > { %v7341_v42 = vpop.permute.xlu1 %3243 }
 0x8db   : > { %v3252_v13 = vsel %vm735_vm7, %v7341_v42, %v7032_v20  ;;  %3536 = vmatmul.f32.gmra.mxu0 %v7335_v12  ;;  %v3341_v20 = vsel %vm846_vm4, %v7076_v46, %v7152_v4  ;;  %v3411_v46 = vsel %vm920_vm2, %v7146_v54, %v7021_v16  ;;  %v3379_v16 = vsel %vm883_vm3, %v7172_v40, %v7034_v41  ;;  %v7394_v54 = vpop.permute.xlu2 %3239  ;;  %v8319_v41 = vld [vmem:[#allocation151_spill] sm:$0xff] }
 0x8dc   : > { %v3257_v49 = vmul.f32 %v3252_v13, %v8315_v60  ;;  %v3416_v59 = vmul.f32 %v3411_v46, %v8273_v50  ;;  %v3384_v9 = vmul.f32 %v3379_v16, %v8268_v43  ;;  %v3280_v40 = vsel %vm772_vm6, %v7203_v57, %v8319_v41  ;;  %v3961_v13 = vld [vmem:[%s7856_s25 + $0x30] ss:$0 sm:$0xff]  ;;  %v8322_v60 = vld [vmem:[#allocation34_spill] sm:$0xff] }
 0x8de   : > { %3483 = vmatpush.msrb.mxu1 %v3257_v49 }
 0x8df   : > { %v3340_v26 = vpop.permute.xlu0 %3339 }
 0x8e0   : > { %v3342_v51 = vsel %vm846_vm4, %v7092_v53, %v3340_v26  ;;  %3484 = vmatpush.msrb.mxu1 %v3253_v31  ;;  %v3351_v53 = vmul.f32 %v3341_v20, %v8317_v21  ;;  %v3348_v50 = vsel %vm846_vm4, %v3340_v26, %v7082_v7  ;;  %v8321_v7 = vld [vmem:[#allocation14_spill] sm:$0xff] }
 0x8e1   : > { %v3355_v30 = vmul.f32 %v3342_v51, %v8317_v21  ;;  %v3356_v57 = vmul.f32 %v3348_v50, %v8321_v7  ;;  %v3352_v49 = vmul.f32 %v3347_v28, %v8321_v7  ;;  %v8323_v26 = vld [vmem:[#allocation106_spill] sm:$0xff]  ;;  %v8326_v21 = vld [vmem:[#allocation124_spill] sm:$0xff]  ;;  %v3246_v50 = vsel %vm735_vm7, %v7394_v54, %v7341_v42 }
 0x8e2   : > { %3485 = vmatpush.msrb.mxu1 %v3225_v27  ;;  %v7376_v8 = vpop.permute.xlu1 %3237  ;;  %v3310_v20 = vsel %vm809_vm5, %v8323_v26, %v7193_v6  ;;  %v3964_v7 = vld [vmem:[%s4165_s29 + $0x28] sm:$0xff] }
 0x8e3   : > { %3567 = vmatpush.msrb.mxu3 %v3355_v30  ;;  %v3247_v63 = vsel %vm735_vm7, %v7126_v18, %v7376_v8  ;;  %v3206_v27 = vpop.permute.xlu2 %3205  ;;  %v3309_v18 = vsel %vm809_vm5, %v8326_v21, %v7190_v61 }
 0x8e4   : > { %3486 = vmatpush.msrb.mxu1 %v3221_v25  ;;  %v3255_v30 = vmul.f32 %v3247_v63, %v8324_v47  ;;  %v8327_v25 = vld [vmem:[#allocation17_spill] sm:$0xff]  ;;  %v3215_v46 = vsel %vm698_vm8, %v7142_v35, %v3206_v27 }
 0x8e5   : > { %3487 = vmatmul.f32.vlgmr.msrb.gmra.mxu1 %v7304_v32  ;;  %3568 = vmatpush.msrb.mxu3 %v3351_v53  ;;  %v3324_v6 = vmul.f32 %v3310_v20, %v8327_v25  ;;  %v8328_v53 = vld [vmem:[#allocation69_spill] sm:$0xff]  ;;  %v3320_v61 = vmul.f32 %v3309_v18, %v8327_v25 }
 0x8e6   : > { %3609 = vmatpush.msra.mxu1 %v3420_v3  ;;  %v8329_v3 = vld [vmem:[#allocation36_spill] sm:$0xff] }
 0x8e7   : > { %v3270_v37 = vpop.permute.xlu0 %3269  ;;  %3569 = vmatpush.msrb.mxu3 %v6949_v58 }
 0x8e8   : > { %3610 = vmatpush.msra.mxu1 %v3416_v59  ;;  %v3279_v29 = vsel %vm772_vm6, %v7144_v55, %v3270_v37  ;;  %v3248_v55 = vsel %vm735_vm7, %v7148_v22, %v7394_v54  ;;  %v3223_v59 = vmul.f32 %v3215_v46, %v8329_v3  ;;  %v3277_v16 = vsel %vm772_vm6, %v3270_v37, %v7170_v15  ;;  %v3968_v46 = vld [vmem:[%s4165_s29 + $0x18] sm:$0xff] }
 0x8e9   : > { %3570 = vmatpush.msrb.mxu3 %v6927_v2  ;;  %v3287_v19 = vmul.f32 %v3279_v29, %v8322_v60  ;;  %v3259_v22 = vmul.f32 %v3248_v55, %v8324_v47 }
 0x8ea   : > { %3611 = vmatpush.msra.mxu1 %v3388_v36  ;;  %v3436_v58 = vpop.permute.xlu1 %3435  ;;  %v8330_v36 = vld [vmem:[#allocation18_spill] sm:$0xff] }
 0x8eb   : > { %v3438_v2 = vsel %vm957_vm0, %v7150_v14, %v3436_v58  ;;  %v3444_v43 = vsel %vm957_vm0, %v3436_v58, %v7094_v44  ;;  %3571 = vmatpush.msrb.mxu3 %v3323_v1  ;;  %v3962_v14 = vld [vmem:[%s7856_s25 + $0x38] ss:$0 sm:$0xff]  ;;  %v3291_v44 = vmul.f32 %v3280_v40, %v8322_v60  ;;  %v3288_v37 = vmul.f32 %v3277_v16, %v8330_v36  ;;  %v3458_v23 = vpop.permute.xlu2 %3457 }
 0x8ec   : > { %v3451_v56 = vmul.f32 %v3961_v13, %v3438_v2  ;;  %v3452_v4 = vmul.f32 %v3962_v14, %v3444_v43  ;;  %3612 = vmatpush.msra.mxu1 %v3384_v9 }
 0x8ed   : > { %3490 = vmatmul.f32.gmra.mxu1 %v7335_v12  ;;  %3572 = vmatpush.msrb.mxu3 %v3319_v62  ;;  %v3963_v62 = vld [vmem:[%s4165_s29 + $0x8] sm:$0xff] }
 0x8ee   : > { %3613 = vmatpush.msra.mxu1 %v3356_v57  ;;  %3600 = vmatpush.msrb.mxu2 %v3451_v56 }
 0x8ef   : > { %3646 = vmatpush.msra.mxu0 %v3452_v4  ;;  %v3208_v31 = vpop.permute.xlu0 %3207  ;;  %3573 = vmatpush.msrb.mxu3 %v3291_v44  ;;  %v3965_v4 = vld [vmem:[%s4165_s29] sm:$0xff] }
 0x8f0   : > { %3614 = vmatpush.msra.mxu1 %v3352_v49  ;;  %v3216_v51 = vsel %vm698_vm8, %v7154_v11, %v3208_v31  ;;  %v3278_v11 = vsel %vm772_vm6, %v8319_v41, %v7309_v17  ;;  %v3214_v42 = vsel %vm698_vm8, %v3208_v31, %v7339_v10  ;;  %v3966_v31 = vld [vmem:[%s4165_s29 + $0x20] sm:$0xff] }
 0x8f1   : > { %3574 = vmatpush.msrb.mxu3 %v3287_v19  ;;  %v3227_v0 = vmul.f32 %v3216_v51, %v8329_v3  ;;  %v3292_v39 = vmul.f32 %v3278_v11, %v8330_v36  ;;  %v3967_v51 = vld [vmem:[%s4165_s29 + $0x10] sm:$0xff] }
 0x8f2   : > { %3615 = vmatpush.msra.mxu1 %v8325_v48 }
 0x8f3   : > { %3575 = vmatpush.msrb.mxu3 %v3259_v22 }
 0x8f4   : > { %3616 = vmatpush.msra.mxu1 %v8328_v53 }
 0x8f5   : > { %3576 = vmatpush.msrb.mxu3 %v3255_v30 }
 0x8f6   : > { %3617 = vmatpush.msra.mxu1 %v3324_v6 }
 0x8f7   : > { %v3434_v35 = vpop.permute.xlu0 %3433  ;;  %3577 = vmatpush.msrb.mxu3 %v3227_v0  ;;  %v3969_v0 = vld [vmem:[%s4165_s29 + $0x30] sm:$0xff] }
 0x8f8   : > { %3618 = vmatpush.msra.mxu1 %v3320_v61  ;;  %v3437_v17 = vsel %vm957_vm0, %v7106_v52, %v3434_v35  ;;  %v3443_v1 = vsel %vm957_vm0, %v3434_v35, %v6986_v5  ;;  %v3245_v52 = vsel %vm735_vm7, %v7376_v8, %v7294_v38  ;;  %v8331_v5 = vld [vmem:[#allocation19_spill] sm:$0xff]  ;;  %v3213_v38 = vsel %vm698_vm8, %v3206_v27, %v7330_v24  ;;  %v8332_v8 = vld [vmem:[#allocation21_spill] sm:$0xff] }
 0x8f9   : > { %v3447_v9 = vmul.f32 %v3961_v13, %v3437_v17  ;;  %v3448_v15 = vmul.f32 %v3962_v14, %v3443_v1  ;;  %3578 = vmatpush.msrb.mxu3 %v3223_v59  ;;  %v3260_v41 = vmul.f32 %v3246_v50, %v8331_v5  ;;  %v3256_v54 = vmul.f32 %v3245_v52, %v8331_v5 }
 0x8fa   : > { %3619 = vmatpush.msra.mxu1 %v3292_v39  ;;  %3579 = vmatmul.f32.vlgmr.msrb.gmra.mxu3 %v7304_v32  ;;  %v3228_v40 = vmul.f32 %v3214_v42, %v8332_v8  ;;  %v3224_v58 = vmul.f32 %v3213_v38, %v8332_v8  ;;  %v3970_v39 = vld [vmem:[%s4165_s29 + $0x38] sm:$0xff] }
 0x8fb   : > { %3601 = vmatpush.msrb.mxu2 %v3447_v9  ;;  %3647 = vmatpush.msra.mxu0 %v3448_v15 }
 0x8fc   : > { %3620 = vmatpush.msra.mxu1 %v3288_v37  ;;  %3846 = vmatmul.msk.f32.vlgmr.msrb.gmra.mxu2 %vm990_vm1, %v7274_v34 }
 0x8fd   : > { %3848 = vmatmul.msk.f32.vlgmr.msra.gmra.mxu0 %vm990_vm1, %v7274_v34 }
 0x8fe   : > { %3621 = vmatpush.msra.mxu1 %v3260_v41 }
 0x900   : > { %3622 = vmatpush.msra.mxu1 %v3256_v54 }
 0x902   : > { %3623 = vmatpush.msra.mxu1 %v3228_v40  ;;  %3582 = vmatmul.f32.gmra.mxu3 %v7335_v12 }
 0x904   : > { %3624 = vmatpush.msra.mxu1 %v3224_v58  ;;  %3847 = vmatmul.msk.f32.gmra.mxu2 %vm990_vm1, %v7324_v45 }
 0x905   : > { %3625 = vmatmul.f32.vlgmr.msra.gmra.mxu1 %v7304_v32  ;;  %3849 = vmatmul.msk.f32.gmra.mxu0 %vm990_vm1, %v7324_v45  ;;  %v3463_v32 = vpop.permute.xlu1 %3462 }
 0x90d   : > { %3628 = vmatmul.f32.gmra.mxu1 %v7335_v12 }
 0x950   : > { %v3534_v34 = vpop.f32.mrf.mxu0 }
 0x951   : > { %v3535_v24 = vadd.f32 %v3534_v34, %v3458_v23  ;;  %v3557_v10 = vpop.f32.mrf.mxu2 }
 0x953   : > { %v3558_v33 = vadd.f32 %v3557_v10, %v3535_v24  ;;  %v3511_v29 = vpop.f32.mrf.mxu3 }
 0x955   : > { %v3656_v28 = vadd.f32 %v3963_v62, %v3558_v33 }
 0x957   : > { %3664 = vst [vmem:[%s7512_s30 + $0x8] sm:$0xff] %v3656_v28 }
 0x958   : > { %v3537_v2 = vpop.f32.mrf.mxu0 }
 0x959   : > { %v3538_v45 = vadd.f32 %v3537_v2, %v3463_v32  ;;  %v3560_v43 = vpop.f32.mrf.mxu2 }
 0x95b   : > { %v3561_v12 = vadd.f32 %v3560_v43, %v3538_v45  ;;  %v3514_v49 = vpop.f32.mrf.mxu3 }
 0x95d   : > { %v3660_v57 = vadd.f32 %v3964_v7, %v3561_v12 }
 0x95e   : > { %v3695_v50 = vld [vmem:[%s7512_s30 + $0x8] sm:$0xff] (%p4149_p5) }
 0x95f   : > { %3668 = vst [vmem:[%s7512_s30 + $0x28] sm:$0x1] %v3660_v57 }
 0x960   : > { %3696 = vst [vmem:[%s3680_s8 + $0x8] sm:$0xff] (%p4149_p5), %v3695_v50 }
 0x962   : > { %v3488_v13 = vpop.f32.mrf.mxu1 }
 0x963   : > { %v3489_v56 = vadd.f32 %v3488_v13, %v3458_v23 }
 0x965   : > { %v3512_v14 = vadd.f32 %v3511_v29, %v3489_v56 }
 0x966   : > { %v3703_v52 = vld [vmem:[%s7512_s30 + $0x28] sm:$0xff] (%p4149_p5) }
 0x967   : > { %v3655_v60 = vadd.f32 %v3965_v4, %v3512_v14  ;;  %3704 = vst [vmem:[%s3680_s8 + $0x48] sm:$0xff] (%p4149_p5), %v3703_v52 }
 0x969   : > { %3663 = vst [vmem:[%s7512_s30] sm:$0xff] %v3655_v60 }
 0x96a   : > { %v3491_v44 = vpop.f32.mrf.mxu1 }
 0x96b   : > { %v3492_v55 = vadd.f32 %v3491_v44, %v3463_v32 }
 0x96d   : > { %v3515_v19 = vadd.f32 %v3514_v49, %v3492_v55 }
 0x96f   : > { %v3659_v63 = vadd.f32 %v3966_v31, %v3515_v19 }
 0x970   : > { %v3693_v1 = vld [vmem:[%s7512_s30] sm:$0xff] (%p4149_p5) }
 0x971   : > { %3667 = vst [vmem:[%s7512_s30 + $0x20] sm:$0x1] %v3659_v63 }
 0x972   : > { %3694 = vst [vmem:[%s3680_s8] sm:$0xff] (%p4149_p5), %v3693_v1 }
 0x978   : > { %v3701_v37 = vld [vmem:[%s7512_s30 + $0x20] sm:$0xff] (%p4149_p5) }
 0x979   : > { %3702 = vst [vmem:[%s3680_s8 + $0x40] sm:$0xff] (%p4149_p5), %v3701_v37 }
 0x97a   : > { %v3649_v27 = vpop.f32.mrf.mxu0 }
 0x97d   : > { %v3580_v26 = vpop.f32.mrf.mxu3 }
 0x97e   : > { %v3581_v20 = vadd.f32 %v3580_v26, %v3458_v23 }
 0x97f   : > { %v3603_v47 = vpop.f32.mrf.mxu2 }
 0x980   : > { %v3604_v22 = vadd.f32 %v3603_v47, %v3581_v20 }
 0x982   : > { %v3657_v48 = vadd.f32 %v3967_v51, %v3604_v22  ;;  %v3626_v21 = vpop.f32.mrf.mxu1  ;;  %v3652_v16 = vpop.f32.mrf.mxu0 }
 0x983   : > { %v3627_v18 = vadd.f32 %v3626_v21, %v3458_v23 }
 0x984   : > { %3665 = vst [vmem:[%s7512_s30 + $0x10] sm:$0xff] %v3657_v48 }
 0x985   : > { %v3650_v30 = vadd.f32 %v3649_v27, %v3627_v18  ;;  %v3583_v25 = vpop.f32.mrf.mxu3 }
 0x986   : > { %v3584_v6 = vadd.f32 %v3583_v25, %v3463_v32 }
 0x987   : > { %v3658_v53 = vadd.f32 %v3968_v46, %v3650_v30  ;;  %v3606_v11 = vpop.f32.mrf.mxu2 }
 0x988   : > { %v3607_v3 = vadd.f32 %v3606_v11, %v3584_v6 }
 0x989   : > { %3666 = vst [vmem:[%s7512_s30 + $0x18] sm:$0xff] %v3658_v53 }
 0x98a   : > { %v3661_v61 = vadd.f32 %v3969_v0, %v3607_v3  ;;  %v3629_v59 = vpop.f32.mrf.mxu1 }
 0x98b   : > { %v3630_v35 = vadd.f32 %v3629_v59, %v3463_v32  ;;  %v3697_v9 = vld [vmem:[%s7512_s30 + $0x10] sm:$0xff] (%p4149_p5) }
 0x98c   : > { %3669 = vst [vmem:[%s7512_s30 + $0x30] sm:$0x1] %v3661_v61 }
 0x98d   : > { %v3653_v36 = vadd.f32 %v3652_v16, %v3630_v35  ;;  %3677 = sbr.rel (!%p4149_p5) target bundleno = 2458 (0x99a), region = 127  ;;  %3698 = vst [vmem:[%s3680_s8 + $0x10] sm:$0xff] (%p4149_p5), %v3697_v9 }
 0x98f   : > { %v3662_v17 = vadd.f32 %v3970_v39, %v3653_v36 }
 0x990   : > { %v3699_v15 = vld [vmem:[%s7512_s30 + $0x18] sm:$0xff] (%p4149_p5) }
 0x991   : > { %3670 = vst [vmem:[%s7512_s30 + $0x38] sm:$0x1] %v3662_v17 }
 0x992   : > { %3700 = vst [vmem:[%s3680_s8 + $0x18] sm:$0xff] %v3699_v15 }
 0x993   : > { %v3705_v5 = vld [vmem:[%s7512_s30 + $0x30] sm:$0xff] }
 0x994   : > { %3706 = vst [vmem:[%s3680_s8 + $0x50] sm:$0xff] %v3705_v5 }
 0x998   : > { %v3707_v41 = vld [vmem:[%s7512_s30 + $0x38] sm:$0xff] }
 0x999   : > { %3708 = vst [vmem:[%s3680_s8 + $0x58] sm:$0xff] %v3707_v41 }
 0x99a PF: > { %s8337_s23 = sld [smem:[#allocation6_spill]] }
 0x99b   : > { %s8338_s1 = sld [smem:[#allocation4_spill]] }
 0x99c   : > { %s8339_s22 = sld [smem:[#allocation7_spill]] }
 0x9a0   : > { %p27_p10 = scmp.ge.s32.totalorder %s8337_s23, 4  }
 0x9a2   :  { %29 = sbr.rel (!%p27_p10) target bundleno = 14 (0xe), region = 181 }

</bundles_post_ra>
